<compile_context>
chip_gen: v5e
topology: v5e:2x2
jax: 0.10.0
libtpu: 0.0.40
codegen_flags: <defaults>
</compile_context>

<pallas_src>
import functools

import jax
import jax.numpy as jnp
from jax.experimental import pallas as pl
from jax.experimental.pallas import tpu as pltpu

# ----------------------------- model hyper-params -----------------------------
EMBED_SIZE = 32           # embed_size argument of EncoderCNN
FEAT_CHANNELS = 2048      # resnet.fc.in_features for resnet50
STEM_K = 7                # stem conv kernel size
STEM_STRIDE = 2
STEM_PAD = 3
IN_CHANNELS = 3

K_RAW = STEM_K * STEM_K * IN_CHANNELS   # 147
K_PAD = 256                             # pad contraction dim to MXU granule
E_PAD = 128                             # pad embed dim to one lane width
TILE_HW_MAX = 512                       # HW rows per tile (v7x-safe)


def _round_up(x, m):
    return ((x + m - 1) // m) * m


# ------------------------------- Pallas kernel --------------------------------
def _fused_stem_pool_embed_kernel(x_ref, ws_ref, bs_ref, we_ref, be_ref,
                                  o_ref, acc_ref, *, hw, tile_hw, hw_pad):
    """Fused: conv-as-im2col matmul + bias + ReLU, avg-pool accumulate, embed.

    Grid = (B, n_hw_tiles); HW axis last ("arbitrary" reduction).
      x_ref : (1, tile_hw, K_PAD)  bf16 im2col patches for this batch / HW tile
      ws_ref: (K_PAD, C)           bf16 stem weight (K zero-padded)
      bs_ref: (1, C)               f32  stem bias
      we_ref: (C, E_PAD)           f32  embed weight (pre-transposed, padded)
      be_ref: (1, E_PAD)           f32  embed bias (padded)
      o_ref : (1, 1, E_PAD)        f32  output embedding for this batch
      acc_ref: (1, C)              f32  per-batch pooled-sum accumulator
    """
    t = pl.program_id(1)

    @pl.when(t == 0)
    def _():
        acc_ref[...] = jnp.zeros_like(acc_ref)

    # Stem conv tile on the MXU: bf16 inputs, f32 accumulate.
    acts = jnp.dot(x_ref[0], ws_ref[...], preferred_element_type=jnp.float32)
    acts = jnp.maximum(acts + bs_ref[...], 0.0)          # (tile_hw, C) f32

    # Mask zero-padded HW rows (they would otherwise contribute relu(bias)).
    if hw_pad != hw:
        rows = t * tile_hw + jax.lax.broadcasted_iota(jnp.int32, (tile_hw, 1), 0)
        acts = jnp.where(rows < hw, acts, 0.0)

    # AdaptiveAvgPool2d(1) accumulation: sum over the HW rows of this tile.
    acc_ref[...] += jnp.sum(acts, axis=0, keepdims=True)  # (1, C)

    @pl.when(t == pl.num_programs(1) - 1)
    def _():
        pooled = acc_ref[...] * (1.0 / hw)                 # (1, C)  == pool + view
        o_ref[0] = (jnp.dot(pooled, we_ref[...],
                            preferred_element_type=jnp.float32)
                    + be_ref[...])                         # nn.Linear


def _fused_encoder_pallas(x_col, w_stem, b_stem, w_embed, b_embed, *, hw, tile_hw):
    b, hw_pad, k_pad = x_col.shape
    c = w_stem.shape[1]
    e_pad = w_embed.shape[1]
    n_t = hw_pad // tile_hw

    kernel = functools.partial(_fused_stem_pool_embed_kernel,
                               hw=hw, tile_hw=tile_hw, hw_pad=hw_pad)

    out = pl.pallas_call(
        kernel,
        out_shape=jax.ShapeDtypeStruct((b, 1, e_pad), jnp.float32),
        grid_spec=pltpu.PrefetchScalarGridSpec(
            num_scalar_prefetch=0,
            grid=(b, n_t),
            in_specs=[
                pl.BlockSpec((1, tile_hw, k_pad), lambda i, t: (i, t, 0)),  # patches
                pl.BlockSpec((k_pad, c), lambda i, t: (0, 0)),              # w_stem
                pl.BlockSpec((1, c), lambda i, t: (0, 0)),                  # b_stem
                pl.BlockSpec((c, e_pad), lambda i, t: (0, 0)),              # w_embed
                pl.BlockSpec((1, e_pad), lambda i, t: (0, 0)),              # b_embed
            ],
            out_specs=pl.BlockSpec((1, 1, e_pad), lambda i, t: (i, 0, 0)),
            scratch_shapes=[pltpu.VMEM((1, c), jnp.float32)],
        ),
        compiler_params=pltpu.CompilerParams(
            dimension_semantics=("parallel", "arbitrary"),
            vmem_limit_bytes=48 * 1024 * 1024,
        ),
    )(x_col, w_stem, b_stem, w_embed, b_embed)
    return out[:, 0, :]                                    # (B, E_PAD)


# ------------------------------- JAX glue / model ------------------------------
def init_params(key):
    """Weights stored pre-reshaped / pre-transposed / pre-padded for the kernel."""
    k1, k2, k3, k4 = jax.random.split(key, 4)
    w_stem = jax.random.normal(k1, (STEM_K, STEM_K, IN_CHANNELS, FEAT_CHANNELS),
                               jnp.float32) * 0.05                       # HWIO
    b_stem = jax.random.normal(k2, (FEAT_CHANNELS,), jnp.float32) * 0.01
    w_embed = jax.random.normal(k3, (EMBED_SIZE, FEAT_CHANNELS), jnp.float32) * 0.02
    b_embed = jax.random.normal(k4, (EMBED_SIZE,), jnp.float32) * 0.01

    w_stem_col = w_stem.reshape(K_RAW, FEAT_CHANNELS)
    w_stem_col = jnp.pad(w_stem_col, ((0, K_PAD - K_RAW), (0, 0))).astype(jnp.bfloat16)
    b_stem_row = b_stem.reshape(1, FEAT_CHANNELS)
    w_embed_t = jnp.pad(w_embed.T, ((0, 0), (0, E_PAD - EMBED_SIZE)))    # (C, 128)
    b_embed_p = jnp.pad(b_embed, (0, E_PAD - EMBED_SIZE)).reshape(1, E_PAD)
    return dict(w_stem_col=w_stem_col, b_stem=b_stem_row,
                w_embed_t=w_embed_t, b_embed=b_embed_p)


def _extract_patches_nhwc(x_nhwc):
    """im2col for 7x7 / stride 2 / pad 3.  Returns (B, Ho, Wo, K*K*C), Ho, Wo."""
    b, h, w, c = x_nhwc.shape
    ho = (h + 2 * STEM_PAD - STEM_K) // STEM_STRIDE + 1
    wo = (w + 2 * STEM_PAD - STEM_K) // STEM_STRIDE + 1
    xp = jnp.pad(x_nhwc, ((0, 0), (STEM_PAD, STEM_PAD), (STEM_PAD, STEM_PAD), (0, 0)))
    patches = []
    for dy in range(STEM_K):
        for dx in range(STEM_K):
            patches.append(
                xp[:, dy:dy + STEM_STRIDE * ho:STEM_STRIDE,
                      dx:dx + STEM_STRIDE * wo:STEM_STRIDE, :]
            )
    # order (ky, kx, c_in) matches the HWIO weight reshape in init_params
    return jnp.concatenate(patches, axis=-1), ho, wo


@jax.jit
def encoder_cnn_forward(images_nchw, params):
    """images_nchw: (B, 3, H, W) float32  ->  (B, EMBED_SIZE) float32."""
    b = images_nchw.shape[0]
    x_nhwc = jnp.transpose(images_nchw, (0, 2, 3, 1))            # NCHW -> NHWC

    # im2col in the wrapper; bf16 cast halves the duplicated-patch HBM traffic.
    # TODO(synk): patch extraction could move into the kernel (row-gather
    # index_map over padded NHWC) to avoid materializing patches at all.
    patches, ho, wo = _extract_patches_nhwc(x_nhwc)               # (B, Ho, Wo, 147)
    hw = ho * wo
    x_col = patches.reshape(b, hw, K_RAW)

    tile_hw = min(TILE_HW_MAX, _round_up(hw, 8))
    hw_pad = _round_up(hw, tile_hw)
    x_col = jnp.pad(x_col, ((0, 0), (0, hw_pad - hw), (0, K_PAD - K_RAW)))
    x_col = x_col.astype(jnp.bfloat16)                            # (B, hw_pad, 256)

    out = _fused_encoder_pallas(
        x_col, params["w_stem_col"], params["b_stem"],
        params["w_embed_t"], params["b_embed"],
        hw=hw, tile_hw=tile_hw)                                   # (B, E_PAD)
    return out[:, :EMBED_SIZE]                                    # (B, 32)


# ------------------------------------ main -------------------------------------
if __name__ == "__main__":
    key = jax.random.PRNGKey(0)
    k_img, k_par = jax.random.split(key)

    # Small input consistent with the module: NCHW images, 3 channels.
    images = jax.random.normal(k_img, (2, 3, 16, 16), jnp.float32)
    params = init_params(k_par)

    out = encoder_cnn_forward(images, params)
    jax.block_until_ready(out)

    assert out.shape == (2, EMBED_SIZE) and out.dtype == jnp.float32
    assert bool(jnp.all(jnp.isfinite(out)))
    print("KERNEL_OK")
</pallas_src>

<mosaic_0001>
module attributes {stable_mosaic.version = 11 : i64} {
  func.func @_fused_stem_pool_embed_kernel(%arg0: i32, %arg1: i32, %arg2: memref<1x64x256xbf16, #tpu.memory_space<vmem>>, %arg3: memref<256x2048xbf16, #tpu.memory_space<vmem>>, %arg4: memref<1x2048xf32, #tpu.memory_space<vmem>>, %arg5: memref<2048x128xf32, #tpu.memory_space<vmem>>, %arg6: memref<1x128xf32, #tpu.memory_space<vmem>>, %arg7: memref<1x1x128xf32, #tpu.memory_space<vmem>>, %arg8: memref<1x2048xf32, #tpu.memory_space<vmem>>) attributes {dimension_semantics = [#tpu.dimension_semantics<parallel>, #tpu.dimension_semantics<arbitrary>], iteration_bounds = array<i64: 2, 1>, scalar_prefetch = 0 : i64, scratch_operands = 1 : i64, tpu.core_type = #tpu.core_type<tc>, window_params = [{transform_indices = @transform_0, window_bounds = array<i64: 1, 64, 256>}, {pipeline_mode = #tpu.pipeline_mode<synchronous>, transform_indices = @transform_1, window_bounds = array<i64: 256, 2048>}, {pipeline_mode = #tpu.pipeline_mode<synchronous>, transform_indices = @transform_2, window_bounds = array<i64: 1, 2048>}, {pipeline_mode = #tpu.pipeline_mode<synchronous>, transform_indices = @transform_3, window_bounds = array<i64: 2048, 128>}, {pipeline_mode = #tpu.pipeline_mode<synchronous>, transform_indices = @transform_4, window_bounds = array<i64: 1, 128>}, {transform_indices = @transform_5, window_bounds = array<i64: 1, 1, 128>}]} {
    %c0_i32 = arith.constant 0 : i32
    %0 = arith.cmpi eq, %arg1, %c0_i32 : i32
    %1 = arith.extui %0 : i1 to i32
    %c0_i32_0 = arith.constant 0 : i32
    %2 = arith.cmpi ne, %1, %c0_i32_0 : i32
    scf.if %2 {
      %cst_15 = arith.constant 0.000000e+00 : f32
      %20 = vector.broadcast %cst_15 : f32 to vector<1x2048xf32>
      %c0_16 = arith.constant 0 : index
      %c0_17 = arith.constant 0 : index
      %21 = vector.load %arg8[%c0_16, %c0_17] : memref<1x2048xf32, #tpu.memory_space<vmem>>, vector<1x2048xf32>
      tpu.vector_store %arg8[%c0_16, %c0_17], %20 {strides = array<i32>} : memref<1x2048xf32, #tpu.memory_space<vmem>>, vector<1x2048xf32>,
    } else {
    }
    %c0 = arith.constant 0 : index
    %c0_1 = arith.constant 0 : index
    %c0_2 = arith.constant 0 : index
    %3 = vector.load %arg2[%c0, %c0_1, %c0_2] : memref<1x64x256xbf16, #tpu.memory_space<vmem>>, vector<1x64x256xbf16>
    %4 = vector.shape_cast %3 : vector<1x64x256xbf16> to vector<64x256xbf16>
    %c0_3 = arith.constant 0 : index
    %c0_4 = arith.constant 0 : index
    %5 = vector.load %arg3[%c0_3, %c0_4] : memref<256x2048xbf16, #tpu.memory_space<vmem>>, vector<256x2048xbf16>
    %cst = arith.constant dense<0.000000e+00> : vector<64x2048xf32>
    %6 = tpu.matmul %4, %5, %cst {dimension_numbers = #tpu.dot_dimension_numbers<[1], [0], [0], [1], [0, 0, 1, 1], [], []>} : vector<64x256xbf16>, vector<256x2048xbf16>, vector<64x2048xf32> -> vector<64x2048xf32>
    %c0_5 = arith.constant 0 : index
    %c0_6 = arith.constant 0 : index
    %7 = vector.load %arg4[%c0_5, %c0_6] : memref<1x2048xf32, #tpu.memory_space<vmem>>, vector<1x2048xf32>
    %8 = vector.broadcast %7 : vector<1x2048xf32> to vector<64x2048xf32>
    %9 = arith.addf %6, %8 : vector<64x2048xf32>
    %cst_7 = arith.constant 0.000000e+00 : f32
    %10 = vector.broadcast %cst_7 : f32 to vector<64x2048xf32>
    %11 = arith.maximumf %9, %10 : vector<64x2048xf32>
    %c0_8 = arith.constant 0 : index
    %c0_9 = arith.constant 0 : index
    %12 = vector.load %arg8[%c0_8, %c0_9] : memref<1x2048xf32, #tpu.memory_space<vmem>>, vector<1x2048xf32>
    %cst_10 = arith.constant dense<0.000000e+00> : vector<2048xf32>
    %13 = vector.multi_reduction <add>, %11, %cst_10 [0] : vector<64x2048xf32> to vector<2048xf32>
    %14 = vector.shape_cast %13 : vector<2048xf32> to vector<1x2048xf32>
    %15 = arith.addf %12, %14 : vector<1x2048xf32>
    %c0_11 = arith.constant 0 : index
    %c0_12 = arith.constant 0 : index
    %16 = vector.load %arg8[%c0_11, %c0_12] : memref<1x2048xf32, #tpu.memory_space<vmem>>, vector<1x2048xf32>
    tpu.vector_store %arg8[%c0_11, %c0_12], %15 {strides = array<i32>} : memref<1x2048xf32, #tpu.memory_space<vmem>>, vector<1x2048xf32>,
    %c0_i32_13 = arith.constant 0 : i32
    %17 = arith.cmpi eq, %arg1, %c0_i32_13 : i32
    %18 = arith.extui %17 : i1 to i32
    %c0_i32_14 = arith.constant 0 : i32
    %19 = arith.cmpi ne, %18, %c0_i32_14 : i32
    scf.if %19 {
      %c0_15 = arith.constant 0 : index
      %c0_16 = arith.constant 0 : index
      %20 = vector.load %arg8[%c0_15, %c0_16] : memref<1x2048xf32, #tpu.memory_space<vmem>>, vector<1x2048xf32>
      %cst_17 = arith.constant 1.562500e-02 : f32
      %21 = vector.broadcast %cst_17 : f32 to vector<1x2048xf32>
      %22 = arith.mulf %20, %21 : vector<1x2048xf32>
      %c0_18 = arith.constant 0 : index
      %c0_19 = arith.constant 0 : index
      %23 = vector.load %arg5[%c0_18, %c0_19] : memref<2048x128xf32, #tpu.memory_space<vmem>>, vector<2048x128xf32>
      %cst_20 = arith.constant dense<0.000000e+00> : vector<1x128xf32>
      %24 = tpu.matmul %22, %23, %cst_20 {dimension_numbers = #tpu.dot_dimension_numbers<[1], [0], [0], [1], [0, 0, 1, 1], [], []>} : vector<1x2048xf32>, vector<2048x128xf32>, vector<1x128xf32> -> vector<1x128xf32>
      %c0_21 = arith.constant 0 : index
      %c0_22 = arith.constant 0 : index
      %25 = vector.load %arg6[%c0_21, %c0_22] : memref<1x128xf32, #tpu.memory_space<vmem>>, vector<1x128xf32>
      %26 = arith.addf %24, %25 : vector<1x128xf32>
      %c0_23 = arith.constant 0 : index
      %c0_24 = arith.constant 0 : index
      %c0_25 = arith.constant 0 : index
      %27 = vector.load %arg7[%c0_23, %c0_24, %c0_25] : memref<1x1x128xf32, #tpu.memory_space<vmem>>, vector<1x1x128xf32>
      %28 = vector.shape_cast %27 : vector<1x1x128xf32> to vector<1x128xf32>
      %29 = vector.shape_cast %26 : vector<1x128xf32> to vector<1x1x128xf32>
      tpu.vector_store %arg7[%c0_23, %c0_24, %c0_25], %29 {strides = array<i32>} : memref<1x1x128xf32, #tpu.memory_space<vmem>>, vector<1x1x128xf32>,
    } else {
    }
    return
  }
  func.func @transform_0(%arg0: i32, %arg1: i32) -> (i32, i32, i32) {
    %c0_i32 = arith.constant 0 : i32
    %c0_i32_0 = arith.constant 0 : i32
    return %arg0, %arg1, %c0_i32 : i32, i32, i32
  }
  func.func @transform_1(%arg0: i32, %arg1: i32) -> (i32, i32) {
    %c0_i32 = arith.constant 0 : i32
    %c0_i32_0 = arith.constant 0 : i32
    %c0_i32_1 = arith.constant 0 : i32
    return %c0_i32, %c0_i32_0 : i32, i32
  }
  func.func @transform_2(%arg0: i32, %arg1: i32) -> (i32, i32) {
    %c0_i32 = arith.constant 0 : i32
    %c0_i32_0 = arith.constant 0 : i32
    %c0_i32_1 = arith.constant 0 : i32
    return %c0_i32, %c0_i32_0 : i32, i32
  }
  func.func @transform_3(%arg0: i32, %arg1: i32) -> (i32, i32) {
    %c0_i32 = arith.constant 0 : i32
    %c0_i32_0 = arith.constant 0 : i32
    %c0_i32_1 = arith.constant 0 : i32
    return %c0_i32, %c0_i32_0 : i32, i32
  }
  func.func @transform_4(%arg0: i32, %arg1: i32) -> (i32, i32) {
    %c0_i32 = arith.constant 0 : i32
    %c0_i32_0 = arith.constant 0 : i32
    %c0_i32_1 = arith.constant 0 : i32
    return %c0_i32, %c0_i32_0 : i32, i32
  }
  func.func @transform_5(%arg0: i32, %arg1: i32) -> (i32, i32, i32) {
    %c0_i32 = arith.constant 0 : i32
    %c0_i32_0 = arith.constant 0 : i32
    %c0_i32_1 = arith.constant 0 : i32
    return %arg0, %c0_i32, %c0_i32_0 : i32, i32, i32
  }
}

</mosaic_0001>

<bundles_post_ra>
// kernel: encoder_cnn_forward.1
= control target key start
LH: loop header
LB: loop body
LE: loop exit
PB: predicated region body
PF: predicated region fallthrough
CT: control target
= control target key end

     0   :  { %10 = vsyncpa [#allocation4], 0  ;;  %s8293_s0 = inlined_call_operand.vmem [shape: bf16[2,64,256], index: 0, kind: input, shape index: {}]   ;;  %s8294_s1 = inlined_call_operand.vmem [shape: bf16[256,2048], index: 1, kind: input, shape index: {}]   ;;  %s8295_s2 = inlined_call_operand.vmem [shape: f32[1,2048], index: 2, kind: input, shape index: {}]   ;;  %s8296_s3 = inlined_call_operand.vmem [shape: f32[2048,128], index: 3, kind: input, shape index: {}]   ;;  %s8297_s4 = inlined_call_operand.vmem [shape: f32[1,128], index: 4, kind: input, shape index: {}]   ;;  %s8298_s5 = inlined_call_operand.hbm [shape: f32[2,1,128], index: 5, kind: output, shape index: {}]  }
   0x1   :  { %12 = vsyncpa [#allocation4 + $0x1], 0  ;;  %s5403_s18 = smov 0   ;;  %s5405_s19 = smov 0  }
   0x2   :  { %s5407_s20 = smov 0   ;;  %s5409_s21 = smov 0  }
   0x3   :  { %s5411_s22 = smov 0   ;;  %s5413_s23 = smov 0  }
   0x4 LB: > { %s3906_s24 = sadd.s32 4294967295, %s5371_s23   ;;  %s3907_s25 = sadd.s32 4294967294, %s5371_s23   ;;  %s5371_s23 = sphi %s5413_s23, %s18_s23   ;;  %s5367_s22 = sphi %s5411_s22, %s8305_s22   ;;  %s5363_s21 = sphi %s5409_s21, %s8304_s21   ;;  %s5359_s20 = sphi %s5407_s20, %s8303_s20   ;;  %s5355_s19 = sphi %s5405_s19, %s8302_s19   ;;  %s5351_s18 = sphi %s5403_s18, %s8301_s18  }
   0x5   : > { %s30_s26 = sadd.s32 1, %s5367_s22  ;;  %s149_s27 = sadd.s32 1, %s5359_s20 }
   0x6   : > { %p32_p0 = scmp.ge.s32.totalorder %s30_s26, 2  ;;  %p159_p1 = scmp.ne.s32.totalorder %s5359_s20, %s5355_s19 }
   0x7   : > { %p160_p2 = scmp.eq.s32.totalorder %s3906_s24, 1  ;;  %p165_p3 = scmp.ne.s32.totalorder %s5355_s19, %s5351_s18 }
   0x8   : > { %s8307_s26 = smov (%p32_p0, %s30_s26), 0  ;;  %p166_p5 = scmp.eq.s32.totalorder %s3907_s25, 1 }
   0x9   : > { %p5443_p4 = por %p160_p2, %p159_p1  ;;  %s146_s29 = ssub.s32 %s5367_s22, %s8307_s26 }
   0xa   : > { %p3910_p6 = scmp.ge.s32.totalorder %s5371_s23, 1  ;;  %p147_p7 = scmp.eq.s32.totalorder %s146_s29, 0 }
   0xb   : > { %p5450_p8 = por %p166_p5, %p165_p3  ;;  %p210_p9 = scmp.lt.s32.totalorder %s5371_s23, 3 }
   0xc   : > { %s5456_s6 = scalar_select %p147_p7, %s5359_s20, %s149_s27  }
   0xd   : > { %p211_p10 = pnand %p3910_p6, %p210_p9 }
   0xe   : > { %p243_p11 = scmp.lt.s32.totalorder (!%p211_p10), %s5363_s21, 1  ;;  %s240_s10 = sand.u32 (!%p211_p10), 1, %s5355_s19  }
   0xf   : > { %214 = sbr.rel (%p211_p10) target bundleno = 868 (0x364), region = 40  ;;  %s241_s12 = scalar_lea.vmem (!%p211_p10), [#allocation3], %s240_s10 }
  0x10   : > { %s3832_s13 = sshll.u32 (!%p211_p10), %s241_s12, 4  ;;  %s3822_s15 = scalar_lea.sflag (!%p211_p10), [#allocation4], %s240_s10  ;;  %s3833_s13 = int_to_ptr.vmem [resolvable:$true] %s3832_s13 }
  0x11   : > { %s5313_s29 = scalar_lea.hbm (!%p211_p10), %s8298_s5, 2 }
  0x14   : > { %v4395_v0 = vld [vmem:[%s8294_s1 + $0x380] sm:$0xf]  ;;  %v5092_v5 = vld [vmem:[%s8294_s1 + $0x384] sm:$0xf]  ;;  %s244_s27 = scalar_select %p243_p11, %s5363_s21, 1  ;;  %vm3175_vm0 = vcmask 1040384  }
  0x15   : > { %v5100_v1 = vld [vmem:[%s8294_s1 + $0x3bc] sm:$0xf0]  ;;  %v4397_v6 = vld [vmem:[%s8294_s1 + $0x3c0] sm:$0xf0]  ;;  %vm3177_vm1 = vcmask 1042434   ;;  %vm3179_vm2 = vcmask 1041408  }
  0x16   : > { %v4907_v2 = vld [vmem:[%s8294_s1 + $0x780] sm:$0xf]  ;;  %v4396_v3 = vor.u32 %v5100_v1, %v4395_v0  ;;  %v4400_v8 = vor.u32 %v5092_v5, %v4397_v6  ;;  %v5220_v9 = vld [vmem:[%s8294_s1 + $0x784] sm:$0xf]  ;;  %s4971_s16 = sshll.u32 %s244_s27, 6  ;;  %vm3181_vm3 = vcmask 1044484   ;;  %s3830_s27 = scalar_lea.hbm %s8298_s5, %s5363_s21 }
  0x17   : > { %v5228_v4 = vld [vmem:[%s8294_s1 + $0x7bc] sm:$0xf0]  ;;  %v4909_v10 = vld [vmem:[%s8294_s1 + $0x7c0] sm:$0xf0]  ;;  %s5655_s25 = scalar_lea.vmem %s8293_s0, %s4971_s16  ;;  %vm3183_vm4 = vcmask 1046534   ;;  %vm3185_vm5 = vcmask 1045508  }
  0x18   : > { %v4908_v7 = vor.u32 %v5228_v4, %v4907_v2  ;;  %v4331_v11 = vld [vmem:[%s8294_s1 + $0x300] sm:$0xf]  ;;  %1879 = vmatpush.bf16.msra.mxu0 %v4396_v3  ;;  %v4912_v12 = vor.u32 %v5220_v9, %v4909_v10  ;;  %1937 = vmatpush.bf16.msra.mxu2 %v4400_v8  ;;  %v5076_v18 = vld [vmem:[%s8294_s1 + $0x304] sm:$0xf]  ;;  %vm3187_vm6 = vcmask 1043456   ;;  %s3834_s14 = sshll.u32 %s3830_s27, 4  ;;  %s3835_s14 = int_to_ptr.hbm [resolvable:$true] %s3834_s14 }
  0x19   : > { %v5084_v13 = vld [vmem:[%s8294_s1 + $0x33c] sm:$0xf0]  ;;  %v4333_v19 = vld [vmem:[%s8294_s1 + $0x340] sm:$0xf0]  ;;  %s5307_s16 = sshra.s32 %s3835_s14, 4  ;;  %s5308_s16 = int_to_ptr.hbm [resolvable:$true] %s5307_s16 }
  0x1a   : > { %v4843_v14 = vld [vmem:[%s8294_s1 + $0x700] sm:$0xf]  ;;  %1908 = vmatpush.bf16.msra.mxu1 %v4908_v7  ;;  %v4332_v16 = vor.u32 %v5084_v13, %v4331_v11  ;;  %v5204_v20 = vld [vmem:[%s8294_s1 + $0x704] sm:$0xf]  ;;  %1966 = vmatpush.bf16.msra.mxu3 %v4912_v12  ;;  %v4336_v21 = vor.u32 %v5076_v18, %v4333_v19  ;;  %s5309_s17 = scalar_lea.hbm %s5308_s16, 1  ;;  %p5314_p1 = scmp.lt.s32.totalorder %s5308_s16, %s8298_s5 }
  0x1b   : > { %v5212_v15 = vld [vmem:[%s8294_s1 + $0x73c] sm:$0xf0]  ;;  %v4845_v22 = vld [vmem:[%s8294_s1 + $0x740] sm:$0xf0]  ;;  %p5310_p12 = scmp.ne.s32.totalorder %s5308_s16, %s5309_s17  ;;  %p5315_p2 = scmp.lt.s32.totalorder %s5313_s29, %s5309_s17 }
  0x1c   : > { %v4844_v17 = vor.u32 %v5212_v15, %v4843_v14  ;;  %v4267_v23 = vld [vmem:[%s8294_s1 + $0x280] sm:$0xf]  ;;  %v4848_v25 = vor.u32 %v5204_v20, %v4845_v22  ;;  %v5060_v28 = vld [vmem:[%s8294_s1 + $0x284] sm:$0xf]  ;;  %1880 = vmatpush.bf16.msra.mxu0 %v4332_v16  ;;  %1938 = vmatpush.bf16.msra.mxu2 %v4336_v21 }
  0x1d   : > { %v5068_v24 = vld [vmem:[%s8294_s1 + $0x2bc] sm:$0xf0]  ;;  %v4269_v30 = vld [vmem:[%s8294_s1 + $0x2c0] sm:$0xf0]  ;;  %p5311_p13 = pnand %p5310_p12, %p5443_p4  ;;  %p5316_p3 = por %p5315_p2, %p5314_p1 }
  0x1e   : > { %v4779_v26 = vld [vmem:[%s8294_s1 + $0x680] sm:$0xf]  ;;  %v4268_v29 = vor.u32 %v5068_v24, %v4267_v23  ;;  %v5188_v31 = vld [vmem:[%s8294_s1 + $0x684] sm:$0xf]  ;;  %1909 = vmatpush.bf16.msra.mxu1 %v4844_v17  ;;  %v4272_v34 = vor.u32 %v5060_v28, %v4269_v30  ;;  %1967 = vmatpush.bf16.msra.mxu3 %v4848_v25  ;;  %v5093_v28 = vld [vmem:[%s8294_s1 + $0x38c] sm:$0xf] }
  0x1f   : > { %v5196_v27 = vld [vmem:[%s8294_s1 + $0x6bc] sm:$0xf0]  ;;  %v4781_v32 = vld [vmem:[%s8294_s1 + $0x6c0] sm:$0xf0]  ;;  %v5221_v30 = vld [vmem:[%s8294_s1 + $0x78c] sm:$0xf]  ;;  %p5312_p0 = pneg %p5311_p13 }
  0x20   : > { %v4780_v33 = vor.u32 %v5196_v27, %v4779_v26  ;;  %v4203_v35 = vld [vmem:[%s8294_s1 + $0x200] sm:$0xf]  ;;  %v4784_v38 = vor.u32 %v5188_v31, %v4781_v32  ;;  %v5044_v40 = vld [vmem:[%s8294_s1 + $0x204] sm:$0xf]  ;;  %1881 = vmatpush.bf16.msra.mxu0 %v4268_v29  ;;  %1939 = vmatpush.bf16.msra.mxu2 %v4272_v34  ;;  %v4405_v29 = vld [vmem:[%s8294_s1 + $0x3c8] sm:$0xf0] }
  0x21   : > { %v5052_v36 = vld [vmem:[%s8294_s1 + $0x23c] sm:$0xf0]  ;;  %v4205_v41 = vld [vmem:[%s8294_s1 + $0x240] sm:$0xf0]  ;;  %v4917_v34 = vld [vmem:[%s8294_s1 + $0x7c8] sm:$0xf0]  ;;  %p5317_p5 = pnand %p5316_p3, %p5312_p0 }
  0x22   : > { %v4715_v37 = vld [vmem:[%s8294_s1 + $0x600] sm:$0xf]  ;;  %v5172_v42 = vld [vmem:[%s8294_s1 + $0x604] sm:$0xf]  ;;  %v4204_v44 = vor.u32 %v5052_v36, %v4203_v35  ;;  %1910 = vmatpush.bf16.msra.mxu1 %v4780_v33  ;;  %v4208_v46 = vor.u32 %v5044_v40, %v4205_v41  ;;  %1968 = vmatpush.bf16.msra.mxu3 %v4784_v38  ;;  %v4973_v33 = vld [vmem:[%s5655_s25 + $0x4] sm:$0xf0]  ;;  %v4408_v40 = vor.u32 %v5093_v28, %v4405_v29 }
  0x23   : > { %v5180_v39 = vld [vmem:[%s8294_s1 + $0x63c] sm:$0xf0]  ;;  %v4717_v43 = vld [vmem:[%s8294_s1 + $0x640] sm:$0xf0]  ;;  %v3917_v38 = vld [vmem:[%s5655_s25 + $0x8] sm:$0xf0] }
  0x24   : > { %v4716_v45 = vor.u32 %v5180_v39, %v4715_v37  ;;  %v4139_v47 = vld [vmem:[%s8294_s1 + $0x180] sm:$0xf]  ;;  %v4720_v50 = vor.u32 %v5172_v42, %v4717_v43  ;;  %v5028_v52 = vld [vmem:[%s8294_s1 + $0x184] sm:$0xf]  ;;  %1882 = vmatpush.bf16.msra.mxu0 %v4204_v44  ;;  %1940 = vmatpush.bf16.msra.mxu2 %v4208_v46  ;;  %v4403_v41 = vld [vmem:[%s8294_s1 + $0x388] sm:$0xf] }
  0x25   : > { %v5036_v48 = vld [vmem:[%s8294_s1 + $0x1bc] sm:$0xf0]  ;;  %v4141_v53 = vld [vmem:[%s8294_s1 + $0x1c0] sm:$0xf0]  ;;  %v5101_v42 = vld [vmem:[%s8294_s1 + $0x3c4] sm:$0xf0] }
  0x26   : > { %v4651_v49 = vld [vmem:[%s8294_s1 + $0x580] sm:$0xf]  ;;  %v5156_v54 = vld [vmem:[%s8294_s1 + $0x584] sm:$0xf]  ;;  %v4140_v56 = vor.u32 %v5036_v48, %v4139_v47  ;;  %1911 = vmatpush.bf16.msra.mxu1 %v4716_v45  ;;  %v4144_v58 = vor.u32 %v5028_v52, %v4141_v53  ;;  %1969 = vmatpush.bf16.msra.mxu3 %v4720_v50  ;;  %v4915_v43 = vld [vmem:[%s8294_s1 + $0x788] sm:$0xf]  ;;  %v4920_v45 = vor.u32 %v5221_v30, %v4917_v34 }
  0x27   : > { %v5164_v51 = vld [vmem:[%s8294_s1 + $0x5bc] sm:$0xf0]  ;;  %v4653_v55 = vld [vmem:[%s8294_s1 + $0x5c0] sm:$0xf0]  ;;  %v5229_v46 = vld [vmem:[%s8294_s1 + $0x7c4] sm:$0xf0]  ;;  %v4404_v52 = vor.u32 %v5101_v42, %v4403_v41 }
  0x28   : > { %v4652_v57 = vor.u32 %v5164_v51, %v4651_v49  ;;  %v4075_v59 = vld [vmem:[%s8294_s1 + $0x100] sm:$0xf]  ;;  %v4656_v62 = vor.u32 %v5156_v54, %v4653_v55  ;;  %v5012_v0 = vld [vmem:[%s8294_s1 + $0x104] sm:$0xf]  ;;  %1883 = vmatpush.bf16.msra.mxu0 %v4140_v56  ;;  %1941 = vmatpush.bf16.msra.mxu2 %v4144_v58  ;;  %v5077_v47 = vld [vmem:[%s8294_s1 + $0x30c] sm:$0xf]  ;;  %v4916_v53 = vor.u32 %v5229_v46, %v4915_v43 }
  0x29   : > { %v5020_v60 = vld [vmem:[%s8294_s1 + $0x13c] sm:$0xf0]  ;;  %v4077_v1 = vld [vmem:[%s8294_s1 + $0x140] sm:$0xf0]  ;;  %v4341_v48 = vld [vmem:[%s8294_s1 + $0x348] sm:$0xf0] }
  0x2a   : > { %v4587_v61 = vld [vmem:[%s8294_s1 + $0x500] sm:$0xf]  ;;  %v5140_v2 = vld [vmem:[%s8294_s1 + $0x504] sm:$0xf]  ;;  %v4076_v4 = vor.u32 %v5020_v60, %v4075_v59  ;;  %1912 = vmatpush.bf16.msra.mxu1 %v4652_v57  ;;  %v4080_v7 = vor.u32 %v5012_v0, %v4077_v1  ;;  %1970 = vmatpush.bf16.msra.mxu3 %v4656_v62  ;;  %v5205_v50 = vld [vmem:[%s8294_s1 + $0x70c] sm:$0xf]  ;;  %v4344_v54 = vor.u32 %v5077_v47, %v4341_v48 }
  0x2b   : > { %v5148_v63 = vld [vmem:[%s8294_s1 + $0x53c] sm:$0xf0]  ;;  %v4589_v3 = vld [vmem:[%s8294_s1 + $0x540] sm:$0xf0]  ;;  %v4853_v51 = vld [vmem:[%s8294_s1 + $0x748] sm:$0xf0] }
  0x2c   : > { %v4011_v5 = vld [vmem:[%s8294_s1 + $0x80] sm:$0xf]  ;;  %v4588_v6 = vor.u32 %v5148_v63, %v4587_v61  ;;  %v4592_v11 = vor.u32 %v5140_v2, %v4589_v3  ;;  %v4996_v12 = vld [vmem:[%s8294_s1 + $0x84] sm:$0xf]  ;;  %1884 = vmatpush.bf16.msra.mxu0 %v4076_v4  ;;  %1942 = vmatpush.bf16.msra.mxu2 %v4080_v7  ;;  %v4339_v55 = vld [vmem:[%s8294_s1 + $0x308] sm:$0xf]  ;;  %v4856_v58 = vor.u32 %v5205_v50, %v4853_v51 }
  0x2d   : > { %v5004_v8 = vld [vmem:[%s8294_s1 + $0xbc] sm:$0xf0]  ;;  %v4013_v13 = vld [vmem:[%s8294_s1 + $0xc0] sm:$0xf0]  ;;  %v5085_v56 = vld [vmem:[%s8294_s1 + $0x344] sm:$0xf0] }
  0x2e   : > { %v4523_v9 = vld [vmem:[%s8294_s1 + $0x480] sm:$0xf]  ;;  %v5124_v14 = vld [vmem:[%s8294_s1 + $0x484] sm:$0xf]  ;;  %v4012_v17 = vor.u32 %v5004_v8, %v4011_v5  ;;  %1913 = vmatpush.bf16.msra.mxu1 %v4588_v6  ;;  %v4016_v21 = vor.u32 %v4996_v12, %v4013_v13  ;;  %1971 = vmatpush.bf16.msra.mxu3 %v4592_v11  ;;  %v4851_v57 = vld [vmem:[%s8294_s1 + $0x708] sm:$0xf]  ;;  %v4340_v0 = vor.u32 %v5085_v56, %v4339_v55 }
  0x2f   : > { %v5132_v10 = vld [vmem:[%s8294_s1 + $0x4bc] sm:$0xf0]  ;;  %v4525_v15 = vld [vmem:[%s8294_s1 + $0x4c0] sm:$0xf0]  ;;  %v5213_v59 = vld [vmem:[%s8294_s1 + $0x744] sm:$0xf0] }
  0x30   : > { %v3947_v16 = vld [vmem:[%s8294_s1] sm:$0xf]  ;;  %v4524_v20 = vor.u32 %v5132_v10, %v4523_v9  ;;  %v4980_v23 = vld [vmem:[%s8294_s1 + $0x4] sm:$0xf]  ;;  %v4528_v25 = vor.u32 %v5124_v14, %v4525_v15  ;;  %1885 = vmatpush.bf16.msra.mxu0 %v4012_v17  ;;  %1943 = vmatpush.bf16.msra.mxu2 %v4016_v21  ;;  %v5061_v60 = vld [vmem:[%s8294_s1 + $0x28c] sm:$0xf]  ;;  %v4852_v1 = vor.u32 %v5213_v59, %v4851_v57 }
  0x31   : > { %v4988_v18 = vld [vmem:[%s8294_s1 + $0x3c] sm:$0xf0]  ;;  %v3949_v24 = vld [vmem:[%s8294_s1 + $0x40] sm:$0xf0]  ;;  %v4277_v61 = vld [vmem:[%s8294_s1 + $0x2c8] sm:$0xf0] }
  0x32   : > { %v4459_v19 = vld [vmem:[%s8294_s1 + $0x400] sm:$0xf]  ;;  %v5108_v26 = vld [vmem:[%s8294_s1 + $0x404] sm:$0xf]  ;;  %v3948_v31 = vor.u32 %v4988_v18, %v3947_v16  ;;  %1914 = vmatpush.bf16.msra.mxu1 %v4524_v20  ;;  %v3952_v36 = vor.u32 %v4980_v23, %v3949_v24  ;;  %1972 = vmatpush.bf16.msra.mxu3 %v4528_v25  ;;  %v5189_v62 = vld [vmem:[%s8294_s1 + $0x68c] sm:$0xf]  ;;  %v4280_v2 = vor.u32 %v5061_v60, %v4277_v61 }
  0x33   : > { %v5116_v22 = vld [vmem:[%s8294_s1 + $0x43c] sm:$0xf0]  ;;  %v4461_v27 = vld [vmem:[%s8294_s1 + $0x440] sm:$0xf0]  ;;  %v4789_v63 = vld [vmem:[%s8294_s1 + $0x6c8] sm:$0xf0] }
  0x34   : > { %v3915_v32 = vld [vmem:[%s5655_s25] sm:$0xf]  ;;  %v4460_v35 = vor.u32 %v5116_v22, %v4459_v19  ;;  %v4972_v37 = vld [vmem:[%s5655_s25 + $0x4] sm:$0xf]  ;;  %v4464_v39 = vor.u32 %v5108_v26, %v4461_v27  ;;  %1886 = vmatpush.bf16.msra.mxu0 %v3948_v31  ;;  %1944 = vmatpush.bf16.msra.mxu2 %v3952_v36  ;;  %v4275_v3 = vld [vmem:[%s8294_s1 + $0x288] sm:$0xf]  ;;  %v4792_v6 = vor.u32 %v5189_v62, %v4789_v63 }
  0x35   : > { %v5682_v44 = vor.u32 %v4973_v33, %v3915_v32  ;;  %v5693_v49 = vor.u32 %v4972_v37, %v3917_v38  ;;  %v5069_v4 = vld [vmem:[%s8294_s1 + $0x2c4] sm:$0xf0]  ;;  %v5045_v8 = vld [vmem:[%s8294_s1 + $0x20c] sm:$0xf]  ;;  %v3923_v13 = vld [vmem:[%s5655_s25 + $0x10] sm:$0xf] }
  0x36   : > { %1915 = vmatpush.bf16.msra.mxu1 %v4460_v35  ;;  %1973 = vmatpush.bf16.msra.mxu3 %v4464_v39  ;;  %v4787_v5 = vld [vmem:[%s8294_s1 + $0x688] sm:$0xf]  ;;  %v4213_v9 = vld [vmem:[%s8294_s1 + $0x248] sm:$0xf0]  ;;  %v4276_v12 = vor.u32 %v5069_v4, %v4275_v3  ;;  %v4975_v23 = vld [vmem:[%s5655_s25 + $0x14] sm:$0xf0] }
  0x37   : > { %1887 = vmatmul.bf16.vlgmr.msra.gmra.mxu0 %v5682_v44  ;;  %1945 = vmatmul.bf16.vlgmr.msra.gmra.mxu2 %v5682_v44  ;;  %v5197_v7 = vld [vmem:[%s8294_s1 + $0x6c4] sm:$0xf0]  ;;  %v5173_v10 = vld [vmem:[%s8294_s1 + $0x60c] sm:$0xf]  ;;  %v4216_v15 = vor.u32 %v5045_v8, %v4213_v9  ;;  %v4974_v26 = vld [vmem:[%s5655_s25 + $0x14] sm:$0xf]  ;;  %v5790_v34 = vor.u32 %v4975_v23, %v3923_v13 }
  0x38   : > { %2053 = vmatpush.bf16.msrb.mxu2 %v4408_v40  ;;  %1995 = vmatpush.bf16.msrb.mxu0 %v4404_v52  ;;  %v4725_v11 = vld [vmem:[%s8294_s1 + $0x648] sm:$0xf0]  ;;  %v4788_v14 = vor.u32 %v5197_v7, %v4787_v5  ;;  %v4211_v16 = vld [vmem:[%s8294_s1 + $0x208] sm:$0xf]  ;;  %v3925_v27 = vld [vmem:[%s5655_s25 + $0x18] sm:$0xf0] }
  0x39   : > { %1916 = vmatmul.bf16.vlgmr.msra.gmra.mxu1 %v5693_v49  ;;  %1974 = vmatmul.bf16.vlgmr.msra.gmra.mxu3 %v5693_v49  ;;  %v5053_v17 = vld [vmem:[%s8294_s1 + $0x244] sm:$0xf0]  ;;  %v4728_v19 = vor.u32 %v5173_v10, %v4725_v11  ;;  %v5029_v21 = vld [vmem:[%s8294_s1 + $0x18c] sm:$0xf]  ;;  %v5801_v39 = vor.u32 %v4974_v26, %v3925_v27  ;;  %v5102_v26 = vld [vmem:[%s8294_s1 + $0x3cc] sm:$0xf0] }
  0x3a   : > { %2082 = vmatpush.bf16.msrb.mxu3 %v4920_v45  ;;  %2024 = vmatpush.bf16.msrb.mxu1 %v4916_v53  ;;  %v4723_v18 = vld [vmem:[%s8294_s1 + $0x608] sm:$0xf]  ;;  %v4149_v22 = vld [vmem:[%s8294_s1 + $0x1c8] sm:$0xf0]  ;;  %v4212_v28 = vor.u32 %v5053_v17, %v4211_v16 }
  0x3b   : > { %v5181_v20 = vld [vmem:[%s8294_s1 + $0x644] sm:$0xf0]  ;;  %v5157_v24 = vld [vmem:[%s8294_s1 + $0x58c] sm:$0xf]  ;;  %v4152_v30 = vor.u32 %v5029_v21, %v4149_v22  ;;  %v4413_v21 = vld [vmem:[%s8294_s1 + $0x3d0] sm:$0xf0] }
  0x3c   : > { %2054 = vmatpush.bf16.msrb.mxu2 %v4344_v54  ;;  %1996 = vmatpush.bf16.msrb.mxu0 %v4340_v0  ;;  %v4661_v25 = vld [vmem:[%s8294_s1 + $0x5c8] sm:$0xf0]  ;;  %v4724_v29 = vor.u32 %v5181_v20, %v4723_v18  ;;  %v4147_v31 = vld [vmem:[%s8294_s1 + $0x188] sm:$0xf]  ;;  %v5094_v20 = vld [vmem:[%s8294_s1 + $0x394] sm:$0xf] }
  0x3d   : > { %v5037_v32 = vld [vmem:[%s8294_s1 + $0x1c4] sm:$0xf0]  ;;  %v4664_v35 = vor.u32 %v5157_v24, %v4661_v25  ;;  %v5013_v37 = vld [vmem:[%s8294_s1 + $0x10c] sm:$0xf]  ;;  %v5222_v22 = vld [vmem:[%s8294_s1 + $0x794] sm:$0xf]  ;;  %v4416_v23 = vor.u32 %v5094_v20, %v4413_v21 }
  0x3e   : > { %2083 = vmatpush.bf16.msrb.mxu3 %v4856_v58  ;;  %2025 = vmatpush.bf16.msrb.mxu1 %v4852_v1  ;;  %v4659_v33 = vld [vmem:[%s8294_s1 + $0x588] sm:$0xf]  ;;  %v4085_v38 = vld [vmem:[%s8294_s1 + $0x148] sm:$0xf0]  ;;  %v4148_v42 = vor.u32 %v5037_v32, %v4147_v31  ;;  %v4925_v24 = vld [vmem:[%s8294_s1 + $0x7d0] sm:$0xf0] }
  0x3f   : > { %v5165_v36 = vld [vmem:[%s8294_s1 + $0x5c4] sm:$0xf0]  ;;  %v5141_v40 = vld [vmem:[%s8294_s1 + $0x50c] sm:$0xf]  ;;  %v4088_v45 = vor.u32 %v5013_v37, %v4085_v38  ;;  %v4411_v25 = vld [vmem:[%s8294_s1 + $0x390] sm:$0xf]  ;;  %v4928_v27 = vor.u32 %v5222_v22, %v4925_v24 }
  0x40   : > { %2055 = vmatpush.bf16.msrb.mxu2 %v4280_v2  ;;  %1997 = vmatpush.bf16.msrb.mxu0 %v4276_v12  ;;  %v4597_v41 = vld [vmem:[%s8294_s1 + $0x548] sm:$0xf0]  ;;  %v4660_v43 = vor.u32 %v5165_v36, %v4659_v33  ;;  %v4083_v46 = vld [vmem:[%s8294_s1 + $0x108] sm:$0xf]  ;;  %v3931_v12 = vld [vmem:[%s5655_s25 + $0x20] sm:$0xf] }
  0x41   : > { %v5021_v47 = vld [vmem:[%s8294_s1 + $0x144] sm:$0xf0]  ;;  %v4600_v48 = vor.u32 %v5141_v40, %v4597_v41  ;;  %v4997_v53 = vld [vmem:[%s8294_s1 + $0x8c] sm:$0xf]  ;;  %v5078_v31 = vld [vmem:[%s8294_s1 + $0x314] sm:$0xf] }
  0x42   : > { %2084 = vmatpush.bf16.msrb.mxu3 %v4792_v6  ;;  %2026 = vmatpush.bf16.msrb.mxu1 %v4788_v14  ;;  %v4084_v50 = vor.u32 %v5021_v47, %v4083_v46  ;;  %v4595_v51 = vld [vmem:[%s8294_s1 + $0x508] sm:$0xf]  ;;  %v4021_v55 = vld [vmem:[%s8294_s1 + $0xc8] sm:$0xf0]  ;;  %v4976_v14 = vld [vmem:[%s5655_s25 + $0x24] sm:$0xf] }
  0x43   : > { %v5149_v52 = vld [vmem:[%s8294_s1 + $0x544] sm:$0xf0]  ;;  %v5125_v56 = vld [vmem:[%s8294_s1 + $0x48c] sm:$0xf]  ;;  %v4024_v58 = vor.u32 %v4997_v53, %v4021_v55  ;;  %v4349_v33 = vld [vmem:[%s8294_s1 + $0x350] sm:$0xf0] }
  0x44   : > { %2056 = vmatpush.bf16.msrb.mxu2 %v4216_v15  ;;  %1998 = vmatpush.bf16.msrb.mxu0 %v4212_v28  ;;  %v4596_v54 = vor.u32 %v5149_v52, %v4595_v51  ;;  %v4533_v57 = vld [vmem:[%s8294_s1 + $0x4c8] sm:$0xf0]  ;;  %v4019_v60 = vld [vmem:[%s8294_s1 + $0x88] sm:$0xf]  ;;  %v4412_v28 = vor.u32 %v5102_v26, %v4411_v25  ;;  %v4861_v36 = vld [vmem:[%s8294_s1 + $0x750] sm:$0xf0]  ;;  %v4352_v37 = vor.u32 %v5078_v31, %v4349_v33 }
  0x45   : > { %v4536_v59 = vor.u32 %v5125_v56, %v4533_v57  ;;  %v5005_v61 = vld [vmem:[%s8294_s1 + $0xc4] sm:$0xf0]  ;;  %v4981_v0 = vld [vmem:[%s8294_s1 + $0xc] sm:$0xf]  ;;  %v4347_v40 = vld [vmem:[%s8294_s1 + $0x310] sm:$0xf] }
  0x46   : > { %2085 = vmatpush.bf16.msrb.mxu3 %v4728_v19  ;;  %2027 = vmatpush.bf16.msrb.mxu1 %v4724_v29  ;;  %v4531_v62 = vld [vmem:[%s8294_s1 + $0x488] sm:$0xf]  ;;  %v3957_v1 = vld [vmem:[%s8294_s1 + $0x48] sm:$0xf0]  ;;  %v4020_v2 = vor.u32 %v5005_v61, %v4019_v60  ;;  %v4923_v29 = vld [vmem:[%s8294_s1 + $0x790] sm:$0xf] }
  0x47   : > { %1892 = vmatmul.bf16.gmra.mxu0 %v5790_v34  ;;  %1950 = vmatmul.bf16.gmra.mxu2 %v5790_v34  ;;  %v5133_v63 = vld [vmem:[%s8294_s1 + $0x4c4] sm:$0xf0]  ;;  %v5109_v3 = vld [vmem:[%s8294_s1 + $0x40c] sm:$0xf]  ;;  %v3960_v6 = vor.u32 %v4981_v0, %v3957_v1  ;;  %v5086_v41 = vld [vmem:[%s8294_s1 + $0x34c] sm:$0xf0] }
  0x48   : > { %2057 = vmatpush.bf16.msrb.mxu2 %v4152_v30  ;;  %1999 = vmatpush.bf16.msrb.mxu0 %v4148_v42  ;;  %v4469_v4 = vld [vmem:[%s8294_s1 + $0x448] sm:$0xf0]  ;;  %v4532_v5 = vor.u32 %v5133_v63, %v4531_v62  ;;  %v3955_v7 = vld [vmem:[%s8294_s1 + $0x8] sm:$0xf]  ;;  %v5230_v30 = vld [vmem:[%s8294_s1 + $0x7cc] sm:$0xf0]  ;;  %v4348_v42 = vor.u32 %v5086_v41, %v4347_v40 }
  0x49   : > { %1921 = vmatmul.bf16.gmra.mxu1 %v5801_v39  ;;  %1979 = vmatmul.bf16.gmra.mxu3 %v5801_v39  ;;  %v4989_v8 = vld [vmem:[%s8294_s1 + $0x44] sm:$0xf0]  ;;  %v4472_v9 = vor.u32 %v5109_v3, %v4469_v4  ;;  %v3933_v15 = vld [vmem:[%s5655_s25 + $0x28] sm:$0xf0]  ;;  %v4924_v32 = vor.u32 %v5230_v30, %v4923_v29  ;;  %v4978_v46 = vld [vmem:[%s5655_s25 + $0x34] sm:$0xf] }
  0x4a   : > { %2086 = vmatpush.bf16.msrb.mxu3 %v4664_v35  ;;  %2028 = vmatpush.bf16.msrb.mxu1 %v4660_v43  ;;  %v4467_v10 = vld [vmem:[%s8294_s1 + $0x408] sm:$0xf]  ;;  %v3956_v16 = vor.u32 %v4989_v8, %v3955_v7  ;;  %v5879_v19 = vor.u32 %v4976_v14, %v3933_v15  ;;  %v5206_v35 = vld [vmem:[%s8294_s1 + $0x714] sm:$0xf]  ;;  %v3939_v43 = vld [vmem:[%s5655_s25 + $0x30] sm:$0xf] }
  0x4b   : > { %v5117_v11 = vld [vmem:[%s8294_s1 + $0x444] sm:$0xf0]  ;;  %v4864_v38 = vor.u32 %v5206_v35, %v4861_v36  ;;  %v3941_v47 = vld [vmem:[%s5655_s25 + $0x38] sm:$0xf0]  ;;  %v4859_v51 = vld [vmem:[%s8294_s1 + $0x710] sm:$0xf] }
  0x4c   : > { %2058 = vmatpush.bf16.msrb.mxu2 %v4088_v45  ;;  %2000 = vmatpush.bf16.msrb.mxu0 %v4084_v50  ;;  %v4977_v13 = vld [vmem:[%s5655_s25 + $0x24] sm:$0xf0]  ;;  %v4468_v17 = vor.u32 %v5117_v11, %v4467_v10  ;;  %v4979_v45 = vld [vmem:[%s5655_s25 + $0x34] sm:$0xf0]  ;;  %v5933_v50 = vor.u32 %v4978_v46, %v3941_v47  ;;  %v5214_v52 = vld [vmem:[%s8294_s1 + $0x74c] sm:$0xf0] }
  0x4d   : > { %v5877_v18 = vor.u32 %v4977_v13, %v3931_v12  ;;  %v5062_v53 = vld [vmem:[%s8294_s1 + $0x294] sm:$0xf]  ;;  %v4283_v60 = vld [vmem:[%s8294_s1 + $0x290] sm:$0xf] }
  0x4e   : > { %2087 = vmatpush.bf16.msrb.mxu3 %v4600_v48  ;;  %2029 = vmatpush.bf16.msrb.mxu1 %v4596_v54  ;;  %v5931_v48 = vor.u32 %v4979_v45, %v3939_v43  ;;  %v4860_v54 = vor.u32 %v5214_v52, %v4859_v51  ;;  %v4285_v55 = vld [vmem:[%s8294_s1 + $0x2d0] sm:$0xf0]  ;;  %v5070_v61 = vld [vmem:[%s8294_s1 + $0x2cc] sm:$0xf0] }
  0x4f   : > { %v5190_v56 = vld [vmem:[%s8294_s1 + $0x694] sm:$0xf]  ;;  %v4795_v62 = vld [vmem:[%s8294_s1 + $0x690] sm:$0xf]  ;;  %v4284_v63 = vor.u32 %v5070_v61, %v4283_v60 }
  0x50   : > { %2059 = vmatpush.bf16.msrb.mxu2 %v4024_v58  ;;  %2001 = vmatpush.bf16.msrb.mxu0 %v4020_v2  ;;  %v4797_v57 = vld [vmem:[%s8294_s1 + $0x6d0] sm:$0xf0]  ;;  %v4288_v58 = vor.u32 %v5062_v53, %v4285_v55  ;;  %v5198_v0 = vld [vmem:[%s8294_s1 + $0x6cc] sm:$0xf0] }
  0x51   : > { %v5046_v1 = vld [vmem:[%s8294_s1 + $0x214] sm:$0xf]  ;;  %v4796_v3 = vor.u32 %v5198_v0, %v4795_v62  ;;  %v4219_v7 = vld [vmem:[%s8294_s1 + $0x210] sm:$0xf] }
  0x52   : > { %2088 = vmatpush.bf16.msrb.mxu3 %v4536_v59  ;;  %2030 = vmatpush.bf16.msrb.mxu1 %v4532_v5  ;;  %v4800_v59 = vor.u32 %v5190_v56, %v4797_v57  ;;  %v4221_v2 = vld [vmem:[%s8294_s1 + $0x250] sm:$0xf0]  ;;  %v4731_v11 = vld [vmem:[%s8294_s1 + $0x610] sm:$0xf] }
  0x53   : > { %v4224_v4 = vor.u32 %v5046_v1, %v4221_v2  ;;  %v5174_v5 = vld [vmem:[%s8294_s1 + $0x614] sm:$0xf]  ;;  %v5182_v12 = vld [vmem:[%s8294_s1 + $0x64c] sm:$0xf0] }
  0x54   : > { %2060 = vmatpush.bf16.msrb.mxu2 %v3960_v6  ;;  %2002 = vmatpush.bf16.msrb.mxu0 %v3956_v16  ;;  %v4733_v6 = vld [vmem:[%s8294_s1 + $0x650] sm:$0xf0]  ;;  %v4732_v14 = vor.u32 %v5182_v12, %v4731_v11  ;;  %v4155_v22 = vld [vmem:[%s8294_s1 + $0x190] sm:$0xf]  ;;  %v4419_v12 = vld [vmem:[%s8294_s1 + $0x398] sm:$0xf] }
  0x55   : > { %v4736_v8 = vor.u32 %v5174_v5, %v4733_v6  ;;  %v5030_v13 = vld [vmem:[%s8294_s1 + $0x194] sm:$0xf]  ;;  %v4667_v24 = vld [vmem:[%s8294_s1 + $0x590] sm:$0xf]  ;;  %v5095_v6 = vld [vmem:[%s8294_s1 + $0x39c] sm:$0xf] }
  0x56   : > { %2089 = vmatpush.bf16.msrb.mxu3 %v4472_v9  ;;  %2031 = vmatpush.bf16.msrb.mxu1 %v4468_v17  ;;  %v5054_v9 = vld [vmem:[%s8294_s1 + $0x24c] sm:$0xf0]  ;;  %v4157_v15 = vld [vmem:[%s8294_s1 + $0x1d0] sm:$0xf0] }
  0x57   : > { %1897 = vmatmul.bf16.gmra.mxu0 %v5877_v18  ;;  %1955 = vmatmul.bf16.gmra.mxu2 %v5877_v18  ;;  %v4220_v10 = vor.u32 %v5054_v9, %v4219_v7  ;;  %v5158_v16 = vld [vmem:[%s8294_s1 + $0x594] sm:$0xf]  ;;  %v4160_v20 = vor.u32 %v5030_v13, %v4157_v15  ;;  %v5166_v26 = vld [vmem:[%s8294_s1 + $0x5cc] sm:$0xf0]  ;;  %v4421_v7 = vld [vmem:[%s8294_s1 + $0x3d8] sm:$0xf0] }
  0x58   : > { %2169 = vmatpush.bf16.msra.mxu2 %v4416_v23  ;;  %2111 = vmatpush.bf16.msra.mxu0 %v4412_v28  ;;  %v4669_v17 = vld [vmem:[%s8294_s1 + $0x5d0] sm:$0xf0]  ;;  %v5038_v23 = vld [vmem:[%s8294_s1 + $0x1cc] sm:$0xf0]  ;;  %v4668_v29 = vor.u32 %v5166_v26, %v4667_v24  ;;  %v4424_v9 = vor.u32 %v5095_v6, %v4421_v7  ;;  %v5103_v13 = vld [vmem:[%s8294_s1 + $0x3d4] sm:$0xf0] }
  0x59   : > { %1926 = vmatmul.bf16.gmra.mxu1 %v5879_v19  ;;  %1984 = vmatmul.bf16.gmra.mxu3 %v5879_v19  ;;  %v4672_v21 = vor.u32 %v5158_v16, %v4669_v17  ;;  %v4156_v25 = vor.u32 %v5038_v23, %v4155_v22  ;;  %v4093_v28 = vld [vmem:[%s8294_s1 + $0x150] sm:$0xf0]  ;;  %v4091_v33 = vld [vmem:[%s8294_s1 + $0x110] sm:$0xf]  ;;  %v4420_v15 = vor.u32 %v5103_v13, %v4419_v12  ;;  %v5231_v16 = vld [vmem:[%s8294_s1 + $0x7d4] sm:$0xf0] }
  0x5a   : > { %2198 = vmatpush.bf16.msra.mxu3 %v4928_v27  ;;  %2140 = vmatpush.bf16.msra.mxu1 %v4924_v32  ;;  %v5014_v27 = vld [vmem:[%s8294_s1 + $0x114] sm:$0xf]  ;;  %v5022_v36 = vld [vmem:[%s8294_s1 + $0x14c] sm:$0xf0]  ;;  %v5079_v17 = vld [vmem:[%s8294_s1 + $0x31c] sm:$0xf] }
  0x5b   : > { %v4096_v30 = vor.u32 %v5014_v27, %v4093_v28  ;;  %v5142_v31 = vld [vmem:[%s8294_s1 + $0x514] sm:$0xf]  ;;  %v5150_v40 = vld [vmem:[%s8294_s1 + $0x54c] sm:$0xf0]  ;;  %v5207_v23 = vld [vmem:[%s8294_s1 + $0x71c] sm:$0xf] }
  0x5c   : > { %2170 = vmatpush.bf16.msra.mxu2 %v4352_v37  ;;  %2112 = vmatpush.bf16.msra.mxu0 %v4348_v42  ;;  %v4605_v32 = vld [vmem:[%s8294_s1 + $0x550] sm:$0xf0]  ;;  %v4092_v37 = vor.u32 %v5022_v36, %v4091_v33  ;;  %v4027_v52 = vld [vmem:[%s8294_s1 + $0x90] sm:$0xf]  ;;  %v4869_v24 = vld [vmem:[%s8294_s1 + $0x758] sm:$0xf0] }
  0x5d   : > { %v4608_v35 = vor.u32 %v5142_v31, %v4605_v32  ;;  %v4998_v41 = vld [vmem:[%s8294_s1 + $0x94] sm:$0xf]  ;;  %v5006_v53 = vld [vmem:[%s8294_s1 + $0xcc] sm:$0xf0]  ;;  %v4355_v26 = vld [vmem:[%s8294_s1 + $0x318] sm:$0xf] }
  0x5e   : > { %2199 = vmatpush.bf16.msra.mxu3 %v4864_v38  ;;  %2141 = vmatpush.bf16.msra.mxu1 %v4860_v54  ;;  %v4603_v38 = vld [vmem:[%s8294_s1 + $0x510] sm:$0xf]  ;;  %v4029_v43 = vld [vmem:[%s8294_s1 + $0xd0] sm:$0xf0]  ;;  %v4028_v55 = vor.u32 %v5006_v53, %v4027_v52  ;;  %v5087_v27 = vld [vmem:[%s8294_s1 + $0x354] sm:$0xf0] }
  0x5f   : > { %v4604_v42 = vor.u32 %v5150_v40, %v4603_v38  ;;  %v5126_v45 = vld [vmem:[%s8294_s1 + $0x494] sm:$0xf]  ;;  %v4032_v47 = vor.u32 %v4998_v41, %v4029_v43  ;;  %v4539_v54 = vld [vmem:[%s8294_s1 + $0x490] sm:$0xf]  ;;  %v4867_v28 = vld [vmem:[%s8294_s1 + $0x718] sm:$0xf] }
  0x60   : > { %2171 = vmatpush.bf16.msra.mxu2 %v4288_v58  ;;  %2113 = vmatpush.bf16.msra.mxu0 %v4284_v63  ;;  %v4541_v46 = vld [vmem:[%s8294_s1 + $0x4d0] sm:$0xf0]  ;;  %v5134_v56 = vld [vmem:[%s8294_s1 + $0x4cc] sm:$0xf0]  ;;  %v5063_v31 = vld [vmem:[%s8294_s1 + $0x29c] sm:$0xf] }
  0x61   : > { %v4544_v51 = vor.u32 %v5126_v45, %v4541_v46  ;;  %v4982_v57 = vld [vmem:[%s8294_s1 + $0x14] sm:$0xf]  ;;  %v3963_v0 = vld [vmem:[%s8294_s1 + $0x10] sm:$0xf]  ;;  %v4293_v32 = vld [vmem:[%s8294_s1 + $0x2d8] sm:$0xf0] }
  0x62   : > { %2200 = vmatpush.bf16.msra.mxu3 %v4800_v59  ;;  %2142 = vmatpush.bf16.msra.mxu1 %v4796_v3  ;;  %v3965_v58 = vld [vmem:[%s8294_s1 + $0x50] sm:$0xf0]  ;;  %v4540_v59 = vor.u32 %v5134_v56, %v4539_v54  ;;  %v4990_v1 = vld [vmem:[%s8294_s1 + $0x4c] sm:$0xf0]  ;;  %v5191_v36 = vld [vmem:[%s8294_s1 + $0x69c] sm:$0xf] }
  0x63   : > { %v3968_v60 = vor.u32 %v4982_v57, %v3965_v58  ;;  %v5110_v61 = vld [vmem:[%s8294_s1 + $0x414] sm:$0xf]  ;;  %v4475_v2 = vld [vmem:[%s8294_s1 + $0x410] sm:$0xf]  ;;  %v3964_v3 = vor.u32 %v4990_v1, %v3963_v0  ;;  %v6168_v38 = vld [vmem:[%s8295_s2] sm:$0xff] }
  0x64   : > { %2172 = vmatpush.bf16.msra.mxu2 %v4224_v4  ;;  %2114 = vmatpush.bf16.msra.mxu0 %v4220_v10  ;;  %v4477_v62 = vld [vmem:[%s8294_s1 + $0x450] sm:$0xf0]  ;;  %v5118_v4 = vld [vmem:[%s8294_s1 + $0x44c] sm:$0xf0]  ;;  %v4933_v10 = vld [vmem:[%s8294_s1 + $0x7d8] sm:$0xf0] }
  0x65   : > { %v4480_v63 = vor.u32 %v5110_v61, %v4477_v62  ;;  %v4476_v5 = vor.u32 %v5118_v4, %v4475_v2  ;;  %v6171_v41 = vperm.slane %v6168_v38, 0  ;;  %v5071_v43 = vld [vmem:[%s8294_s1 + $0x2d4] sm:$0xf0]  ;;  %v5047_v52 = vld [vmem:[%s8294_s1 + $0x21c] sm:$0xf]  ;;  %v6202_v62 = vperm.slane %v6168_v38, 1 }
  0x66   : > { %2201 = vmatpush.bf16.msra.mxu3 %v4736_v8  ;;  %2143 = vmatpush.bf16.msra.mxu1 %v4732_v14  ;;  %v5223_v8 = vld [vmem:[%s8294_s1 + $0x79c] sm:$0xf]  ;;  %v4931_v14 = vld [vmem:[%s8294_s1 + $0x798] sm:$0xf] }
  0x67   : > { %1902 = vmatmul.bf16.gmra.mxu0 %v5931_v48  ;;  %1960 = vmatmul.bf16.gmra.mxu2 %v5931_v48  ;;  %v4936_v11 = vor.u32 %v5223_v8, %v4933_v10  ;;  %v4803_v45 = vld [vmem:[%s8294_s1 + $0x698] sm:$0xf]  ;;  %v4229_v53 = vld [vmem:[%s8294_s1 + $0x258] sm:$0xf0] }
  0x68   : > { %2173 = vmatpush.bf16.msra.mxu2 %v4160_v20  ;;  %2115 = vmatpush.bf16.msra.mxu0 %v4156_v25  ;;  %v4357_v20 = vld [vmem:[%s8294_s1 + $0x358] sm:$0xf0]  ;;  %v4872_v25 = vor.u32 %v5207_v23, %v4869_v24  ;;  %v4232_v57 = vor.u32 %v5047_v52, %v4229_v53  ;;  %v4227_v0 = vld [vmem:[%s8294_s1 + $0x218] sm:$0xf] }
  0x69   : > { %1931 = vmatmul.bf16.gmra.mxu1 %v5933_v50  ;;  %1989 = vmatmul.bf16.gmra.mxu3 %v5933_v50  ;;  %v4360_v22 = vor.u32 %v5079_v17, %v4357_v20  ;;  %v5175_v58 = vld [vmem:[%s8294_s1 + $0x61c] sm:$0xf]  ;;  %v5055_v1 = vld [vmem:[%s8294_s1 + $0x254] sm:$0xf0] }
  0x6a   : > { %2202 = vmatpush.bf16.msra.mxu3 %v4672_v21  ;;  %2144 = vmatpush.bf16.msra.mxu1 %v4668_v29  ;;  %v4932_v21 = vor.u32 %v5231_v16, %v4931_v14  ;;  %v4356_v29 = vor.u32 %v5087_v27, %v4355_v26  ;;  %v4739_v2 = vld [vmem:[%s8294_s1 + $0x618] sm:$0xf]  ;;  %v4228_v6 = vor.u32 %v5055_v1, %v4227_v0  ;;  %v5031_v8 = vld [vmem:[%s8294_s1 + $0x19c] sm:$0xf] }
  0x6b   : > { %v5183_v7 = vld [vmem:[%s8294_s1 + $0x654] sm:$0xf0]  ;;  %v5159_v14 = vld [vmem:[%s8294_s1 + $0x59c] sm:$0xf] }
  0x6c   : > { %2174 = vmatpush.bf16.msra.mxu2 %v4096_v30  ;;  %2116 = vmatpush.bf16.msra.mxu0 %v4092_v37  ;;  %v5215_v30 = vld [vmem:[%s8294_s1 + $0x754] sm:$0xf0]  ;;  %v4805_v37 = vld [vmem:[%s8294_s1 + $0x6d8] sm:$0xf0]  ;;  %v4740_v12 = vor.u32 %v5183_v7, %v4739_v2 }
  0x6d   : > { %v4868_v33 = vor.u32 %v5215_v30, %v4867_v28  ;;  %v4808_v40 = vor.u32 %v5191_v36, %v4805_v37  ;;  %v5039_v26 = vld [vmem:[%s8294_s1 + $0x1d4] sm:$0xf0] }
  0x6e   : > { %2203 = vmatpush.bf16.msra.mxu3 %v4608_v35  ;;  %2145 = vmatpush.bf16.msra.mxu1 %v4604_v42  ;;  %v4296_v35 = vor.u32 %v5063_v31, %v4293_v32  ;;  %v4291_v42 = vld [vmem:[%s8294_s1 + $0x298] sm:$0xf] }
  0x6f   : > { %v4675_v27 = vld [vmem:[%s8294_s1 + $0x598] sm:$0xf] }
  0x70   : > { %2175 = vmatpush.bf16.msra.mxu2 %v4032_v47  ;;  %2117 = vmatpush.bf16.msra.mxu0 %v4028_v55  ;;  %v4292_v47 = vor.u32 %v5071_v43, %v4291_v42  ;;  %v5167_v32 = vld [vmem:[%s8294_s1 + $0x5d4] sm:$0xf0]  ;;  %v5143_v43 = vld [vmem:[%s8294_s1 + $0x51c] sm:$0xf] }
  0x71   : > { %v5151_v2 = vld [vmem:[%s8294_s1 + $0x554] sm:$0xf0] }
  0x72   : > { %2204 = vmatpush.bf16.msra.mxu3 %v4544_v51  ;;  %2146 = vmatpush.bf16.msra.mxu1 %v4540_v59  ;;  %v5199_v51 = vld [vmem:[%s8294_s1 + $0x6d4] sm:$0xf0]  ;;  %v4741_v59 = vld [vmem:[%s8294_s1 + $0x658] sm:$0xf0] }
  0x73   : > { %v4804_v56 = vor.u32 %v5199_v51, %v4803_v45  ;;  %v4613_v45 = vld [vmem:[%s8294_s1 + $0x558] sm:$0xf0] }
  0x74   : > { %2176 = vmatpush.bf16.msra.mxu2 %v3968_v60  ;;  %2118 = vmatpush.bf16.msra.mxu0 %v3964_v3  ;;  %v4744_v60 = vor.u32 %v5175_v58, %v4741_v59  ;;  %v4099_v58 = vld [vmem:[%s8294_s1 + $0x118] sm:$0xf] }
  0x75   : > { %v5023_v59 = vld [vmem:[%s8294_s1 + $0x154] sm:$0xf0] }
  0x76   : > { %2205 = vmatpush.bf16.msra.mxu3 %v4480_v63  ;;  %2147 = vmatpush.bf16.msra.mxu1 %v4476_v5  ;;  %v4100_v1 = vor.u32 %v5023_v59, %v4099_v58 }
  0x77   : > { %2003 = vmatmul.bf16.vlgmr.msrb.gmra.mxu0 %v5682_v44  ;;  %2061 = vmatmul.bf16.vlgmr.msrb.gmra.mxu2 %v5682_v44 }
  0x78   : > { %2285 = vmatpush.bf16.msrb.mxu2 %v4424_v9  ;;  %2227 = vmatpush.bf16.msrb.mxu0 %v4420_v15  ;;  %v4165_v9 = vld [vmem:[%s8294_s1 + $0x1d8] sm:$0xf0] }
  0x79   : > { %2032 = vmatmul.bf16.vlgmr.msrb.gmra.mxu1 %v5693_v49  ;;  %2090 = vmatmul.bf16.vlgmr.msrb.gmra.mxu3 %v5693_v49  ;;  %v4168_v13 = vor.u32 %v5031_v8, %v4165_v9  ;;  %v4677_v15 = vld [vmem:[%s8294_s1 + $0x5d8] sm:$0xf0] }
  0x7a   : > { %2314 = vmatpush.bf16.msrb.mxu3 %v4936_v11  ;;  %2256 = vmatpush.bf16.msrb.mxu1 %v4932_v21  ;;  %v4680_v17 = vor.u32 %v5159_v14, %v4677_v15  ;;  %v5127_v9 = vld [vmem:[%s8294_s1 + $0x49c] sm:$0xf]  ;;  %v4035_v14 = vld [vmem:[%s8294_s1 + $0x98] sm:$0xf] }
  0x7b   : > { %v5007_v15 = vld [vmem:[%s8294_s1 + $0xd4] sm:$0xf0] }
  0x7c   : > { %2286 = vmatpush.bf16.msrb.mxu2 %v4360_v22  ;;  %2228 = vmatpush.bf16.msrb.mxu0 %v4356_v29 }
  0x7e   : > { %2315 = vmatpush.bf16.msrb.mxu3 %v4872_v25  ;;  %2257 = vmatpush.bf16.msrb.mxu1 %v4868_v33  ;;  %v4163_v25 = vld [vmem:[%s8294_s1 + $0x198] sm:$0xf]  ;;  %v5015_v33 = vld [vmem:[%s8294_s1 + $0x11c] sm:$0xf] }
  0x7f   : > { %v4164_v31 = vor.u32 %v5039_v26, %v4163_v25 }
  0x80   : > { %2287 = vmatpush.bf16.msrb.mxu2 %v4296_v35  ;;  %2229 = vmatpush.bf16.msrb.mxu0 %v4292_v47  ;;  %v4101_v35 = vld [vmem:[%s8294_s1 + $0x158] sm:$0xf0]  ;;  %v4616_v47 = vor.u32 %v5143_v43, %v4613_v45 }
  0x81   : > { %v4104_v42 = vor.u32 %v5015_v33, %v4101_v35  ;;  %v4485_v35 = vld [vmem:[%s8294_s1 + $0x458] sm:$0xf0] }
  0x82   : > { %2316 = vmatpush.bf16.msrb.mxu3 %v4808_v40  ;;  %2258 = vmatpush.bf16.msrb.mxu1 %v4804_v56  ;;  %v4676_v40 = vor.u32 %v5167_v32, %v4675_v27  ;;  %v4983_v27 = vld [vmem:[%s8294_s1 + $0x1c] sm:$0xf] }
  0x84   : > { %2288 = vmatpush.bf16.msrb.mxu2 %v4232_v57  ;;  %2230 = vmatpush.bf16.msrb.mxu0 %v4228_v6 }
  0x86   : > { %2317 = vmatpush.bf16.msrb.mxu3 %v4744_v60  ;;  %2259 = vmatpush.bf16.msrb.mxu1 %v4740_v12  ;;  %v4611_v60 = vld [vmem:[%s8294_s1 + $0x518] sm:$0xf] }
  0x87   : > { %2008 = vmatmul.bf16.gmra.mxu0 %v5790_v34  ;;  %2066 = vmatmul.bf16.gmra.mxu2 %v5790_v34  ;;  %v4612_v7 = vor.u32 %v5151_v2, %v4611_v60 }
  0x88   : > { %2289 = vmatpush.bf16.msrb.mxu2 %v4168_v13  ;;  %2231 = vmatpush.bf16.msrb.mxu0 %v4164_v31 }
  0x89   : > { %2037 = vmatmul.bf16.gmra.mxu1 %v5801_v39  ;;  %2095 = vmatmul.bf16.gmra.mxu3 %v5801_v39 }
  0x8a   : > { %2318 = vmatpush.bf16.msrb.mxu3 %v4680_v17  ;;  %2260 = vmatpush.bf16.msrb.mxu1 %v4676_v40 }
  0x8c   : > { %2290 = vmatpush.bf16.msrb.mxu2 %v4104_v42  ;;  %2232 = vmatpush.bf16.msrb.mxu0 %v4100_v1 }
  0x8e   : > { %2319 = vmatpush.bf16.msrb.mxu3 %v4616_v47  ;;  %2261 = vmatpush.bf16.msrb.mxu1 %v4612_v7  ;;  %v5119_v47 = vld [vmem:[%s8294_s1 + $0x454] sm:$0xf0] }
  0x97   : > { %2013 = vmatmul.bf16.gmra.mxu0 %v5877_v18  ;;  %2071 = vmatmul.bf16.gmra.mxu2 %v5877_v18 }
  0x99   : > { %2042 = vmatmul.bf16.gmra.mxu1 %v5879_v19  ;;  %2100 = vmatmul.bf16.gmra.mxu3 %v5879_v19 }
  0xa7   : > { %2018 = vmatmul.bf16.gmra.mxu0 %v5931_v48  ;;  %2076 = vmatmul.bf16.gmra.mxu2 %v5931_v48 }
  0xa9   : > { %2047 = vmatmul.bf16.gmra.mxu1 %v5933_v50  ;;  %2105 = vmatmul.bf16.gmra.mxu3 %v5933_v50 }
  0xb4   : > { %v1888_v46 = vpop.f32.mrf.mxu0 }
  0xb5   : > { %v1889_v54 = vadd.f32 %v1888_v46, %v6171_v41 }
  0xb6   : > { %v1917_v55 = vpop.f32.mrf.mxu1 }
  0xb7   : > { %v1918_v61 = vadd.f32 %v1917_v55, %v1889_v54  ;;  %2119 = vmatmul.bf16.vlgmr.msra.gmra.mxu0 %v5682_v44  ;;  %2177 = vmatmul.bf16.vlgmr.msra.gmra.mxu2 %v5682_v44 }
  0xb9   : > { %2148 = vmatmul.bf16.vlgmr.msra.gmra.mxu1 %v5693_v49  ;;  %2206 = vmatmul.bf16.vlgmr.msra.gmra.mxu3 %v5693_v49  ;;  %v2807_v21 = vmax.f32 %v1918_v61, 0.0 }
  0xba   : > { %v1946_v63 = vpop.f32.mrf.mxu2 }
  0xbb   : > { %v1947_v3 = vadd.f32 %v1946_v63, %v6202_v62 }
  0xbc   : > { %v1975_v4 = vpop.f32.mrf.mxu3  ;;  %v1890_v5 = vpop.f32.mrf.mxu0 }
  0xbd   : > { %v1891_v10 = vadd.f32 %v1890_v5, %v6171_v41  ;;  %v1976_v16 = vadd.f32 %v1975_v4, %v1947_v3  ;;  %v4999_v3 = vld [vmem:[%s8294_s1 + $0x9c] sm:$0xf] }
  0xbe   : > { %v1919_v11 = vpop.f32.mrf.mxu1  ;;  %v4037_v4 = vld [vmem:[%s8294_s1 + $0xd8] sm:$0xf0] }
  0xbf   : > { %v1920_v20 = vadd.f32 %v1919_v11, %v1891_v10  ;;  %v2808_v52 = vmax.f32 %v1976_v16, 0.0  ;;  %v4040_v8 = vor.u32 %v4999_v3, %v4037_v4  ;;  %v4549_v10 = vld [vmem:[%s8294_s1 + $0x4d8] sm:$0xf0]  ;;  %v4547_v16 = vld [vmem:[%s8294_s1 + $0x498] sm:$0xf] }
  0xc0   : > { %v4552_v12 = vor.u32 %v5127_v9, %v4549_v10 }
  0xc1   : > { %v2823_v22 = vmax.f32 %v1920_v20, 0.0  ;;  %2291 = vmatpush.bf16.msrb.mxu2 %v4040_v8  ;;  %v4036_v20 = vor.u32 %v5007_v15, %v4035_v14 }
  0xc2   : > { %v1948_v24 = vpop.f32.mrf.mxu2  ;;  %2320 = vmatpush.bf16.msrb.mxu3 %v4552_v12 }
  0xc3   : > { %v2937_v23 = vadd.f32 %v2823_v22, %v2807_v21  ;;  %v1949_v28 = vadd.f32 %v1948_v24, %v6202_v62  ;;  %v5135_v21 = vld [vmem:[%s8294_s1 + $0x4d4] sm:$0xf0]  ;;  %2233 = vmatpush.bf16.msrb.mxu0 %v4036_v20  ;;  %v5096_v20 = vld [vmem:[%s8294_s1 + $0x3a4] sm:$0xf] }
  0xc4   : > { %v1977_v29 = vpop.f32.mrf.mxu3  ;;  %v1893_v30 = vpop.f32.mrf.mxu0 }
  0xc5   : > { %v1894_v36 = vadd.f32 %v1893_v30, %v6171_v41  ;;  %v1978_v46 = vadd.f32 %v1977_v29, %v1949_v28  ;;  %v3973_v28 = vld [vmem:[%s8294_s1 + $0x58] sm:$0xf0] }
  0xc6   : > { %v1922_v37 = vpop.f32.mrf.mxu1  ;;  %v5111_v29 = vld [vmem:[%s8294_s1 + $0x41c] sm:$0xf]  ;;  %v3976_v33 = vor.u32 %v4983_v27, %v3973_v28  ;;  %v4427_v27 = vld [vmem:[%s8294_s1 + $0x3a0] sm:$0xf] }
  0xc7   : > { %v1923_v51 = vadd.f32 %v1922_v37, %v1894_v36  ;;  %2124 = vmatmul.bf16.gmra.mxu0 %v5790_v34  ;;  %v2824_v53 = vmax.f32 %v1978_v46, 0.0  ;;  %2182 = vmatmul.bf16.gmra.mxu2 %v5790_v34  ;;  %v3971_v36 = vld [vmem:[%s8294_s1 + $0x18] sm:$0xf]  ;;  %v4488_v43 = vor.u32 %v5111_v29, %v4485_v35  ;;  %v5104_v28 = vld [vmem:[%s8294_s1 + $0x3dc] sm:$0xf0] }
  0xc8   : > { %v4991_v37 = vld [vmem:[%s8294_s1 + $0x54] sm:$0xf0]  ;;  %2292 = vmatpush.bf16.msrb.mxu2 %v3976_v33  ;;  %v4428_v33 = vor.u32 %v5104_v28, %v4427_v27  ;;  %v4939_v35 = vld [vmem:[%s8294_s1 + $0x7a0] sm:$0xf] }
  0xc9   : > { %2153 = vmatmul.bf16.gmra.mxu1 %v5801_v39  ;;  %v2839_v54 = vmax.f32 %v1923_v51, 0.0  ;;  %2211 = vmatmul.bf16.gmra.mxu3 %v5801_v39  ;;  %v2950_v55 = vadd.f32 %v2824_v53, %v2808_v52  ;;  %v3972_v45 = vor.u32 %v4991_v37, %v3971_v36  ;;  %v4483_v46 = vld [vmem:[%s8294_s1 + $0x418] sm:$0xf]  ;;  %v5232_v36 = vld [vmem:[%s8294_s1 + $0x7dc] sm:$0xf0] }
  0xca   : > { %v1951_v57 = vpop.f32.mrf.mxu2  ;;  %v4484_v52 = vor.u32 %v5119_v47, %v4483_v46  ;;  %2321 = vmatpush.bf16.msrb.mxu3 %v4488_v43  ;;  %v5080_v37 = vld [vmem:[%s8294_s1 + $0x324] sm:$0xf]  ;;  %v4940_v43 = vor.u32 %v5232_v36, %v4939_v35  ;;  %v4235_v36 = vld [vmem:[%s8294_s1 + $0x220] sm:$0xf] }
  0xcb   : > { %v2938_v56 = vadd.f32 %v2937_v23, %v2839_v54  ;;  %v1952_v61 = vadd.f32 %v1951_v57, %v6202_v62  ;;  %v4548_v23 = vor.u32 %v5135_v21, %v4547_v16  ;;  %2234 = vmatpush.bf16.msrb.mxu0 %v3972_v45  ;;  %v4429_v21 = vld [vmem:[%s8294_s1 + $0x3e0] sm:$0xf0] }
  0xcc   : > { %v1980_v63 = vpop.f32.mrf.mxu3  ;;  %v1895_v0 = vpop.f32.mrf.mxu0  ;;  %v4365_v45 = vld [vmem:[%s8294_s1 + $0x360] sm:$0xf0] }
  0xcd   : > { %v1896_v5 = vadd.f32 %v1895_v0, %v6171_v41  ;;  %v1981_v11 = vadd.f32 %v1980_v63, %v1952_v61  ;;  %2262 = vmatpush.bf16.msrb.mxu1 %v4548_v23  ;;  %v5208_v46 = vld [vmem:[%s8294_s1 + $0x724] sm:$0xf] }
  0xce   : > { %v1924_v6 = vpop.f32.mrf.mxu1  ;;  %v4877_v47 = vld [vmem:[%s8294_s1 + $0x760] sm:$0xf0] }
  0xcf   : > { %v1925_v13 = vadd.f32 %v1924_v6, %v1896_v5  ;;  %v2840_v17 = vmax.f32 %v1981_v11, 0.0  ;;  %2343 = vmatpush.bf16.msra.mxu0 %v4428_v33 }
  0xd1   : > { %v2855_v22 = vmax.f32 %v1925_v13, 0.0  ;;  %v2951_v24 = vadd.f32 %v2950_v55, %v2840_v17  ;;  %2263 = vmatpush.bf16.msrb.mxu1 %v4484_v52  ;;  %v4368_v52 = vor.u32 %v5080_v37, %v4365_v45  ;;  %v5056_v37 = vld [vmem:[%s8294_s1 + $0x25c] sm:$0xf0] }
  0xd2   : > { %v1953_v26 = vpop.f32.mrf.mxu2 }
  0xd3   : > { %v2939_v25 = vadd.f32 %v2938_v56, %v2855_v22  ;;  %v1954_v30 = vadd.f32 %v1953_v26, %v6202_v62  ;;  %v5224_v22 = vld [vmem:[%s8294_s1 + $0x7a4] sm:$0xf] }
  0xd4   : > { %v1982_v31 = vpop.f32.mrf.mxu3  ;;  %v1898_v32 = vpop.f32.mrf.mxu0  ;;  %v4941_v26 = vld [vmem:[%s8294_s1 + $0x7e0] sm:$0xf0] }
  0xd5   : > { %v1899_v40 = vadd.f32 %v1898_v32, %v6171_v41  ;;  %v1983_v51 = vadd.f32 %v1982_v31, %v1954_v30  ;;  %v4944_v32 = vor.u32 %v5224_v22, %v4941_v26  ;;  %2372 = vmatpush.bf16.msra.mxu1 %v4940_v43  ;;  %v4749_v26 = vld [vmem:[%s8294_s1 + $0x660] sm:$0xf0] }
  0xd6   : > { %v1927_v42 = vpop.f32.mrf.mxu1 }
  0xd7   : > { %v1928_v53 = vadd.f32 %v1927_v42, %v1899_v40  ;;  %2129 = vmatmul.bf16.gmra.mxu0 %v5877_v18  ;;  %v2856_v54 = vmax.f32 %v1983_v51, 0.0  ;;  %2187 = vmatmul.bf16.gmra.mxu2 %v5877_v18 }
  0xd8   : > { %2430 = vmatpush.bf16.msra.mxu3 %v4944_v32  ;;  %v6432_v32 = vperm.slane %v6168_v38, 3 }
  0xd9   : > { %2158 = vmatmul.bf16.gmra.mxu1 %v5879_v19  ;;  %v2871_v55 = vmax.f32 %v1928_v53, 0.0  ;;  %2216 = vmatmul.bf16.gmra.mxu3 %v5879_v19  ;;  %v2952_v56 = vadd.f32 %v2951_v24, %v2856_v54  ;;  %v4363_v53 = vld [vmem:[%s8294_s1 + $0x320] sm:$0xf] }
  0xda   : > { %v1956_v58 = vpop.f32.mrf.mxu2  ;;  %v5088_v54 = vld [vmem:[%s8294_s1 + $0x35c] sm:$0xf0] }
  0xdb   : > { %v2940_v57 = vadd.f32 %v2939_v25, %v2871_v55  ;;  %v1957_v59 = vadd.f32 %v1956_v58, %v6202_v62  ;;  %v4432_v25 = vor.u32 %v5096_v20, %v4429_v21  ;;  %v4875_v55 = vld [vmem:[%s8294_s1 + $0x720] sm:$0xf]  ;;  %v4237_v20 = vld [vmem:[%s8294_s1 + $0x260] sm:$0xf0] }
  0xdc   : > { %v1985_v60 = vpop.f32.mrf.mxu3  ;;  %v1900_v61 = vpop.f32.mrf.mxu0  ;;  %v5216_v58 = vld [vmem:[%s8294_s1 + $0x75c] sm:$0xf0] }
  0xdd   : > { %v1901_v63 = vadd.f32 %v1900_v61, %v6171_v41  ;;  %v1986_v1 = vadd.f32 %v1985_v60, %v1957_v59  ;;  %2401 = vmatpush.bf16.msra.mxu2 %v4432_v25  ;;  %v5064_v59 = vld [vmem:[%s8294_s1 + $0x2a4] sm:$0xf] }
  0xde   : > { %v1929_v0 = vpop.f32.mrf.mxu1  ;;  %v4301_v60 = vld [vmem:[%s8294_s1 + $0x2e0] sm:$0xf0] }
  0xdf   : > { %v1930_v2 = vadd.f32 %v1929_v0, %v1901_v63  ;;  %v2872_v3 = vmax.f32 %v1986_v1, 0.0  ;;  %v4876_v63 = vor.u32 %v5216_v58, %v4875_v55  ;;  %v5192_v0 = vld [vmem:[%s8294_s1 + $0x6a4] sm:$0xf] }
  0xe0   : > { %v4813_v1 = vld [vmem:[%s8294_s1 + $0x6e0] sm:$0xf0] }
  0xe1   : > { %v2887_v4 = vmax.f32 %v1930_v2, 0.0  ;;  %v2953_v5 = vadd.f32 %v2952_v56, %v2872_v3  ;;  %v6400_v3 = vperm.slane %v6168_v38, 2  ;;  %2402 = vmatpush.bf16.msra.mxu2 %v4368_v52  ;;  %2373 = vmatpush.bf16.msra.mxu1 %v4876_v63  ;;  %v5176_v25 = vld [vmem:[%s8294_s1 + $0x624] sm:$0xf]  ;;  %v5184_v52 = vld [vmem:[%s8294_s1 + $0x65c] sm:$0xf0] }
  0xe2   : > { %v1958_v7 = vpop.f32.mrf.mxu2  ;;  %v4752_v28 = vor.u32 %v5176_v25, %v4749_v26  ;;  %v5144_v25 = vld [vmem:[%s8294_s1 + $0x524] sm:$0xf] }
  0xe3   : > { %v2941_v6 = vadd.f32 %v2940_v57, %v2887_v4  ;;  %v1959_v8 = vadd.f32 %v1958_v7, %v6202_v62  ;;  %v4364_v57 = vor.u32 %v5088_v54, %v4363_v53  ;;  %v4304_v4 = vor.u32 %v5064_v59, %v4301_v60  ;;  %v4621_v26 = vld [vmem:[%s8294_s1 + $0x560] sm:$0xf0] }
  0xe4   : > { %v1987_v9 = vpop.f32.mrf.mxu3  ;;  %v1903_v10 = vpop.f32.mrf.mxu0 }
  0xe5   : > { %v1904_v11 = vadd.f32 %v1903_v10, %v6171_v41  ;;  %v1988_v13 = vadd.f32 %v1987_v9, %v1959_v8  ;;  %2344 = vmatpush.bf16.msra.mxu0 %v4364_v57  ;;  %v4299_v9 = vld [vmem:[%s8294_s1 + $0x2a0] sm:$0xf]  ;;  %2403 = vmatpush.bf16.msra.mxu2 %v4304_v4  ;;  %v5160_v57 = vld [vmem:[%s8294_s1 + $0x5a4] sm:$0xf] }
  0xe6   : > { %v1932_v12 = vpop.f32.mrf.mxu1  ;;  %v5072_v10 = vld [vmem:[%s8294_s1 + $0x2dc] sm:$0xf0] }
  0xe7   : > { %v1933_v14 = vadd.f32 %v1932_v12, %v1904_v11  ;;  %2134 = vmatmul.bf16.gmra.mxu0 %v5931_v48  ;;  %v2888_v15 = vmax.f32 %v1988_v13, 0.0  ;;  %2192 = vmatmul.bf16.gmra.mxu2 %v5931_v48  ;;  %v4811_v11 = vld [vmem:[%s8294_s1 + $0x6a0] sm:$0xf] }
  0xe9   : > { %2163 = vmatmul.bf16.gmra.mxu1 %v5933_v50  ;;  %v2903_v16 = vmax.f32 %v1933_v14, 0.0  ;;  %2221 = vmatmul.bf16.gmra.mxu3 %v5933_v50  ;;  %v2954_v17 = vadd.f32 %v2953_v5, %v2888_v15  ;;  %v4300_v15 = vor.u32 %v5072_v10, %v4299_v9  ;;  %v4171_v9 = vld [vmem:[%s8294_s1 + $0x1a0] sm:$0xf] }
  0xea   : > { %v1961_v24 = vpop.f32.mrf.mxu2  ;;  %v5040_v10 = vld [vmem:[%s8294_s1 + $0x1dc] sm:$0xf0] }
  0xeb   : > { %v2942_v23 = vadd.f32 %v2941_v6, %v2903_v16  ;;  %v1962_v29 = vadd.f32 %v1961_v24, %v6202_v62  ;;  %v4816_v6 = vor.u32 %v5192_v0, %v4813_v1  ;;  %v5200_v16 = vld [vmem:[%s8294_s1 + $0x6dc] sm:$0xf0]  ;;  %2345 = vmatpush.bf16.msra.mxu0 %v4300_v15 }
  0xec   : > { %v1990_v30 = vpop.f32.mrf.mxu3  ;;  %v1905_v31 = vpop.f32.mrf.mxu0 }
  0xed   : > { %v1906_v40 = vadd.f32 %v1905_v31, %v6171_v41  ;;  %v1991_v51 = vadd.f32 %v1990_v30, %v1962_v29  ;;  %v4880_v41 = vor.u32 %v5208_v46, %v4877_v47 }
  0xee   : > { %v1934_v42 = vpop.f32.mrf.mxu1 }
  0xef   : > { %v1935_v56 = vadd.f32 %v1934_v42, %v1906_v40  ;;  %v2904_v61 = vmax.f32 %v1991_v51, 0.0  ;;  %2431 = vmatpush.bf16.msra.mxu3 %v4880_v41  ;;  %v4747_v40 = vld [vmem:[%s8294_s1 + $0x620] sm:$0xf]  ;;  %v4236_v51 = vor.u32 %v5056_v37, %v4235_v36  ;;  %v5032_v41 = vld [vmem:[%s8294_s1 + $0x1a4] sm:$0xf] }
  0xf0   : > { %v4748_v55 = vor.u32 %v5184_v52, %v4747_v40  ;;  %v4619_v52 = vld [vmem:[%s8294_s1 + $0x520] sm:$0xf] }
  0xf1   : > { %v2919_v2 = vmax.f32 %v1935_v56, 0.0  ;;  %v2955_v5 = vadd.f32 %v2954_v17, %v2904_v61  ;;  %v5048_v17 = vld [vmem:[%s8294_s1 + $0x224] sm:$0xf]  ;;  %2346 = vmatpush.bf16.msra.mxu0 %v4236_v51  ;;  %v5024_v51 = vld [vmem:[%s8294_s1 + $0x15c] sm:$0xf0] }
  0xf2   : > { %v1963_v8 = vpop.f32.mrf.mxu2  ;;  %v4240_v24 = vor.u32 %v5048_v17, %v4237_v20  ;;  %v4173_v56 = vld [vmem:[%s8294_s1 + $0x1e0] sm:$0xf0]  ;;  %v4172_v17 = vor.u32 %v5040_v10, %v4171_v9  ;;  %v5168_v20 = vld [vmem:[%s8294_s1 + $0x5dc] sm:$0xf0] }
  0xf3   : > { %v2943_v7 = vadd.f32 %v2942_v23, %v2919_v2  ;;  %v1964_v12 = vadd.f32 %v1963_v8, %v6202_v62  ;;  %v4812_v62 = vor.u32 %v5200_v16, %v4811_v11  ;;  %2432 = vmatpush.bf16.msra.mxu3 %v4816_v6  ;;  %v4176_v60 = vor.u32 %v5032_v41, %v4173_v56  ;;  %v4685_v61 = vld [vmem:[%s8294_s1 + $0x5e0] sm:$0xf0]  ;;  %v4683_v11 = vld [vmem:[%s8294_s1 + $0x5a0] sm:$0xf] }
  0xf4   : > { %v1992_v13 = vpop.f32.mrf.mxu3  ;;  %v2004_v14 = vpop.f32.mrf.mxu0  ;;  %2404 = vmatpush.bf16.msra.mxu2 %v4240_v24  ;;  %v4688_v0 = vor.u32 %v5160_v57, %v4685_v61  ;;  %v4109_v24 = vld [vmem:[%s8294_s1 + $0x160] sm:$0xf0]  ;;  %v5152_v56 = vld [vmem:[%s8294_s1 + $0x55c] sm:$0xf0] }
  0xf5   : > { %v2944_v21 = vrot.slane %v2943_v7, 4  ;;  %v2005_v22 = vadd.f32 %v2004_v14, %v6400_v3  ;;  %v1993_v27 = vadd.f32 %v1992_v13, %v1964_v12  ;;  %2374 = vmatpush.bf16.msra.mxu1 %v4812_v62  ;;  %v4684_v62 = vor.u32 %v5168_v20, %v4683_v11  ;;  %2347 = vmatpush.bf16.msra.mxu0 %v4172_v17  ;;  %v5000_v57 = vld [vmem:[%s8294_s1 + $0xa4] sm:$0xf]  ;;  %v5136_v11 = vld [vmem:[%s8294_s1 + $0x4dc] sm:$0xf0] }
  0xf6   : > { %v2033_v23 = vpop.f32.mrf.mxu1  ;;  %v4620_v61 = vor.u32 %v5152_v56, %v4619_v52  ;;  %v4984_v17 = vld [vmem:[%s8294_s1 + $0x24] sm:$0xf] }
  0xf7   : > { %v2034_v29 = vadd.f32 %v2033_v23, %v2005_v22  ;;  %2235 = vmatmul.bf16.vlgmr.msrb.gmra.mxu0 %v5682_v44  ;;  %v2945_v30 = vadd.f32 %v2944_v21, %v2943_v7  ;;  %v2920_v31 = vmax.f32 %v1993_v27, 0.0  ;;  %2293 = vmatmul.bf16.vlgmr.msrb.gmra.mxu2 %v5682_v44  ;;  %v5016_v21 = vld [vmem:[%s8294_s1 + $0x124] sm:$0xf] }
  0xf8   : > { %2433 = vmatpush.bf16.msra.mxu3 %v4752_v28  ;;  %2405 = vmatpush.bf16.msra.mxu2 %v4176_v60  ;;  %v3981_v20 = vld [vmem:[%s8294_s1 + $0x60] sm:$0xf0] }
  0xf9   : > { %2264 = vmatmul.bf16.vlgmr.msrb.gmra.mxu1 %v5693_v49  ;;  %2322 = vmatmul.bf16.vlgmr.msrb.gmra.mxu3 %v5693_v49  ;;  %v2956_v33 = vadd.f32 %v2955_v5, %v2920_v31  ;;  %v2946_v42 = vrot.slane %v2945_v30, 2  ;;  %v2809_v4 = vmax.f32 %v2034_v29, 0.0  ;;  %v4112_v29 = vor.u32 %v5016_v21, %v4109_v24  ;;  %v5112_v21 = vld [vmem:[%s8294_s1 + $0x424] sm:$0xf] }
  0xfa   : > { %v2062_v35 = vpop.f32.mrf.mxu2  ;;  %2375 = vmatpush.bf16.msra.mxu1 %v4748_v55  ;;  %v3984_v24 = vor.u32 %v4984_v17, %v3981_v20 }
  0xfb   : > { %v2957_v43 = vrot.slane %v2956_v33, 4  ;;  %v2063_v45 = vadd.f32 %v2062_v35, %v6432_v32  ;;  %v2947_v1 = vadd.f32 %v2946_v42, %v2945_v30  ;;  %v4624_v30 = vor.u32 %v5144_v25, %v4621_v26  ;;  %v4493_v25 = vld [vmem:[%s8294_s1 + $0x460] sm:$0xf0]  ;;  %v3979_v26 = vld [vmem:[%s8294_s1 + $0x20] sm:$0xf] }
  0xfc   : > { %v2091_v46 = vpop.f32.mrf.mxu3  ;;  %v2006_v47 = vpop.f32.mrf.mxu0  ;;  %2434 = vmatpush.bf16.msra.mxu3 %v4688_v0  ;;  %2406 = vmatpush.bf16.msra.mxu2 %v4112_v29  ;;  %v5128_v0 = vld [vmem:[%s8294_s1 + $0x4a4] sm:$0xf] }
  0xfd   : > { %v2007_v53 = vadd.f32 %v2006_v47, %v6400_v3  ;;  %v2958_v58 = vadd.f32 %v2957_v43, %v2956_v33  ;;  %v2092_v59 = vadd.f32 %v2091_v46, %v2063_v45  ;;  %v2948_v12 = vrot.slane %v2947_v1, 1  ;;  %v4107_v47 = vld [vmem:[%s8294_s1 + $0x120] sm:$0xf] }
  0xfe   : > { %v2035_v54 = vpop.f32.mrf.mxu1  ;;  %2376 = vmatpush.bf16.msra.mxu1 %v4684_v62  ;;  %v4108_v55 = vor.u32 %v5024_v51, %v4107_v47 }
  0xff   : > { %v2036_v63 = vadd.f32 %v2035_v54, %v2007_v53  ;;  %v2959_v2 = vrot.slane %v2958_v58, 2  ;;  %v2949_v33 = vadd.f32 %v2948_v12, %v2947_v1  ;;  %v2810_v36 = vmax.f32 %v2092_v59, 0.0  ;;  %v4557_v1 = vld [vmem:[%s8294_s1 + $0x4e0] sm:$0xf0] }
 0x100   : > { %2435 = vmatpush.bf16.msra.mxu3 %v4624_v30  ;;  %2348 = vmatpush.bf16.msra.mxu0 %v4108_v55  ;;  %v4496_v30 = vor.u32 %v5112_v21, %v4493_v25 }
 0x101   : > { %v2825_v5 = vmax.f32 %v2036_v63, 0.0  ;;  %v2960_v6 = vadd.f32 %v2959_v2, %v2958_v58  ;;  %v4045_v58 = vld [vmem:[%s8294_s1 + $0xe0] sm:$0xf0] }
 0x102   : > { %v2064_v8 = vpop.f32.mrf.mxu2  ;;  %v4048_v63 = vor.u32 %v5000_v57, %v4045_v58  ;;  %2377 = vmatpush.bf16.msra.mxu1 %v4620_v61 }
 0x103   : > { %v2963_v7 = vadd.f32 %v2825_v5, %v2809_v4  ;;  %v2961_v13 = vrot.slane %v2960_v6, 1  ;;  %v2065_v14 = vadd.f32 %v2064_v8, %v6432_v32  ;;  %v4560_v4 = vor.u32 %v5128_v0, %v4557_v1  ;;  %v4555_v8 = vld [vmem:[%s8294_s1 + $0x4a0] sm:$0xf] }
 0x104   : > { %v2093_v15 = vpop.f32.mrf.mxu3  ;;  %v2009_v16 = vpop.f32.mrf.mxu0  ;;  %2407 = vmatpush.bf16.msra.mxu2 %v4048_v63 }
 0x105   : > { %v2010_v22 = vadd.f32 %v2009_v16, %v6400_v3  ;;  %v2962_v27 = vadd.f32 %v2961_v13, %v2960_v6  ;;  %v2094_v28 = vadd.f32 %v2093_v15, %v2065_v14  ;;  %v4043_v6 = vld [vmem:[%s8294_s1 + $0xa0] sm:$0xf]  ;;  %2436 = vmatpush.bf16.msra.mxu3 %v4560_v4  ;;  %v4556_v13 = vor.u32 %v5136_v11, %v4555_v8 }
 0x106   : > { %v2038_v23 = vpop.f32.mrf.mxu1 }
 0x107   : > { %v2039_v31 = vadd.f32 %v2038_v23, %v2010_v22  ;;  %2240 = vmatmul.bf16.gmra.mxu0 %v5790_v34  ;;  %v3161_v35 = vrot.slane %v2962_v27, 7  ;;  %v2826_v37 = vmax.f32 %v2094_v28, 0.0  ;;  %2298 = vmatmul.bf16.gmra.mxu2 %v5790_v34  ;;  %v4992_v27 = vld [vmem:[%s8294_s1 + $0x5c] sm:$0xf0] }
 0x108   : > { %2378 = vmatpush.bf16.msra.mxu1 %v4556_v13  ;;  %2408 = vmatpush.bf16.msra.mxu2 %v3984_v24  ;;  %v5097_v13 = vld [vmem:[%s8294_s1 + $0x3ac] sm:$0xf] }
 0x109   : > { %2269 = vmatmul.bf16.gmra.mxu1 %v5801_v39  ;;  %v2841_v40 = vmax.f32 %v2039_v31, 0.0  ;;  %2327 = vmatmul.bf16.gmra.mxu3 %v5801_v39  ;;  %v6492_v42 = vsel %vm3175_vm0, %v2949_v33, %v3161_v35  ;;  %v2976_v43 = vadd.f32 %v2826_v37, %v2810_v36  ;;  %v3980_v31 = vor.u32 %v4992_v27, %v3979_v26  ;;  %v4491_v33 = vld [vmem:[%s8294_s1 + $0x420] sm:$0xf] }
 0x10a   : > { %v2067_v46 = vpop.f32.mrf.mxu2  ;;  %v5120_v35 = vld [vmem:[%s8294_s1 + $0x45c] sm:$0xf0]  ;;  %2437 = vmatpush.bf16.msra.mxu3 %v4496_v30  ;;  %v5081_v30 = vld [vmem:[%s8294_s1 + $0x32c] sm:$0xf] }
 0x10b   : > { %v2964_v45 = vadd.f32 %v2963_v7, %v2841_v40  ;;  %v2068_v41 = vadd.f32 %v2067_v46, %v6432_v32  ;;  %v5008_v7 = vld [vmem:[%s8294_s1 + $0xdc] sm:$0xf0]  ;;  %v4492_v37 = vor.u32 %v5120_v35, %v4491_v33  ;;  %v5209_v35 = vld [vmem:[%s8294_s1 + $0x72c] sm:$0xf] }
 0x10c   : > { %v2096_v53 = vpop.f32.mrf.mxu3  ;;  %v2011_v54 = vpop.f32.mrf.mxu0  ;;  %v4044_v10 = vor.u32 %v5008_v7, %v4043_v6 }
 0x10d   : > { %v2012_v59 = vadd.f32 %v2011_v54, %v6400_v3  ;;  %v2097_v2 = vadd.f32 %v2096_v53, %v2068_v41  ;;  %2379 = vmatpush.bf16.msra.mxu1 %v4492_v37 }
 0x10e   : > { %v2040_v60 = vpop.f32.mrf.mxu1  ;;  %2349 = vmatpush.bf16.msra.mxu0 %v4044_v10 }
 0x10f   : > { %v2041_v5 = vadd.f32 %v2040_v60, %v2012_v59  ;;  %v2842_v9 = vmax.f32 %v2097_v2, 0.0 }
 0x111   : > { %v2857_v12 = vmax.f32 %v2041_v5, 0.0  ;;  %v2977_v14 = vadd.f32 %v2976_v43, %v2842_v9 }
 0x112   : > { %v2069_v16 = vpop.f32.mrf.mxu2  ;;  %2350 = vmatpush.bf16.msra.mxu0 %v3980_v31 }
 0x113   : > { %v2965_v15 = vadd.f32 %v2964_v45, %v2857_v12  ;;  %v2070_v22 = vadd.f32 %v2069_v16, %v6432_v32 }
 0x114   : > { %v2098_v23 = vpop.f32.mrf.mxu3  ;;  %v2014_v62 = vpop.f32.mrf.mxu0 }
 0x115   : > { %v2015_v28 = vadd.f32 %v2014_v62, %v6400_v3  ;;  %v2099_v36 = vadd.f32 %v2098_v23, %v2070_v22  ;;  %v4949_v22 = vld [vmem:[%s8294_s1 + $0x7e8] sm:$0xf0]  ;;  %v4435_v23 = vld [vmem:[%s8294_s1 + $0x3a8] sm:$0xf] }
 0x116   : > { %v2043_v29 = vpop.f32.mrf.mxu1  ;;  %v5105_v62 = vld [vmem:[%s8294_s1 + $0x3e4] sm:$0xf0] }
 0x117   : > { %v2044_v40 = vadd.f32 %v2043_v29, %v2015_v28  ;;  %2245 = vmatmul.bf16.gmra.mxu0 %v5877_v18  ;;  %v2858_v43 = vmax.f32 %v2099_v36, 0.0  ;;  %2303 = vmatmul.bf16.gmra.mxu2 %v5877_v18  ;;  %v4436_v27 = vor.u32 %v5105_v62, %v4435_v23  ;;  %v4947_v28 = vld [vmem:[%s8294_s1 + $0x7a8] sm:$0xf]  ;;  %v4885_v36 = vld [vmem:[%s8294_s1 + $0x768] sm:$0xf0] }
 0x118   : > { %v5233_v29 = vld [vmem:[%s8294_s1 + $0x7e4] sm:$0xf0] }
 0x119   : > { %2274 = vmatmul.bf16.gmra.mxu1 %v5879_v19  ;;  %v2873_v45 = vmax.f32 %v2044_v40, 0.0  ;;  %2332 = vmatmul.bf16.gmra.mxu3 %v5879_v19  ;;  %v2978_v46 = vadd.f32 %v2977_v14, %v2858_v43  ;;  %v4437_v14 = vld [vmem:[%s8294_s1 + $0x3e8] sm:$0xf0]  ;;  %v4948_v33 = vor.u32 %v5233_v29, %v4947_v28  ;;  %v4888_v43 = vor.u32 %v5209_v35, %v4885_v36  ;;  %v4243_v29 = vld [vmem:[%s8294_s1 + $0x228] sm:$0xf] }
 0x11a   : > { %v2072_v51 = vpop.f32.mrf.mxu2  ;;  %v4440_v21 = vor.u32 %v5097_v13, %v4437_v14  ;;  %2459 = vmatpush.bf16.msrb.mxu0 %v4436_v27  ;;  %v5177_v14 = vld [vmem:[%s8294_s1 + $0x62c] sm:$0xf] }
 0x11b   : > { %v2966_v47 = vadd.f32 %v2965_v15, %v2873_v45  ;;  %v2073_v52 = vadd.f32 %v2072_v51, %v6432_v32  ;;  %v5225_v15 = vld [vmem:[%s8294_s1 + $0x7ac] sm:$0xf]  ;;  %v4371_v45 = vld [vmem:[%s8294_s1 + $0x328] sm:$0xf]  ;;  %2488 = vmatpush.bf16.msrb.mxu1 %v4948_v33 }
 0x11c   : > { %v2101_v41 = vpop.f32.mrf.mxu3  ;;  %v2016_v53 = vpop.f32.mrf.mxu0  ;;  %v4952_v26 = vor.u32 %v5225_v15, %v4949_v22  ;;  %2517 = vmatpush.bf16.msrb.mxu2 %v4440_v21  ;;  %v4757_v15 = vld [vmem:[%s8294_s1 + $0x668] sm:$0xf0] }
 0x11d   : > { %v2017_v54 = vadd.f32 %v2016_v53, %v6400_v3  ;;  %v2102_v56 = vadd.f32 %v2101_v41, %v2073_v52  ;;  %v5217_v41 = vld [vmem:[%s8294_s1 + $0x764] sm:$0xf0]  ;;  %v5065_v53 = vld [vmem:[%s8294_s1 + $0x2ac] sm:$0xf]  ;;  %v4760_v23 = vor.u32 %v5177_v14, %v4757_v15 }
 0x11e   : > { %v2045_v55 = vpop.f32.mrf.mxu1  ;;  %2546 = vmatpush.bf16.msrb.mxu3 %v4952_v26 }
 0x11f   : > { %v2046_v57 = vadd.f32 %v2045_v55, %v2017_v54  ;;  %v2874_v58 = vmax.f32 %v2102_v56, 0.0  ;;  %v6624_v55 = vperm.slane %v6168_v38, 4 }
 0x121   : > { %v2889_v59 = vmax.f32 %v2046_v57, 0.0  ;;  %v2979_v60 = vadd.f32 %v2978_v46, %v2874_v58  ;;  %v5089_v46 = vld [vmem:[%s8294_s1 + $0x364] sm:$0xf0]  ;;  %v4309_v57 = vld [vmem:[%s8294_s1 + $0x2e8] sm:$0xf0] }
 0x122   : > { %v2074_v63 = vpop.f32.mrf.mxu2  ;;  %v4372_v52 = vor.u32 %v5089_v46, %v4371_v45  ;;  %v5193_v58 = vld [vmem:[%s8294_s1 + $0x6ac] sm:$0xf]  ;;  %2547 = vmatpush.bf16.msrb.mxu3 %v4888_v43  ;;  %v5185_v43 = vld [vmem:[%s8294_s1 + $0x664] sm:$0xf0] }
 0x123   : > { %v2967_v61 = vadd.f32 %v2966_v47, %v2889_v59  ;;  %v2075_v0 = vadd.f32 %v2074_v63, %v6432_v32  ;;  %v4883_v47 = vld [vmem:[%s8294_s1 + $0x728] sm:$0xf]  ;;  %v5033_v45 = vld [vmem:[%s8294_s1 + $0x1ac] sm:$0xf] }
 0x124   : > { %v2103_v1 = vpop.f32.mrf.mxu3  ;;  %v2019_v2 = vpop.f32.mrf.mxu0  ;;  %v4884_v56 = vor.u32 %v5217_v41, %v4883_v47  ;;  %2460 = vmatpush.bf16.msrb.mxu0 %v4372_v52  ;;  %v4181_v52 = vld [vmem:[%s8294_s1 + $0x1e8] sm:$0xf0] }
 0x125   : > { %v2020_v4 = vadd.f32 %v2019_v2, %v6400_v3  ;;  %v2104_v6 = vadd.f32 %v2103_v1, %v2075_v0  ;;  %v4307_v1 = vld [vmem:[%s8294_s1 + $0x2a8] sm:$0xf]  ;;  %v5161_v41 = vld [vmem:[%s8294_s1 + $0x5ac] sm:$0xf] }
 0x126   : > { %v2048_v5 = vpop.f32.mrf.mxu1  ;;  %v5073_v2 = vld [vmem:[%s8294_s1 + $0x2e4] sm:$0xf0]  ;;  %2489 = vmatpush.bf16.msrb.mxu1 %v4884_v56  ;;  %v4184_v56 = vor.u32 %v5033_v45, %v4181_v52 }
 0x127   : > { %v2049_v7 = vadd.f32 %v2048_v5, %v2020_v4  ;;  %2250 = vmatmul.bf16.gmra.mxu0 %v5931_v48  ;;  %v2890_v8 = vmax.f32 %v2104_v6, 0.0  ;;  %2308 = vmatmul.bf16.gmra.mxu2 %v5931_v48  ;;  %v4819_v4 = vld [vmem:[%s8294_s1 + $0x6a8] sm:$0xf] }
 0x128   : > { %v5025_v45 = vld [vmem:[%s8294_s1 + $0x164] sm:$0xf0] }
 0x129   : > { %2279 = vmatmul.bf16.gmra.mxu1 %v5933_v50  ;;  %v2905_v9 = vmax.f32 %v2049_v7, 0.0  ;;  %2337 = vmatmul.bf16.gmra.mxu3 %v5933_v50  ;;  %v2980_v10 = vadd.f32 %v2979_v60, %v2890_v8  ;;  %v4312_v60 = vor.u32 %v5065_v53, %v4309_v57  ;;  %v5201_v8 = vld [vmem:[%s8294_s1 + $0x6e4] sm:$0xf0]  ;;  %v4693_v57 = vld [vmem:[%s8294_s1 + $0x5e8] sm:$0xf0] }
 0x12a   : > { %v2077_v12 = vpop.f32.mrf.mxu2 }
 0x12b   : > { %v2968_v11 = vadd.f32 %v2967_v61, %v2905_v9  ;;  %v2078_v16 = vadd.f32 %v2077_v12, %v6432_v32  ;;  %v4821_v61 = vld [vmem:[%s8294_s1 + $0x6e8] sm:$0xf0] }
 0x12c   : > { %v2106_v17 = vpop.f32.mrf.mxu3  ;;  %v2021_v20 = vpop.f32.mrf.mxu0  ;;  %v4824_v38 = vor.u32 %v5193_v58, %v4821_v61  ;;  %v5049_v9 = vld [vmem:[%s8294_s1 + $0x22c] sm:$0xf] }
 0x12d   : > { %v2022_v24 = vadd.f32 %v2021_v20, %v6400_v3  ;;  %v2107_v31 = vadd.f32 %v2106_v17, %v2078_v16  ;;  %v4373_v3 = vld [vmem:[%s8294_s1 + $0x368] sm:$0xf0]  ;;  %v4820_v17 = vor.u32 %v5201_v8, %v4819_v4  ;;  %v4179_v4 = vld [vmem:[%s8294_s1 + $0x1a8] sm:$0xf] }
 0x12e   : > { %v2050_v25 = vpop.f32.mrf.mxu1  ;;  %v4376_v40 = vor.u32 %v5081_v30, %v4373_v3  ;;  %2548 = vmatpush.bf16.msrb.mxu3 %v4824_v38  ;;  %v5057_v30 = vld [vmem:[%s8294_s1 + $0x264] sm:$0xf0] }
 0x12f   : > { %v2051_v37 = vadd.f32 %v2050_v25, %v2022_v24  ;;  %v2906_v51 = vmax.f32 %v2107_v31, 0.0  ;;  %v6667_v24 = vld [vmem:[%s8295_s2] sm:$0xff]  ;;  %2490 = vmatpush.bf16.msrb.mxu1 %v4820_v17  ;;  %v4755_v31 = vld [vmem:[%s8294_s1 + $0x628] sm:$0xf]  ;;  %v4117_v17 = vld [vmem:[%s8294_s1 + $0x168] sm:$0xf0] }
 0x130   : > { %2518 = vmatpush.bf16.msrb.mxu2 %v4376_v40  ;;  %v6670_v25 = vperm.slane %v6667_v24, 5  ;;  %v4244_v40 = vor.u32 %v5057_v30, %v4243_v29 }
 0x131   : > { %v2921_v54 = vmax.f32 %v2051_v37, 0.0  ;;  %v2981_v59 = vadd.f32 %v2980_v10, %v2906_v51  ;;  %v4245_v10 = vld [vmem:[%s8294_s1 + $0x268] sm:$0xf0]  ;;  %v4756_v51 = vor.u32 %v5185_v43, %v4755_v31  ;;  %v4115_v43 = vld [vmem:[%s8294_s1 + $0x128] sm:$0xf] }
 0x132   : > { %v2079_v0 = vpop.f32.mrf.mxu2  ;;  %v4248_v20 = vor.u32 %v5049_v9, %v4245_v10  ;;  %2549 = vmatpush.bf16.msrb.mxu3 %v4760_v23 }
 0x133   : > { %v2969_v63 = vadd.f32 %v2968_v11, %v2921_v54  ;;  %v2080_v5 = vadd.f32 %v2079_v0, %v6432_v32  ;;  %v4308_v32 = vor.u32 %v5073_v2, %v4307_v1  ;;  %2491 = vmatpush.bf16.msrb.mxu1 %v4756_v51 }
 0x134   : > { %v2108_v6 = vpop.f32.mrf.mxu3  ;;  %v2120_v7 = vpop.f32.mrf.mxu0  ;;  %2519 = vmatpush.bf16.msrb.mxu2 %v4312_v60 }
 0x135   : > { %v2970_v11 = vrot.slane %v2969_v63, 4  ;;  %v2121_v12 = vadd.f32 %v2120_v7, %v6624_v55  ;;  %v2109_v16 = vadd.f32 %v2108_v6, %v2080_v5  ;;  %2461 = vmatpush.bf16.msrb.mxu0 %v4308_v32  ;;  %v5041_v5 = vld [vmem:[%s8294_s1 + $0x1e4] sm:$0xf0]  ;;  %v5017_v32 = vld [vmem:[%s8294_s1 + $0x12c] sm:$0xf] }
 0x136   : > { %v2149_v13 = vpop.f32.mrf.mxu1  ;;  %v4691_v6 = vld [vmem:[%s8294_s1 + $0x5a8] sm:$0xf] }
 0x137   : > { %v2971_v21 = vadd.f32 %v2970_v11, %v2969_v63  ;;  %v2150_v22 = vadd.f32 %v2149_v13, %v2121_v12  ;;  %2351 = vmatmul.bf16.vlgmr.msra.gmra.mxu0 %v5682_v44  ;;  %v2922_v62 = vmax.f32 %v2109_v16, 0.0  ;;  %2409 = vmatmul.bf16.vlgmr.msra.gmra.mxu2 %v5682_v44  ;;  %v4180_v12 = vor.u32 %v5041_v5, %v4179_v4  ;;  %v5169_v13 = vld [vmem:[%s8294_s1 + $0x5e4] sm:$0xf0] }
 0x138   : > { %2520 = vmatpush.bf16.msrb.mxu2 %v4248_v20  ;;  %v4692_v16 = vor.u32 %v5169_v13, %v4691_v6  ;;  %v5145_v20 = vld [vmem:[%s8294_s1 + $0x52c] sm:$0xf]  ;;  %v4563_v4 = vld [vmem:[%s8294_s1 + $0x4a8] sm:$0xf] }
 0x139   : > { %2380 = vmatmul.bf16.vlgmr.msra.gmra.mxu1 %v5693_v49  ;;  %v2972_v26 = vrot.slane %v2971_v21, 2  ;;  %2438 = vmatmul.bf16.vlgmr.msra.gmra.mxu3 %v5693_v49  ;;  %v2982_v27 = vadd.f32 %v2981_v59, %v2922_v62  ;;  %v4696_v59 = vor.u32 %v5161_v41, %v4693_v57  ;;  %v2811_v63 = vmax.f32 %v2150_v22, 0.0  ;;  %v5153_v41 = vld [vmem:[%s8294_s1 + $0x564] sm:$0xf0]  ;;  %v4985_v13 = vld [vmem:[%s8294_s1 + $0x2c] sm:$0xf] }
 0x13a   : > { %v2178_v28 = vpop.f32.mrf.mxu2  ;;  %2462 = vmatpush.bf16.msrb.mxu0 %v4244_v40  ;;  %v4120_v62 = vor.u32 %v5017_v32, %v4117_v17  ;;  %2492 = vmatpush.bf16.msrb.mxu1 %v4692_v16  ;;  %v3989_v32 = vld [vmem:[%s8294_s1 + $0x68] sm:$0xf0] }
 0x13b   : > { %v2973_v33 = vadd.f32 %v2972_v26, %v2971_v21  ;;  %v2983_v3 = vrot.slane %v2982_v27, 4  ;;  %v2179_v35 = vadd.f32 %v2178_v28, %v6670_v25  ;;  %2550 = vmatpush.bf16.msrb.mxu3 %v4696_v59  ;;  %v4629_v21 = vld [vmem:[%s8294_s1 + $0x568] sm:$0xf0] }
 0x13c   : > { %v2207_v36 = vpop.f32.mrf.mxu3  ;;  %v2122_v37 = vpop.f32.mrf.mxu0  ;;  %2521 = vmatpush.bf16.msrb.mxu2 %v4184_v56  ;;  %v4632_v26 = vor.u32 %v5145_v20, %v4629_v21  ;;  %v3992_v20 = vor.u32 %v4985_v13, %v3989_v32  ;;  %v4501_v21 = vld [vmem:[%s8294_s1 + $0x468] sm:$0xf0]  ;;  %v4957_v13 = vld [vmem:[%s8294_s1 + $0x7f0] sm:$0xf0]  ;;  %v4443_v32 = vld [vmem:[%s8294_s1 + $0x3b0] sm:$0xf] }
 0x13d   : > { %v2123_v46 = vadd.f32 %v2122_v37, %v6624_v55  ;;  %v2984_v53 = vadd.f32 %v2983_v3, %v2982_v27  ;;  %v2208_v54 = vadd.f32 %v2207_v36, %v2179_v35  ;;  %v2974_v60 = vrot.slane %v2973_v33, 1 }
 0x13e   : > { %v2151_v47 = vpop.f32.mrf.mxu1  ;;  %2463 = vmatpush.bf16.msrb.mxu0 %v4180_v12 }
 0x13f   : > { %v2152_v58 = vadd.f32 %v2151_v47, %v2123_v46  ;;  %v2985_v61 = vrot.slane %v2984_v53, 2  ;;  %v2975_v7 = vadd.f32 %v2974_v60, %v2973_v33  ;;  %v2812_v30 = vmax.f32 %v2208_v54, 0.0  ;;  %2551 = vmatpush.bf16.msrb.mxu3 %v4632_v26  ;;  %v4627_v46 = vld [vmem:[%s8294_s1 + $0x528] sm:$0xf]  ;;  %v4053_v54 = vld [vmem:[%s8294_s1 + $0xe8] sm:$0xf0] }
 0x140   : > { %2522 = vmatpush.bf16.msrb.mxu2 %v4120_v62  ;;  %v5129_v60 = vld [vmem:[%s8294_s1 + $0x4ac] sm:$0xf] }
 0x141   : > { %v2827_v0 = vmax.f32 %v2152_v58, 0.0  ;;  %v2986_v38 = vadd.f32 %v2985_v61, %v2984_v53  ;;  %v3162_v28 = vrot.slane %v2975_v7, 6  ;;  %v5001_v53 = vld [vmem:[%s8294_s1 + $0xac] sm:$0xf]  ;;  %v4628_v58 = vor.u32 %v5153_v41, %v4627_v46  ;;  %v5137_v7 = vld [vmem:[%s8294_s1 + $0x4e4] sm:$0xf0] }
 0x142   : > { %v2180_v2 = vpop.f32.mrf.mxu2  ;;  %v4056_v59 = vor.u32 %v5001_v53, %v4053_v54  ;;  %v4565_v61 = vld [vmem:[%s8294_s1 + $0x4e8] sm:$0xf0] }
 0x143   : > { %v2989_v1 = vadd.f32 %v2827_v0, %v2811_v63  ;;  %v2987_v8 = vrot.slane %v2986_v38, 1  ;;  %v2181_v9 = vadd.f32 %v2180_v2, %v6670_v25  ;;  %v4568_v0 = vor.u32 %v5129_v60, %v4565_v61  ;;  %2493 = vmatpush.bf16.msrb.mxu1 %v4628_v58  ;;  %v5009_v2 = vld [vmem:[%s8294_s1 + $0xe4] sm:$0xf0] }
 0x144   : > { %v2209_v10 = vpop.f32.mrf.mxu3  ;;  %v2125_v11 = vpop.f32.mrf.mxu0  ;;  %2523 = vmatpush.bf16.msrb.mxu2 %v4056_v59 }
 0x145   : > { %v2126_v14 = vadd.f32 %v2125_v11, %v6624_v55  ;;  %v2988_v22 = vadd.f32 %v2987_v8, %v2986_v38  ;;  %v2210_v23 = vadd.f32 %v2209_v10, %v2181_v9  ;;  %2552 = vmatpush.bf16.msrb.mxu3 %v4568_v0  ;;  %v4564_v9 = vor.u32 %v5137_v7, %v4563_v4  ;;  %v5098_v7 = vld [vmem:[%s8294_s1 + $0x3b4] sm:$0xf] }
 0x146   : > { %v2154_v15 = vpop.f32.mrf.mxu1 }
 0x147   : > { %v2155_v27 = vadd.f32 %v2154_v15, %v2126_v14  ;;  %2356 = vmatmul.bf16.gmra.mxu0 %v5790_v34  ;;  %v3163_v29 = vrot.slane %v2988_v22, 5  ;;  %v2828_v31 = vmax.f32 %v2210_v23, 0.0  ;;  %2414 = vmatmul.bf16.gmra.mxu2 %v5790_v34  ;;  %v5113_v14 = vld [vmem:[%s8294_s1 + $0x42c] sm:$0xf]  ;;  %v3987_v22 = vld [vmem:[%s8294_s1 + $0x28] sm:$0xf] }
 0x148   : > { %2494 = vmatpush.bf16.msrb.mxu1 %v4564_v9  ;;  %v4993_v23 = vld [vmem:[%s8294_s1 + $0x64] sm:$0xf0]  ;;  %2524 = vmatpush.bf16.msrb.mxu2 %v3992_v20  ;;  %v5226_v9 = vld [vmem:[%s8294_s1 + $0x7b4] sm:$0xf] }
 0x149   : > { %2385 = vmatmul.bf16.gmra.mxu1 %v5801_v39  ;;  %v2843_v33 = vmax.f32 %v2155_v27, 0.0  ;;  %2443 = vmatmul.bf16.gmra.mxu3 %v5801_v39  ;;  %v3178_v3 = vsel %vm3177_vm1, %v3162_v28, %v3163_v29  ;;  %v3002_v35 = vadd.f32 %v2828_v31, %v2812_v30  ;;  %v4504_v27 = vor.u32 %v5113_v14, %v4501_v21  ;;  %v4499_v29 = vld [vmem:[%s8294_s1 + $0x428] sm:$0xf]  ;;  %v5106_v14 = vld [vmem:[%s8294_s1 + $0x3ec] sm:$0xf0] }
 0x14a   : > { %v6732_v36 = vsel %vm3179_vm2, %v6492_v42, %v3178_v3  ;;  %v2183_v40 = vpop.f32.mrf.mxu2  ;;  %v4116_v42 = vor.u32 %v5025_v45, %v4115_v43  ;;  %v3988_v28 = vor.u32 %v4993_v23, %v3987_v22  ;;  %v5121_v30 = vld [vmem:[%s8294_s1 + $0x464] sm:$0xf0]  ;;  %v4960_v20 = vor.u32 %v5226_v9, %v4957_v13  ;;  %v4955_v22 = vld [vmem:[%s8294_s1 + $0x7b0] sm:$0xf]  ;;  %v5178_v13 = vld [vmem:[%s8294_s1 + $0x634] sm:$0xf] }
 0x14b   : > { %v2990_v37 = vadd.f32 %v2989_v1, %v2843_v33  ;;  %v2184_v47 = vadd.f32 %v2183_v40, %v6670_v25  ;;  %v4051_v1 = vld [vmem:[%s8294_s1 + $0xa8] sm:$0xf]  ;;  %v4500_v33 = vor.u32 %v5121_v30, %v4499_v29  ;;  %2553 = vmatpush.bf16.msrb.mxu3 %v4504_v27  ;;  %v4444_v21 = vor.u32 %v5106_v14, %v4443_v32  ;;  %v5234_v23 = vld [vmem:[%s8294_s1 + $0x7ec] sm:$0xf0]  ;;  %v4381_v29 = vld [vmem:[%s8294_s1 + $0x370] sm:$0xf0] }
 0x14c   : > { %v2212_v51 = vpop.f32.mrf.mxu3  ;;  %v2127_v52 = vpop.f32.mrf.mxu0  ;;  %2464 = vmatpush.bf16.msrb.mxu0 %v4116_v42  ;;  %v4052_v6 = vor.u32 %v5009_v2, %v4051_v1  ;;  %v5210_v30 = vld [vmem:[%s8294_s1 + $0x734] sm:$0xf] }
 0x14d   : > { %v2128_v56 = vadd.f32 %v2127_v52, %v6624_v55  ;;  %v2213_v63 = vadd.f32 %v2212_v51, %v2184_v47  ;;  %2495 = vmatpush.bf16.msrb.mxu1 %v4500_v33  ;;  %v4765_v32 = vld [vmem:[%s8294_s1 + $0x670] sm:$0xf0] }
 0x14e   : > { %v2156_v57 = vpop.f32.mrf.mxu1 }
 0x14f   : > { %v2157_v38 = vadd.f32 %v2156_v57, %v2128_v56  ;;  %v2844_v5 = vmax.f32 %v2213_v63, 0.0  ;;  %2662 = vmatpush.bf16.msra.mxu3 %v4960_v20 }
 0x150   : > { %2465 = vmatpush.bf16.msrb.mxu0 %v4052_v6 }
 0x151   : > { %v2859_v8 = vmax.f32 %v2157_v38, 0.0  ;;  %v3003_v10 = vadd.f32 %v3002_v35, %v2844_v5 }
 0x152   : > { %v2185_v12 = vpop.f32.mrf.mxu2 }
 0x153   : > { %v2991_v11 = vadd.f32 %v2990_v37, %v2859_v8  ;;  %v2186_v15 = vadd.f32 %v2185_v12, %v6670_v25  ;;  %v4445_v8 = vld [vmem:[%s8294_s1 + $0x3f0] sm:$0xf0] }
 0x154   : > { %v2214_v16 = vpop.f32.mrf.mxu3  ;;  %v2130_v17 = vpop.f32.mrf.mxu0  ;;  %2466 = vmatpush.bf16.msrb.mxu0 %v3988_v28  ;;  %v4448_v12 = vor.u32 %v5098_v7, %v4445_v8  ;;  %v4956_v28 = vor.u32 %v5234_v23, %v4955_v22  ;;  %v5050_v7 = vld [vmem:[%s8294_s1 + $0x234] sm:$0xf] }
 0x155   : > { %v2131_v62 = vadd.f32 %v2130_v17, %v6624_v55  ;;  %v2215_v31 = vadd.f32 %v2214_v16, %v2186_v15  ;;  %v4253_v8 = vld [vmem:[%s8294_s1 + $0x270] sm:$0xf0] }
 0x156   : > { %v2159_v26 = vpop.f32.mrf.mxu1  ;;  %2633 = vmatpush.bf16.msra.mxu2 %v4448_v12  ;;  %2604 = vmatpush.bf16.msra.mxu1 %v4956_v28  ;;  %v4256_v12 = vor.u32 %v5050_v7, %v4253_v8 }
 0x157   : > { %v2160_v3 = vadd.f32 %v2159_v26, %v2131_v62  ;;  %2361 = vmatmul.bf16.gmra.mxu0 %v5877_v18  ;;  %v2860_v35 = vmax.f32 %v2215_v31, 0.0  ;;  %2419 = vmatmul.bf16.gmra.mxu2 %v5877_v18  ;;  %v5082_v62 = vld [vmem:[%s8294_s1 + $0x334] sm:$0xf] }
 0x158   : > { %v4893_v31 = vld [vmem:[%s8294_s1 + $0x770] sm:$0xf0]  ;;  %2575 = vmatpush.bf16.msra.mxu0 %v4444_v21  ;;  %v6905_v21 = vperm.slane %v6667_v24, 7 }
 0x159   : > { %2390 = vmatmul.bf16.gmra.mxu1 %v5879_v19  ;;  %v2875_v37 = vmax.f32 %v2160_v3, 0.0  ;;  %2448 = vmatmul.bf16.gmra.mxu3 %v5879_v19  ;;  %v3004_v40 = vadd.f32 %v3003_v10, %v2860_v35  ;;  %v4384_v3 = vor.u32 %v5082_v62, %v4381_v29  ;;  %v4379_v35 = vld [vmem:[%s8294_s1 + $0x330] sm:$0xf] }
 0x15a   : > { %v2188_v45 = vpop.f32.mrf.mxu2 }
 0x15b   : > { %v2992_v43 = vadd.f32 %v2991_v11, %v2875_v37  ;;  %v2189_v46 = vadd.f32 %v2188_v45, %v6670_v25  ;;  %v5090_v37 = vld [vmem:[%s8294_s1 + $0x36c] sm:$0xf0]  ;;  %2634 = vmatpush.bf16.msra.mxu2 %v4384_v3 }
 0x15c   : > { %v2217_v47 = vpop.f32.mrf.mxu3  ;;  %v2132_v51 = vpop.f32.mrf.mxu0  ;;  %v4380_v45 = vor.u32 %v5090_v37, %v4379_v35  ;;  %v5034_v35 = vld [vmem:[%s8294_s1 + $0x1b4] sm:$0xf] }
 0x15d   : > { %v2133_v52 = vadd.f32 %v2132_v51, %v6624_v55  ;;  %v2218_v41 = vadd.f32 %v2217_v47, %v2189_v46  ;;  %v5218_v46 = vld [vmem:[%s8294_s1 + $0x76c] sm:$0xf0]  ;;  %v5066_v47 = vld [vmem:[%s8294_s1 + $0x2b4] sm:$0xf] }
 0x15e   : > { %v2161_v42 = vpop.f32.mrf.mxu1  ;;  %v4317_v51 = vld [vmem:[%s8294_s1 + $0x2f0] sm:$0xf0]  ;;  %2576 = vmatpush.bf16.msra.mxu0 %v4380_v45 }
 0x15f   : > { %v2162_v53 = vadd.f32 %v2161_v42, %v2133_v52  ;;  %v2876_v54 = vmax.f32 %v2218_v41, 0.0  ;;  %v5194_v41 = vld [vmem:[%s8294_s1 + $0x6b4] sm:$0xf] }
 0x160   : > { %v4189_v45 = vld [vmem:[%s8294_s1 + $0x1f0] sm:$0xf0] }
 0x161   : > { %v2891_v56 = vmax.f32 %v2162_v53, 0.0  ;;  %v3005_v57 = vadd.f32 %v3004_v40, %v2876_v54  ;;  %v4891_v40 = vld [vmem:[%s8294_s1 + $0x730] sm:$0xf]  ;;  %v4829_v53 = vld [vmem:[%s8294_s1 + $0x6f0] sm:$0xf0] }
 0x162   : > { %v2190_v59 = vpop.f32.mrf.mxu2  ;;  %v4892_v42 = vor.u32 %v5218_v46, %v4891_v40  ;;  %v5162_v46 = vld [vmem:[%s8294_s1 + $0x5b4] sm:$0xf] }
 0x163   : > { %v2993_v58 = vadd.f32 %v2992_v43, %v2891_v56  ;;  %v2191_v60 = vadd.f32 %v2190_v59, %v6670_v25  ;;  %v6873_v56 = vperm.slane %v6667_v24, 6  ;;  %v4832_v59 = vor.u32 %v5194_v41, %v4829_v53  ;;  %v4763_v24 = vld [vmem:[%s8294_s1 + $0x630] sm:$0xf] }
 0x164   : > { %v2219_v61 = vpop.f32.mrf.mxu3  ;;  %v2135_v63 = vpop.f32.mrf.mxu0  ;;  %2605 = vmatpush.bf16.msra.mxu1 %v4892_v42  ;;  %v4701_v42 = vld [vmem:[%s8294_s1 + $0x5f0] sm:$0xf0] }
 0x165   : > { %v2136_v0 = vadd.f32 %v2135_v63, %v6624_v55  ;;  %v2220_v1 = vadd.f32 %v2219_v61, %v2191_v60  ;;  %v4315_v63 = vld [vmem:[%s8294_s1 + $0x2b0] sm:$0xf]  ;;  %v4704_v53 = vor.u32 %v5162_v46, %v4701_v42  ;;  %v5002_v46 = vld [vmem:[%s8294_s1 + $0xb4] sm:$0xf] }
 0x166   : > { %v2164_v38 = vpop.f32.mrf.mxu1 }
 0x167   : > { %v2165_v2 = vadd.f32 %v2164_v38, %v2136_v0  ;;  %2366 = vmatmul.bf16.gmra.mxu0 %v5931_v48  ;;  %v2892_v4 = vmax.f32 %v2220_v1, 0.0  ;;  %2424 = vmatmul.bf16.gmra.mxu2 %v5931_v48  ;;  %v5074_v0 = vld [vmem:[%s8294_s1 + $0x2ec] sm:$0xf0] }
 0x168   : > { %v4827_v38 = vld [vmem:[%s8294_s1 + $0x6b0] sm:$0xf] }
 0x169   : > { %2395 = vmatmul.bf16.gmra.mxu1 %v5933_v50  ;;  %v2907_v5 = vmax.f32 %v2165_v2, 0.0  ;;  %2453 = vmatmul.bf16.gmra.mxu3 %v5933_v50  ;;  %v3006_v6 = vadd.f32 %v3005_v57, %v2892_v4  ;;  %v4320_v57 = vor.u32 %v5066_v47, %v4317_v51 }
 0x16a   : > { %v2193_v11 = vpop.f32.mrf.mxu2 }
 0x16b   : > { %v2994_v10 = vadd.f32 %v2993_v58, %v2907_v5  ;;  %v2194_v15 = vadd.f32 %v2193_v11, %v6670_v25  ;;  %v4316_v5 = vor.u32 %v5074_v0, %v4315_v63  ;;  %2635 = vmatpush.bf16.msra.mxu2 %v4320_v57  ;;  %v4187_v0 = vld [vmem:[%s8294_s1 + $0x1b0] sm:$0xf] }
 0x16c   : > { %v2222_v16 = vpop.f32.mrf.mxu3  ;;  %v2137_v17 = vpop.f32.mrf.mxu0 }
 0x16d   : > { %v2138_v26 = vadd.f32 %v2137_v17, %v6624_v55  ;;  %v2223_v33 = vadd.f32 %v2222_v16, %v2194_v15  ;;  %v4896_v55 = vor.u32 %v5210_v30, %v4893_v31  ;;  %2577 = vmatpush.bf16.msra.mxu0 %v4316_v5  ;;  %v4768_v15 = vor.u32 %v5178_v13, %v4765_v32  ;;  %v4125_v13 = vld [vmem:[%s8294_s1 + $0x170] sm:$0xf0] }
 0x16e   : > { %v2166_v27 = vpop.f32.mrf.mxu1  ;;  %v5146_v32 = vld [vmem:[%s8294_s1 + $0x534] sm:$0xf] }
 0x16f   : > { %v2167_v43 = vadd.f32 %v2166_v27, %v2138_v26  ;;  %v2908_v52 = vmax.f32 %v2223_v33, 0.0  ;;  %2663 = vmatpush.bf16.msra.mxu3 %v4896_v55  ;;  %2636 = vmatpush.bf16.msra.mxu2 %v4256_v12  ;;  %v4251_v26 = vld [vmem:[%s8294_s1 + $0x230] sm:$0xf] }
 0x170   : > { %v5058_v27 = vld [vmem:[%s8294_s1 + $0x26c] sm:$0xf0] }
 0x171   : > { %v2923_v54 = vmax.f32 %v2167_v43, 0.0  ;;  %v3007_v58 = vadd.f32 %v3006_v6, %v2908_v52  ;;  %v5202_v6 = vld [vmem:[%s8294_s1 + $0x6ec] sm:$0xf0]  ;;  %v4252_v3 = vor.u32 %v5058_v27, %v4251_v26  ;;  %v4192_v52 = vor.u32 %v5034_v35, %v4189_v45 }
 0x172   : > { %v2195_v61 = vpop.f32.mrf.mxu2  ;;  %v5186_v55 = vld [vmem:[%s8294_s1 + $0x66c] sm:$0xf0] }
 0x173   : > { %v2995_v60 = vadd.f32 %v2994_v10, %v2923_v54  ;;  %v2196_v1 = vadd.f32 %v2195_v61, %v6670_v25  ;;  %v4828_v25 = vor.u32 %v5202_v6, %v4827_v38  ;;  %2664 = vmatpush.bf16.msra.mxu3 %v4832_v59  ;;  %v4764_v43 = vor.u32 %v5186_v55, %v4763_v24  ;;  %v5042_v38 = vld [vmem:[%s8294_s1 + $0x1ec] sm:$0xf0] }
 0x174   : > { %v2224_v2 = vpop.f32.mrf.mxu3  ;;  %v2236_v4 = vpop.f32.mrf.mxu0  ;;  %2578 = vmatpush.bf16.msra.mxu0 %v4252_v3  ;;  %2637 = vmatpush.bf16.msra.mxu2 %v4192_v52  ;;  %v4188_v8 = vor.u32 %v5042_v38, %v4187_v0  ;;  %v5026_v3 = vld [vmem:[%s8294_s1 + $0x16c] sm:$0xf0] }
 0x175   : > { %v2996_v9 = vrot.slane %v2995_v60, 4  ;;  %v2237_v10 = vadd.f32 %v2236_v4, %v6873_v56  ;;  %v2225_v14 = vadd.f32 %v2224_v2, %v2196_v1  ;;  %2606 = vmatpush.bf16.msra.mxu1 %v4828_v25  ;;  %v4699_v1 = vld [vmem:[%s8294_s1 + $0x5b0] sm:$0xf] }
 0x176   : > { %v2265_v11 = vpop.f32.mrf.mxu1  ;;  %v4635_v55 = vld [vmem:[%s8294_s1 + $0x530] sm:$0xf] }
 0x177   : > { %v2997_v16 = vadd.f32 %v2996_v9, %v2995_v60  ;;  %v2266_v17 = vadd.f32 %v2265_v11, %v2237_v10  ;;  %2467 = vmatmul.bf16.vlgmr.msrb.gmra.mxu0 %v5682_v44  ;;  %v2924_v20 = vmax.f32 %v2225_v14, 0.0  ;;  %2525 = vmatmul.bf16.vlgmr.msrb.gmra.mxu2 %v5682_v44  ;;  %v5170_v9 = vld [vmem:[%s8294_s1 + $0x5ec] sm:$0xf0]  ;;  %v5018_v10 = vld [vmem:[%s8294_s1 + $0x134] sm:$0xf] }
 0x178   : > { %2665 = vmatpush.bf16.msra.mxu3 %v4768_v15  ;;  %v4700_v12 = vor.u32 %v5170_v9, %v4699_v1  ;;  %v4637_v14 = vld [vmem:[%s8294_s1 + $0x570] sm:$0xf0]  ;;  %2579 = vmatpush.bf16.msra.mxu0 %v4188_v8  ;;  %v5154_v45 = vld [vmem:[%s8294_s1 + $0x56c] sm:$0xf0] }
 0x179   : > { %2496 = vmatmul.bf16.vlgmr.msrb.gmra.mxu1 %v5693_v49  ;;  %v2998_v22 = vrot.slane %v2997_v16, 2  ;;  %2554 = vmatmul.bf16.vlgmr.msrb.gmra.mxu3 %v5693_v49  ;;  %v3008_v23 = vadd.f32 %v3007_v58, %v2924_v20  ;;  %v2813_v58 = vmax.f32 %v2266_v17, 0.0  ;;  %v4128_v17 = vor.u32 %v5018_v10, %v4125_v13  ;;  %v5138_v1 = vld [vmem:[%s8294_s1 + $0x4ec] sm:$0xf0]  ;;  %v4986_v8 = vld [vmem:[%s8294_s1 + $0x34] sm:$0xf] }
 0x17a   : > { %v2294_v62 = vpop.f32.mrf.mxu2  ;;  %2607 = vmatpush.bf16.msra.mxu1 %v4764_v43  ;;  %v4640_v20 = vor.u32 %v5146_v32, %v4637_v14  ;;  %v4636_v42 = vor.u32 %v5154_v45, %v4635_v55  ;;  %v3997_v9 = vld [vmem:[%s8294_s1 + $0x70] sm:$0xf0]  ;;  %v3995_v14 = vld [vmem:[%s8294_s1 + $0x30] sm:$0xf] }
 0x17b   : > { %v2999_v28 = vadd.f32 %v2998_v22, %v2997_v16  ;;  %v3009_v29 = vrot.slane %v3008_v23, 4  ;;  %v2295_v30 = vadd.f32 %v2294_v62, %v6905_v21  ;;  %2638 = vmatpush.bf16.msra.mxu2 %v4128_v17  ;;  %v5114_v10 = vld [vmem:[%s8294_s1 + $0x434] sm:$0xf]  ;;  %v4000_v13 = vor.u32 %v4986_v8, %v3997_v9 }
 0x17c   : > { %v2323_v31 = vpop.f32.mrf.mxu3  ;;  %v2238_v33 = vpop.f32.mrf.mxu0  ;;  %2666 = vmatpush.bf16.msra.mxu3 %v4704_v53  ;;  %v5130_v53 = vld [vmem:[%s8294_s1 + $0x4b4] sm:$0xf] }
 0x17d   : > { %v2239_v37 = vadd.f32 %v2238_v33, %v6873_v56  ;;  %v3010_v47 = vadd.f32 %v3009_v29, %v3008_v23  ;;  %v2324_v51 = vadd.f32 %v2323_v31, %v2295_v30  ;;  %v3000_v54 = vrot.slane %v2999_v28, 1  ;;  %v4123_v33 = vld [vmem:[%s8294_s1 + $0x130] sm:$0xf]  ;;  %v4509_v32 = vld [vmem:[%s8294_s1 + $0x470] sm:$0xf0] }
 0x17e   : > { %v2267_v40 = vpop.f32.mrf.mxu1  ;;  %2608 = vmatpush.bf16.msra.mxu1 %v4700_v12  ;;  %v4124_v43 = vor.u32 %v5026_v3, %v4123_v33 }
 0x17f   : > { %v2268_v41 = vadd.f32 %v2267_v40, %v2239_v37  ;;  %v3011_v57 = vrot.slane %v3010_v47, 2  ;;  %v3001_v2 = vadd.f32 %v3000_v54, %v2999_v28  ;;  %v2814_v26 = vmax.f32 %v2324_v51, 0.0  ;;  %v4573_v54 = vld [vmem:[%s8294_s1 + $0x4f0] sm:$0xf0] }
 0x180   : > { %2667 = vmatpush.bf16.msra.mxu3 %v4640_v20  ;;  %2580 = vmatpush.bf16.msra.mxu0 %v4124_v43  ;;  %v4512_v20 = vor.u32 %v5114_v10, %v4509_v32  ;;  %v5099_v10 = vld [vmem:[%s8294_s1 + $0x3bc] sm:$0xf] }
 0x181   : > { %v2829_v59 = vmax.f32 %v2268_v41, 0.0  ;;  %v3012_v60 = vadd.f32 %v3011_v57, %v3010_v47  ;;  %v3164_v23 = vrot.slane %v3001_v2, 4  ;;  %v4061_v47 = vld [vmem:[%s8294_s1 + $0xf0] sm:$0xf0]  ;;  %v4965_v32 = vld [vmem:[%s8294_s1 + $0x7f8] sm:$0xf0] }
 0x182   : > { %v2296_v63 = vpop.f32.mrf.mxu2  ;;  %v4064_v41 = vor.u32 %v5002_v46, %v4061_v47  ;;  %2609 = vmatpush.bf16.msra.mxu1 %v4636_v42 }
 0x183   : > { %v3015_v61 = vadd.f32 %v2829_v59, %v2813_v58  ;;  %v3013_v4 = vrot.slane %v3012_v60, 1  ;;  %v2297_v5 = vadd.f32 %v2296_v63, %v6905_v21  ;;  %v4576_v58 = vor.u32 %v5130_v53, %v4573_v54  ;;  %v4571_v63 = vld [vmem:[%s8294_s1 + $0x4b0] sm:$0xf] }
 0x184   : > { %v2325_v6 = vpop.f32.mrf.mxu3  ;;  %v2241_v7 = vpop.f32.mrf.mxu0  ;;  %2639 = vmatpush.bf16.msra.mxu2 %v4064_v41 }
 0x185   : > { %v2242_v11 = vadd.f32 %v2241_v7, %v6873_v56  ;;  %v3014_v15 = vadd.f32 %v3013_v4, %v3012_v60  ;;  %v2326_v16 = vadd.f32 %v2325_v6, %v2297_v5  ;;  %v4059_v60 = vld [vmem:[%s8294_s1 + $0xb0] sm:$0xf]  ;;  %2668 = vmatpush.bf16.msra.mxu3 %v4576_v58  ;;  %v4572_v4 = vor.u32 %v5138_v1, %v4571_v63 }
 0x186   : > { %v2270_v25 = vpop.f32.mrf.mxu1 }
 0x187   : > { %v2271_v22 = vadd.f32 %v2270_v25, %v2242_v11  ;;  %2472 = vmatmul.bf16.gmra.mxu0 %v5790_v34  ;;  %v3165_v62 = vrot.slane %v3014_v15, 3  ;;  %v2830_v27 = vmax.f32 %v2326_v16, 0.0  ;;  %2530 = vmatmul.bf16.gmra.mxu2 %v5790_v34  ;;  %v4994_v15 = vld [vmem:[%s8294_s1 + $0x6c] sm:$0xf0] }
 0x188   : > { %2610 = vmatpush.bf16.msra.mxu1 %v4572_v4  ;;  %2640 = vmatpush.bf16.msra.mxu2 %v4000_v13 }
 0x189   : > { %2501 = vmatmul.bf16.gmra.mxu1 %v5801_v39  ;;  %v2845_v24 = vmax.f32 %v2271_v22, 0.0  ;;  %2559 = vmatmul.bf16.gmra.mxu3 %v5801_v39  ;;  %v6965_v28 = vsel %vm3181_vm3, %v3164_v23, %v3165_v62  ;;  %v3028_v29 = vadd.f32 %v2830_v27, %v2814_v26  ;;  %v3996_v22 = vor.u32 %v4994_v15, %v3995_v14  ;;  %v4507_v23 = vld [vmem:[%s8294_s1 + $0x430] sm:$0xf]  ;;  %v5107_v14 = vld [vmem:[%s8294_s1 + $0x3f4] sm:$0xf0] }
 0x18a   : > { %v2299_v31 = vpop.f32.mrf.mxu2  ;;  %v5122_v62 = vld [vmem:[%s8294_s1 + $0x46c] sm:$0xf0]  ;;  %2669 = vmatpush.bf16.msra.mxu3 %v4512_v20  ;;  %v4963_v20 = vld [vmem:[%s8294_s1 + $0x7b8] sm:$0xf] }
 0x18b   : > { %v3016_v30 = vadd.f32 %v3015_v61, %v2845_v24  ;;  %v2300_v35 = vadd.f32 %v2299_v31, %v6905_v21  ;;  %v5010_v61 = vld [vmem:[%s8294_s1 + $0xec] sm:$0xf0]  ;;  %v4508_v27 = vor.u32 %v5122_v62, %v4507_v23  ;;  %v5083_v23 = vld [vmem:[%s8294_s1 + $0x33c] sm:$0xf] }
 0x18c   : > { %v2328_v37 = vpop.f32.mrf.mxu3  ;;  %v2243_v40 = vpop.f32.mrf.mxu0  ;;  %v4060_v38 = vor.u32 %v5010_v61, %v4059_v60 }
 0x18d   : > { %v2244_v51 = vadd.f32 %v2243_v40, %v6873_v56  ;;  %v2329_v57 = vadd.f32 %v2328_v37, %v2300_v35  ;;  %2611 = vmatpush.bf16.msra.mxu1 %v4508_v27  ;;  %v4389_v27 = vld [vmem:[%s8294_s1 + $0x378] sm:$0xf0] }
 0x18e   : > { %v2272_v52 = vpop.f32.mrf.mxu1  ;;  %2581 = vmatpush.bf16.msra.mxu0 %v4060_v38 }
 0x18f   : > { %v2273_v59 = vadd.f32 %v2272_v52, %v2244_v51  ;;  %v2846_v0 = vmax.f32 %v2329_v57, 0.0 }
 0x191   : > { %v2861_v2 = vmax.f32 %v2273_v59, 0.0  ;;  %v3029_v5 = vadd.f32 %v3028_v29, %v2846_v0 }
 0x192   : > { %v2301_v7 = vpop.f32.mrf.mxu2  ;;  %2582 = vmatpush.bf16.msra.mxu0 %v3996_v22  ;;  %v5235_v22 = vld [vmem:[%s8294_s1 + $0x7f4] sm:$0xf0] }
 0x193   : > { %v3017_v6 = vadd.f32 %v3016_v30, %v2861_v2  ;;  %v2302_v11 = vadd.f32 %v2301_v7, %v6905_v21  ;;  %v7047_v7 = vld [vmem:[%s8295_s2 + $0x8] sm:$0xff] }
 0x194   : > { %v2330_v25 = vpop.f32.mrf.mxu3  ;;  %v2246_v12 = vpop.f32.mrf.mxu0 }
 0x195   : > { %v2247_v16 = vadd.f32 %v2246_v12, %v6873_v56  ;;  %v2331_v26 = vadd.f32 %v2330_v25, %v2302_v11  ;;  %v4453_v11 = vld [vmem:[%s8294_s1 + $0x3f8] sm:$0xf0] }
 0x196   : > { %v2275_v17 = vpop.f32.mrf.mxu1  ;;  %v5227_v25 = vld [vmem:[%s8294_s1 + $0x7bc] sm:$0xf]  ;;  %v4456_v13 = vor.u32 %v5099_v10, %v4453_v11 }
 0x197   : > { %v2276_v24 = vadd.f32 %v2275_v17, %v2247_v16  ;;  %2477 = vmatmul.bf16.gmra.mxu0 %v5877_v18  ;;  %v2862_v29 = vmax.f32 %v2331_v26, 0.0  ;;  %2535 = vmatmul.bf16.gmra.mxu2 %v5877_v18  ;;  %v4968_v16 = vor.u32 %v5227_v25, %v4965_v32  ;;  %v4964_v26 = vor.u32 %v5235_v22, %v4963_v20  ;;  %v5179_v25 = vld [vmem:[%s8294_s1 + $0x63c] sm:$0xf]  ;;  %v4259_v20 = vld [vmem:[%s8294_s1 + $0x238] sm:$0xf] }
 0x198   : > { %2749 = vmatpush.bf16.msrb.mxu2 %v4456_v13  ;;  %v7143_v32 = vperm.slane %v7047_v7, 1  ;;  %v5059_v22 = vld [vmem:[%s8294_s1 + $0x274] sm:$0xf0] }
 0x199   : > { %2506 = vmatmul.bf16.gmra.mxu1 %v5879_v19  ;;  %v2877_v30 = vmax.f32 %v2276_v24, 0.0  ;;  %2564 = vmatmul.bf16.gmra.mxu3 %v5879_v19  ;;  %v3030_v31 = vadd.f32 %v3029_v5, %v2862_v29  ;;  %v5211_v24 = vld [vmem:[%s8294_s1 + $0x73c] sm:$0xf] }
 0x19a   : > { %v2304_v3 = vpop.f32.mrf.mxu2  ;;  %2778 = vmatpush.bf16.msrb.mxu3 %v4968_v16  ;;  %2720 = vmatpush.bf16.msrb.mxu1 %v4964_v26 }
 0x19b   : > { %v3018_v33 = vadd.f32 %v3017_v6, %v2877_v30  ;;  %v2305_v55 = vadd.f32 %v2304_v3, %v6905_v21  ;;  %v7084_v30 = vperm.slane %v7047_v7, 0  ;;  %v4387_v3 = vld [vmem:[%s8294_s1 + $0x338] sm:$0xf] }
 0x19c   : > { %v2333_v35 = vpop.f32.mrf.mxu3  ;;  %v2248_v37 = vpop.f32.mrf.mxu0 }
 0x19d   : > { %v2249_v40 = vadd.f32 %v2248_v37, %v6873_v56  ;;  %v2334_v45 = vadd.f32 %v2333_v35, %v2305_v55  ;;  %v5091_v37 = vld [vmem:[%s8294_s1 + $0x374] sm:$0xf0] }
 0x19e   : > { %v2277_v43 = vpop.f32.mrf.mxu1 }
 0x19f   : > { %v2278_v46 = vadd.f32 %v2277_v43, %v2249_v40  ;;  %v2878_v47 = vmax.f32 %v2334_v45, 0.0  ;;  %v4899_v40 = vld [vmem:[%s8294_s1 + $0x738] sm:$0xf] }
 0x1a0   : > { %v5219_v43 = vld [vmem:[%s8294_s1 + $0x774] sm:$0xf0] }
 0x1a1   : > { %v2893_v51 = vmax.f32 %v2278_v46, 0.0  ;;  %v3031_v52 = vadd.f32 %v3030_v31, %v2878_v47  ;;  %v4392_v31 = vor.u32 %v5083_v23, %v4389_v27  ;;  %v4388_v47 = vor.u32 %v5091_v37, %v4387_v3  ;;  %v4771_v23 = vld [vmem:[%s8294_s1 + $0x638] sm:$0xf]  ;;  %v5035_v3 = vld [vmem:[%s8294_s1 + $0x1bc] sm:$0xf] }
 0x1a2   : > { %v2306_v41 = vpop.f32.mrf.mxu2 }
 0x1a3   : > { %v3019_v42 = vadd.f32 %v3018_v33, %v2893_v51  ;;  %v2307_v53 = vadd.f32 %v2306_v41, %v6905_v21  ;;  %v4901_v33 = vld [vmem:[%s8294_s1 + $0x778] sm:$0xf0]  ;;  %v4900_v51 = vor.u32 %v5219_v43, %v4899_v40  ;;  %2750 = vmatpush.bf16.msrb.mxu2 %v4392_v31  ;;  %v4260_v31 = vor.u32 %v5059_v22, %v4259_v20 }
 0x1a4   : > { %v2335_v54 = vpop.f32.mrf.mxu3  ;;  %v2251_v57 = vpop.f32.mrf.mxu0  ;;  %v4904_v35 = vor.u32 %v5211_v24, %v4901_v33  ;;  %v5195_v41 = vld [vmem:[%s8294_s1 + $0x6bc] sm:$0xf]  ;;  %v5187_v33 = vld [vmem:[%s8294_s1 + $0x674] sm:$0xf0] }
 0x1a5   : > { %v2252_v58 = vadd.f32 %v2251_v57, %v6873_v56  ;;  %v2336_v60 = vadd.f32 %v2335_v54, %v2307_v53  ;;  %2721 = vmatpush.bf16.msrb.mxu1 %v4900_v51  ;;  %v4772_v37 = vor.u32 %v5187_v33, %v4771_v23  ;;  %v4197_v40 = vld [vmem:[%s8294_s1 + $0x1f8] sm:$0xf0] }
 0x1a6   : > { %v2280_v59 = vpop.f32.mrf.mxu1  ;;  %2779 = vmatpush.bf16.msrb.mxu3 %v4904_v35  ;;  %v5163_v43 = vld [vmem:[%s8294_s1 + $0x5bc] sm:$0xf] }
 0x1a7   : > { %v2281_v61 = vadd.f32 %v2280_v59, %v2252_v58  ;;  %2482 = vmatmul.bf16.gmra.mxu0 %v5931_v48  ;;  %v2894_v63 = vmax.f32 %v2336_v60, 0.0  ;;  %2540 = vmatmul.bf16.gmra.mxu2 %v5931_v48  ;;  %v4837_v58 = vld [vmem:[%s8294_s1 + $0x6f8] sm:$0xf0]  ;;  %v4323_v59 = vld [vmem:[%s8294_s1 + $0x2b8] sm:$0xf] }
 0x1a8   : > { %v5075_v60 = vld [vmem:[%s8294_s1 + $0x2f4] sm:$0xf0]  ;;  %v4709_v51 = vld [vmem:[%s8294_s1 + $0x5f8] sm:$0xf0] }
 0x1a9   : > { %2511 = vmatmul.bf16.gmra.mxu1 %v5933_v50  ;;  %v2909_v0 = vmax.f32 %v2281_v61, 0.0  ;;  %2569 = vmatmul.bf16.gmra.mxu3 %v5933_v50  ;;  %v3032_v38 = vadd.f32 %v3031_v52, %v2894_v63  ;;  %v5067_v52 = vld [vmem:[%s8294_s1 + $0x2bc] sm:$0xf] }
 0x1aa   : > { %v2309_v2 = vpop.f32.mrf.mxu2 }
 0x1ab   : > { %v3020_v1 = vadd.f32 %v3019_v42, %v2909_v0  ;;  %v2310_v4 = vadd.f32 %v2309_v2, %v6905_v21  ;;  %v4325_v42 = vld [vmem:[%s8294_s1 + $0x2f8] sm:$0xf0] }
 0x1ac   : > { %v2338_v5 = vpop.f32.mrf.mxu3  ;;  %v2253_v6 = vpop.f32.mrf.mxu0 }
 0x1ad   : > { %v2254_v8 = vadd.f32 %v2253_v6, %v6873_v56  ;;  %v2339_v12 = vadd.f32 %v2338_v5, %v2310_v4  ;;  %v4451_v56 = vld [vmem:[%s8294_s1 + $0x3b8] sm:$0xf]  ;;  %v4840_v4 = vor.u32 %v5195_v41, %v4837_v58  ;;  %v4324_v5 = vor.u32 %v5075_v60, %v4323_v59  ;;  %v5051_v6 = vld [vmem:[%s8294_s1 + $0x23c] sm:$0xf] }
 0x1ae   : > { %v2282_v9 = vpop.f32.mrf.mxu1  ;;  %v4452_v17 = vor.u32 %v5107_v14, %v4451_v56 }
 0x1af   : > { %v2283_v15 = vadd.f32 %v2282_v9, %v2254_v8  ;;  %v2910_v62 = vmax.f32 %v2339_v12, 0.0  ;;  %v4261_v8 = vld [vmem:[%s8294_s1 + $0x278] sm:$0xf0]  ;;  %2780 = vmatpush.bf16.msrb.mxu3 %v4840_v4 }
 0x1b0   : > { %2691 = vmatpush.bf16.msrb.mxu0 %v4452_v17  ;;  %v4773_v12 = vld [vmem:[%s8294_s1 + $0x678] sm:$0xf0]  ;;  %v4264_v14 = vor.u32 %v5051_v6, %v4261_v8  ;;  %v5171_v6 = vld [vmem:[%s8294_s1 + $0x5f4] sm:$0xf0] }
 0x1b1   : > { %v2925_v29 = vmax.f32 %v2283_v15, 0.0  ;;  %v3033_v55 = vadd.f32 %v3032_v38, %v2910_v62  ;;  %v4835_v38 = vld [vmem:[%s8294_s1 + $0x6b8] sm:$0xf]  ;;  %v4776_v16 = vor.u32 %v5179_v25, %v4773_v12  ;;  %v5019_v8 = vld [vmem:[%s8294_s1 + $0x13c] sm:$0xf] }
 0x1b2   : > { %v2311_v46 = vpop.f32.mrf.mxu2  ;;  %v4133_v25 = vld [vmem:[%s8294_s1 + $0x178] sm:$0xf0] }
 0x1b3   : > { %v3021_v45 = vadd.f32 %v3020_v1, %v2925_v29  ;;  %v2312_v53 = vadd.f32 %v2311_v46, %v6905_v21  ;;  %v4328_v21 = vor.u32 %v5067_v52, %v4325_v42  ;;  %v5203_v1 = vld [vmem:[%s8294_s1 + $0x6f4] sm:$0xf0]  ;;  %2781 = vmatpush.bf16.msrb.mxu3 %v4776_v16  ;;  %v4712_v42 = vor.u32 %v5163_v43, %v4709_v51  ;;  %v5147_v12 = vld [vmem:[%s8294_s1 + $0x53c] sm:$0xf] }
 0x1b4   : > { %v2340_v54 = vpop.f32.mrf.mxu3  ;;  %v2352_v57 = vpop.f32.mrf.mxu0  ;;  %2692 = vmatpush.bf16.msrb.mxu0 %v4388_v47  ;;  %v4836_v11 = vor.u32 %v5203_v1, %v4835_v38  ;;  %v4200_v47 = vor.u32 %v5035_v3, %v4197_v40  ;;  %v4131_v3 = vld [vmem:[%s8294_s1 + $0x138] sm:$0xf]  ;;  %v4069_v51 = vld [vmem:[%s8294_s1 + $0xf8] sm:$0xf0] }
 0x1b5   : > { %v3022_v61 = vrot.slane %v3021_v45, 4  ;;  %v2353_v63 = vadd.f32 %v2352_v57, %v7084_v30  ;;  %v2341_v2 = vadd.f32 %v2340_v54, %v2312_v53  ;;  %2751 = vmatpush.bf16.msrb.mxu2 %v4328_v21 }
 0x1b6   : > { %v2381_v0 = vpop.f32.mrf.mxu1  ;;  %2722 = vmatpush.bf16.msrb.mxu1 %v4836_v11 }
 0x1b7   : > { %v3023_v9 = vadd.f32 %v3022_v61, %v3021_v45  ;;  %v2382_v10 = vadd.f32 %v2381_v0, %v2353_v63  ;;  %2583 = vmatmul.bf16.vlgmr.msra.gmra.mxu0 %v5682_v44  ;;  %v2926_v13 = vmax.f32 %v2341_v2, 0.0  ;;  %2641 = vmatmul.bf16.vlgmr.msra.gmra.mxu2 %v5682_v44  ;;  %v4195_v61 = vld [vmem:[%s8294_s1 + $0x1b8] sm:$0xf] }
 0x1b8   : > { %2693 = vmatpush.bf16.msrb.mxu0 %v4324_v5  ;;  %2782 = vmatpush.bf16.msrb.mxu3 %v4712_v42  ;;  %v5043_v63 = vld [vmem:[%s8294_s1 + $0x1f4] sm:$0xf0] }
 0x1b9   : > { %2612 = vmatmul.bf16.vlgmr.msra.gmra.mxu1 %v5693_v49  ;;  %v3024_v56 = vrot.slane %v3023_v9, 2  ;;  %2670 = vmatmul.bf16.vlgmr.msra.gmra.mxu3 %v5693_v49  ;;  %v3034_v15 = vadd.f32 %v3033_v55, %v2926_v13  ;;  %v2815_v54 = vmax.f32 %v2382_v10, 0.0  ;;  %v4707_v0 = vld [vmem:[%s8294_s1 + $0x5b8] sm:$0xf]  ;;  %v4196_v5 = vor.u32 %v5043_v63, %v4195_v61  ;;  %v4645_v13 = vld [vmem:[%s8294_s1 + $0x578] sm:$0xf0] }
 0x1ba   : > { %v2410_v17 = vpop.f32.mrf.mxu2  ;;  %2752 = vmatpush.bf16.msrb.mxu2 %v4264_v14  ;;  %2723 = vmatpush.bf16.msrb.mxu1 %v4772_v37  ;;  %v4708_v11 = vor.u32 %v5171_v6, %v4707_v0  ;;  %v4648_v16 = vor.u32 %v5147_v12, %v4645_v13  ;;  %v5011_v61 = vld [vmem:[%s8294_s1 + $0xf4] sm:$0xf0] }
 0x1bb   : > { %v3025_v62 = vadd.f32 %v3024_v56, %v3023_v9  ;;  %v3035_v26 = vrot.slane %v3034_v15, 4  ;;  %v2411_v27 = vadd.f32 %v2410_v17, %v7143_v32  ;;  %v4579_v63 = vld [vmem:[%s8294_s1 + $0x4b8] sm:$0xf] }
 0x1bc   : > { %v2439_v24 = vpop.f32.mrf.mxu3  ;;  %v2354_v29 = vpop.f32.mrf.mxu0  ;;  %2694 = vmatpush.bf16.msrb.mxu0 %v4260_v31  ;;  %2783 = vmatpush.bf16.msrb.mxu3 %v4648_v16 }
 0x1bd   : > { %v2355_v55 = vadd.f32 %v2354_v29, %v7084_v30  ;;  %v3036_v45 = vadd.f32 %v3035_v26, %v3034_v15  ;;  %v2440_v46 = vadd.f32 %v2439_v24, %v2411_v27  ;;  %v3026_v41 = vrot.slane %v3025_v62, 1 }
 0x1be   : > { %v2383_v35 = vpop.f32.mrf.mxu1  ;;  %2753 = vmatpush.bf16.msrb.mxu2 %v4200_v47  ;;  %v4136_v15 = vor.u32 %v5019_v8, %v4133_v25  ;;  %2724 = vmatpush.bf16.msrb.mxu1 %v4708_v11  ;;  %v5003_v47 = vld [vmem:[%s8294_s1 + $0xbc] sm:$0xf] }
 0x1bf   : > { %v2384_v52 = vadd.f32 %v2383_v35, %v2355_v55  ;;  %v3037_v53 = vrot.slane %v3036_v45, 2  ;;  %v3027_v21 = vadd.f32 %v3026_v41, %v3025_v62  ;;  %v2816_v23 = vmax.f32 %v2440_v46, 0.0  ;;  %v5027_v55 = vld [vmem:[%s8294_s1 + $0x174] sm:$0xf0]  ;;  %v4987_v8 = vld [vmem:[%s8294_s1 + $0x3c] sm:$0xf] }
 0x1c0   : > { %2695 = vmatpush.bf16.msrb.mxu0 %v4196_v5  ;;  %v4643_v35 = vld [vmem:[%s8294_s1 + $0x538] sm:$0xf]  ;;  %v4072_v41 = vor.u32 %v5003_v47, %v4069_v51 }
 0x1c1   : > { %v2831_v57 = vmax.f32 %v2384_v52, 0.0  ;;  %v3038_v58 = vadd.f32 %v3037_v53, %v3036_v45  ;;  %v3166_v20 = vrot.slane %v3027_v21, 2  ;;  %v4132_v45 = vor.u32 %v5027_v55, %v4131_v3  ;;  %v5155_v46 = vld [vmem:[%s8294_s1 + $0x574] sm:$0xf0]  ;;  %v5131_v53 = vld [vmem:[%s8294_s1 + $0x4bc] sm:$0xf] }
 0x1c2   : > { %v2412_v60 = vpop.f32.mrf.mxu2  ;;  %2754 = vmatpush.bf16.msrb.mxu2 %v4136_v15  ;;  %v4644_v42 = vor.u32 %v5155_v46, %v4643_v35  ;;  %v4995_v15 = vld [vmem:[%s8294_s1 + $0x74] sm:$0xf0] }
 0x1c3   : > { %v3041_v59 = vadd.f32 %v2831_v57, %v2815_v54  ;;  %v3039_v38 = vrot.slane %v3038_v58, 1  ;;  %v2413_v1 = vadd.f32 %v2412_v60, %v7143_v32  ;;  %v4581_v54 = vld [vmem:[%s8294_s1 + $0x4f8] sm:$0xf0]  ;;  %v4067_v60 = vld [vmem:[%s8294_s1 + $0xb8] sm:$0xf] }
 0x1c4   : > { %v2441_v2 = vpop.f32.mrf.mxu3  ;;  %v2357_v4 = vpop.f32.mrf.mxu0  ;;  %2696 = vmatpush.bf16.msrb.mxu0 %v4132_v45  ;;  %2725 = vmatpush.bf16.msrb.mxu1 %v4644_v42  ;;  %v4068_v21 = vor.u32 %v5011_v61, %v4067_v60  ;;  %v3224_v42 = vld [vmem:[%s8296_s3 + $0x78] sm:$0xff] }
 0x1c5   : > { %v2358_v9 = vadd.f32 %v2357_v4, %v7084_v30  ;;  %v3040_v56 = vadd.f32 %v3039_v38, %v3038_v58  ;;  %v2442_v14 = vadd.f32 %v2441_v2, %v2413_v1  ;;  %v4584_v58 = vor.u32 %v5131_v53, %v4581_v54  ;;  %v5139_v38 = vld [vmem:[%s8294_s1 + $0x4f4] sm:$0xf0] }
 0x1c6   : > { %v2386_v10 = vpop.f32.mrf.mxu1  ;;  %2755 = vmatpush.bf16.msrb.mxu2 %v4072_v41  ;;  %v4580_v2 = vor.u32 %v5139_v38, %v4579_v63  ;;  %v3240_v41 = vld [vmem:[%s8296_s3 + $0xf8] sm:$0xff]  ;;  %v3223_v63 = vld [vmem:[%s8296_s3 + $0x70] sm:$0xff] }
 0x1c7   : > { %v2387_v17 = vadd.f32 %v2386_v10, %v2358_v9  ;;  %2588 = vmatmul.bf16.gmra.mxu0 %v5790_v34  ;;  %v3167_v22 = vrot.slane %v3040_v56, 1  ;;  %v2832_v62 = vmax.f32 %v2442_v14, 0.0  ;;  %2646 = vmatmul.bf16.gmra.mxu2 %v5790_v34  ;;  %v4005_v9 = vld [vmem:[%s8294_s1 + $0x78] sm:$0xf0]  ;;  %v4003_v14 = vld [vmem:[%s8294_s1 + $0x38] sm:$0xf] }
 0x1c8   : > { %2784 = vmatpush.bf16.msrb.mxu3 %v4584_v58  ;;  %2697 = vmatpush.bf16.msrb.mxu0 %v4068_v21  ;;  %v5115_v10 = vld [vmem:[%s8294_s1 + $0x43c] sm:$0xf]  ;;  %v4008_v13 = vor.u32 %v4987_v8, %v4005_v9  ;;  %v3255_v21 = vld [vmem:[%s8296_s3 + $0x170] sm:$0xff]  ;;  %v3254_v9 = vld [vmem:[%s8296_s3 + $0x168] sm:$0xff] }
 0x1c9   : > { %2617 = vmatmul.bf16.gmra.mxu1 %v5801_v39  ;;  %v2847_v26 = vmax.f32 %v2387_v17, 0.0  ;;  %2675 = vmatmul.bf16.gmra.mxu3 %v5801_v39  ;;  %v3184_v27 = vsel %vm3183_vm4, %v3166_v20, %v3167_v22  ;;  %v3054_v24 = vadd.f32 %v2832_v62, %v2816_v23  ;;  %v4517_v56 = vld [vmem:[%s8294_s1 + $0x478] sm:$0xf0]  ;;  %v4004_v22 = vor.u32 %v4995_v15, %v4003_v14  ;;  %v4515_v23 = vld [vmem:[%s8294_s1 + $0x438] sm:$0xf]  ;;  %v3269_v14 = vld [vmem:[%s8296_s3 + $0x1e0] sm:$0xff] }
 0x1ca   : > { %v3186_v29 = vsel %vm3185_vm5, %v6965_v28, %v3184_v27  ;;  %v2415_v33 = vpop.f32.mrf.mxu2  ;;  %2726 = vmatpush.bf16.msrb.mxu1 %v4580_v2  ;;  %v4520_v20 = vor.u32 %v5115_v10, %v4517_v56  ;;  %v5123_v62 = vld [vmem:[%s8294_s1 + $0x474] sm:$0xf0]  ;;  %2756 = vmatpush.bf16.msrb.mxu2 %v4008_v13  ;;  %v3271_v2 = vld [vmem:[%s8296_s3 + $0x1f0] sm:$0xff]  ;;  %v3270_v10 = vld [vmem:[%s8296_s3 + $0x1e8] sm:$0xff] }
 0x1cb   : > { %v3042_v31 = vadd.f32 %v3041_v59, %v2847_v26  ;;  %v7216_v37 = vsel %vm3187_vm6, %v6732_v36, %v3186_v29  ;;  %v2416_v28 = vadd.f32 %v2415_v33, %v7143_v32  ;;  %v4516_v27 = vor.u32 %v5123_v62, %v4515_v23  ;;  %v3256_v53 = vld [vmem:[%s8296_s3 + $0x178] sm:$0xff]  ;;  %v3253_v56 = vld [vmem:[%s8296_s3 + $0x160] sm:$0xff] }
 0x1cc   : > { %v2444_v40 = vpop.f32.mrf.mxu3  ;;  %v2359_v43 = vpop.f32.mrf.mxu0  ;;  %2785 = vmatpush.bf16.msrb.mxu3 %v4520_v20  ;;  %2698 = vmatpush.bf16.msrb.mxu0 %v4004_v22  ;;  %v3272_v58 = vld [vmem:[%s8296_s3 + $0x1f8] sm:$0xff] }
 0x1cd   : > { %v2360_v36 = vadd.f32 %v2359_v43, %v7084_v30  ;;  %v2445_v57 = vadd.f32 %v2444_v40, %v2416_v28  ;;  %v3252_v23 = vld [vmem:[%s8296_s3 + $0x158] sm:$0xff] }
 0x1ce   : > { %v2388_v52 = vpop.f32.mrf.mxu1  ;;  %2727 = vmatpush.bf16.msrb.mxu1 %v4516_v27  ;;  %3540 = vmatpush.msra.mxu2 %v3256_v53  ;;  %v3268_v62 = vld [vmem:[%s8296_s3 + $0x1d8] sm:$0xff] }
 0x1cf   : > { %v2389_v59 = vadd.f32 %v2388_v52, %v2360_v36  ;;  %v2848_v0 = vmax.f32 %v2445_v57, 0.0 }
 0x1d0   : > { %3500 = vmatpush.msra.mxu0 %v3224_v42  ;;  %3560 = vmatpush.msra.mxu3 %v3272_v58  ;;  %v3249_v42 = vld [vmem:[%s8296_s3 + $0x140] sm:$0xff] }
 0x1d1   : > { %v2863_v1 = vmax.f32 %v2389_v59, 0.0  ;;  %v3055_v4 = vadd.f32 %v3054_v24, %v2848_v0  ;;  %v3239_v0 = vld [vmem:[%s8296_s3 + $0xf0] sm:$0xff]  ;;  %3541 = vmatpush.msra.mxu2 %v3255_v21 }
 0x1d2   : > { %v2417_v6 = vpop.f32.mrf.mxu2  ;;  %3520 = vmatpush.msra.mxu1 %v3240_v41  ;;  %3501 = vmatpush.msra.mxu0 %v3223_v63  ;;  %v3265_v41 = vld [vmem:[%s8296_s3 + $0x1c0] sm:$0xff] }
 0x1d3   : > { %v3043_v5 = vadd.f32 %v3042_v31, %v2863_v1  ;;  %v2418_v11 = vadd.f32 %v2417_v6, %v7143_v32  ;;  %3561 = vmatpush.msra.mxu3 %v3271_v2  ;;  %v3238_v6 = vld [vmem:[%s8296_s3 + $0xe8] sm:$0xff]  ;;  %3542 = vmatpush.msra.mxu2 %v3254_v9 }
 0x1d4   : > { %v2446_v25 = vpop.f32.mrf.mxu3  ;;  %v2362_v12 = vpop.f32.mrf.mxu0  ;;  %3521 = vmatpush.msra.mxu1 %v3239_v0 }
 0x1d5   : > { %v2363_v16 = vadd.f32 %v2362_v12, %v7084_v30  ;;  %v2447_v26 = vadd.f32 %v2446_v25, %v2418_v11  ;;  %v3221_v25 = vld [vmem:[%s8296_s3 + $0x60] sm:$0xff]  ;;  %3562 = vmatpush.msra.mxu3 %v3270_v10  ;;  %3543 = vmatpush.msra.mxu2 %v3253_v56  ;;  %v7416_v10 = vperm.slane %v7047_v7, 3 }
 0x1d6   : > { %v2391_v17 = vpop.f32.mrf.mxu1  ;;  %3522 = vmatpush.msra.mxu1 %v3238_v6  ;;  %v3237_v12 = vld [vmem:[%s8296_s3 + $0xe0] sm:$0xff]  ;;  %v3263_v6 = vld [vmem:[%s8296_s3 + $0x1b0] sm:$0xff] }
 0x1d7   : > { %v2392_v24 = vadd.f32 %v2391_v17, %v2363_v16  ;;  %2593 = vmatmul.bf16.gmra.mxu0 %v5877_v18  ;;  %v2864_v29 = vmax.f32 %v2447_v26, 0.0  ;;  %2651 = vmatmul.bf16.gmra.mxu2 %v5877_v18  ;;  %v3220_v16 = vld [vmem:[%s8296_s3 + $0x58] sm:$0xff]  ;;  %v3213_v56 = vld [vmem:[%s8296_s3 + $0x20] sm:$0xff] }
 0x1d8   : > { %v3236_v17 = vld [vmem:[%s8296_s3 + $0xd8] sm:$0xff]  ;;  %3523 = vmatpush.msra.mxu1 %v3237_v12  ;;  %3563 = vmatpush.msra.mxu3 %v3269_v14  ;;  %v3246_v12 = vld [vmem:[%s8296_s3 + $0x128] sm:$0xff] }
 0x1d9   : > { %2622 = vmatmul.bf16.gmra.mxu1 %v5879_v19  ;;  %v2879_v31 = vmax.f32 %v2392_v24, 0.0  ;;  %2680 = vmatmul.bf16.gmra.mxu3 %v5879_v19  ;;  %v3056_v33 = vadd.f32 %v3055_v4, %v2864_v29  ;;  %v3219_v29 = vld [vmem:[%s8296_s3 + $0x50] sm:$0xff] }
 0x1da   : > { %v2420_v55 = vpop.f32.mrf.mxu2  ;;  %3524 = vmatpush.msra.mxu1 %v3236_v17  ;;  %3544 = vmatpush.msra.mxu2 %v3252_v23 }
 0x1db   : > { %v3044_v3 = vadd.f32 %v3043_v5, %v2879_v31  ;;  %v2421_v35 = vadd.f32 %v2420_v55, %v7143_v32  ;;  %v3222_v5 = vld [vmem:[%s8296_s3 + $0x68] sm:$0xff]  ;;  %v3235_v31 = vld [vmem:[%s8296_s3 + $0xd0] sm:$0xff]  ;;  %3564 = vmatpush.msra.mxu3 %v3268_v62 }
 0x1dc   : > { %v2449_v28 = vpop.f32.mrf.mxu3  ;;  %v2364_v40 = vpop.f32.mrf.mxu0  ;;  %3502 = vmatpush.msra.mxu0 %v3222_v5  ;;  %v3251_v55 = vld [vmem:[%s8296_s3 + $0x150] sm:$0xff]  ;;  %3525 = vmatpush.msra.mxu1 %v3235_v31  ;;  %v3260_v31 = vld [vmem:[%s8296_s3 + $0x198] sm:$0xff] }
 0x1dd   : > { %v2365_v43 = vadd.f32 %v2364_v40, %v7084_v30  ;;  %v2450_v46 = vadd.f32 %v2449_v28, %v2421_v35  ;;  %v3267_v35 = vld [vmem:[%s8296_s3 + $0x1d0] sm:$0xff]  ;;  %v3218_v40 = vld [vmem:[%s8296_s3 + $0x48] sm:$0xff]  ;;  %3545 = vmatpush.msra.mxu2 %v3251_v55 }
 0x1de   : > { %v2393_v45 = vpop.f32.mrf.mxu1  ;;  %3503 = vmatpush.msra.mxu0 %v3221_v25  ;;  %3565 = vmatpush.msra.mxu3 %v3267_v35  ;;  %v3247_v5 = vld [vmem:[%s8296_s3 + $0x130] sm:$0xff]  ;;  %v3230_v25 = vld [vmem:[%s8296_s3 + $0xa8] sm:$0xff] }
 0x1df   : > { %v2394_v47 = vadd.f32 %v2393_v45, %v2365_v43  ;;  %v2880_v51 = vmax.f32 %v2450_v46, 0.0  ;;  %v3250_v45 = vld [vmem:[%s8296_s3 + $0x148] sm:$0xff]  ;;  %v3211_v55 = vld [vmem:[%s8296_s3 + $0x10] sm:$0xff] }
 0x1e0   : > { %3504 = vmatpush.msra.mxu0 %v3220_v16  ;;  %v3266_v46 = vld [vmem:[%s8296_s3 + $0x1c8] sm:$0xff]  ;;  %3546 = vmatpush.msra.mxu2 %v3250_v45  ;;  %v3261_v16 = vld [vmem:[%s8296_s3 + $0x1a0] sm:$0xff]  ;;  %v3227_v35 = vld [vmem:[%s8296_s3 + $0x90] sm:$0xff] }
 0x1e1   : > { %v2895_v36 = vmax.f32 %v2394_v47, 0.0  ;;  %v3057_v52 = vadd.f32 %v3056_v33, %v2880_v51  ;;  %v3217_v51 = vld [vmem:[%s8296_s3 + $0x40] sm:$0xff]  ;;  %3566 = vmatpush.msra.mxu3 %v3266_v46  ;;  %v3210_v45 = vld [vmem:[%s8296_s3 + $0x8] sm:$0xff] }
 0x1e2   : > { %v2422_v57 = vpop.f32.mrf.mxu2  ;;  %3505 = vmatpush.msra.mxu0 %v3219_v29  ;;  %3547 = vmatpush.msra.mxu2 %v3249_v42  ;;  %v3244_v29 = vld [vmem:[%s8296_s3 + $0x118] sm:$0xff]  ;;  %v3226_v46 = vld [vmem:[%s8296_s3 + $0x88] sm:$0xff]  ;;  %v3225_v42 = vld [vmem:[%s8296_s3 + $0x80] sm:$0xff] }
 0x1e3   : > { %v3045_v54 = vadd.f32 %v3044_v3, %v2895_v36  ;;  %v2423_v59 = vadd.f32 %v2422_v57, %v7143_v32  ;;  %v3233_v36 = vld [vmem:[%s8296_s3 + $0xc0] sm:$0xff]  ;;  %v3232_v57 = vld [vmem:[%s8296_s3 + $0xb8] sm:$0xff]  ;;  %3567 = vmatpush.msra.mxu3 %v3265_v41 }
 0x1e4   : > { %v2451_v60 = vpop.f32.mrf.mxu3  ;;  %v2367_v61 = vpop.f32.mrf.mxu0  ;;  %3506 = vmatpush.msra.mxu0 %v3218_v40  ;;  %v3259_v40 = vld [vmem:[%s8296_s3 + $0x190] sm:$0xff] }
 0x1e5   : > { %v2368_v38 = vadd.f32 %v2367_v61, %v7084_v30  ;;  %v2452_v4 = vadd.f32 %v2451_v60, %v2423_v59  ;;  %v3248_v60 = vld [vmem:[%s8296_s3 + $0x138] sm:$0xff] }
 0x1e6   : > { %v2396_v1 = vpop.f32.mrf.mxu1  ;;  %3507 = vmatpush.msra.mxu0 %v3217_v51  ;;  %v3264_v61 = vld [vmem:[%s8296_s3 + $0x1b8] sm:$0xff]  ;;  %3548 = vmatpush.msra.mxu2 %v3248_v60  ;;  %v3258_v51 = vld [vmem:[%s8296_s3 + $0x188] sm:$0xff] }
 0x1e7   : > { %v2397_v8 = vadd.f32 %v2396_v1, %v2368_v38  ;;  %2598 = vmatmul.bf16.gmra.mxu0 %v5931_v48  ;;  %v2896_v11 = vmax.f32 %v2452_v4, 0.0  ;;  %2656 = vmatmul.bf16.gmra.mxu2 %v5931_v48  ;;  %v3231_v38 = vld [vmem:[%s8296_s3 + $0xb0] sm:$0xff] }
 0x1e8   : > { %3568 = vmatpush.msra.mxu3 %v3264_v61  ;;  %3549 = vmatpush.msra.mxu2 %v3247_v5  ;;  %v3336_v5 = vld [vmem:[%s8296_s3 + $0x3f8] sm:$0xff] }
 0x1e9   : > { %2627 = vmatmul.bf16.gmra.mxu1 %v5933_v50  ;;  %v2911_v13 = vmax.f32 %v2397_v8, 0.0  ;;  %2685 = vmatmul.bf16.gmra.mxu3 %v5933_v50  ;;  %v3058_v15 = vadd.f32 %v3057_v52, %v2896_v11  ;;  %v3214_v11 = vld [vmem:[%s8296_s3 + $0x28] sm:$0xff] }
 0x1ea   : > { %v2425_v22 = vpop.f32.mrf.mxu2  ;;  %3569 = vmatpush.msra.mxu3 %v3263_v6  ;;  %3550 = vmatpush.msra.mxu2 %v3246_v12  ;;  %v3303_v12 = vld [vmem:[%s8296_s3 + $0x2f0] sm:$0xff] }
 0x1eb   : > { %v3046_v20 = vadd.f32 %v3045_v54, %v2911_v13  ;;  %v2426_v26 = vadd.f32 %v2425_v22, %v7143_v32  ;;  %v3216_v54 = vld [vmem:[%s8296_s3 + $0x38] sm:$0xff] }
 0x1ec   : > { %v2454_v27 = vpop.f32.mrf.mxu3  ;;  %v2369_v24 = vpop.f32.mrf.mxu0  ;;  %3508 = vmatpush.msra.mxu0 %v3216_v54  ;;  %v3257_v54 = vld [vmem:[%s8296_s3 + $0x180] sm:$0xff] }
 0x1ed   : > { %v2370_v33 = vadd.f32 %v2369_v24, %v7084_v30  ;;  %v2455_v28 = vadd.f32 %v2454_v27, %v2426_v26  ;;  %v3234_v30 = vld [vmem:[%s8296_s3 + $0xc8] sm:$0xff]  ;;  %v3212_v26 = vld [vmem:[%s8296_s3 + $0x18] sm:$0xff] }
 0x1ee   : > { %v2398_v3 = vpop.f32.mrf.mxu1  ;;  %3526 = vmatpush.msra.mxu1 %v3234_v30  ;;  %v3228_v27 = vld [vmem:[%s8296_s3 + $0x98] sm:$0xff] }
 0x1ef   : > { %v2399_v43 = vadd.f32 %v2398_v3, %v2370_v33  ;;  %v2912_v47 = vmax.f32 %v2455_v28, 0.0  ;;  %v3243_v28 = vld [vmem:[%s8296_s3 + $0x110] sm:$0xff] }
 0x1f0   : > { %3527 = vmatpush.msra.mxu1 %v3233_v36 }
 0x1f1   : > { %v2927_v52 = vmax.f32 %v2399_v43, 0.0  ;;  %v3059_v53 = vadd.f32 %v3058_v15, %v2912_v47  ;;  %v3245_v15 = vld [vmem:[%s8296_s3 + $0x120] sm:$0xff]  ;;  %v3242_v47 = vld [vmem:[%s8296_s3 + $0x108] sm:$0xff] }
 0x1f2   : > { %v2427_v59 = vpop.f32.mrf.mxu2  ;;  %3528 = vmatpush.msra.mxu1 %v3232_v57  ;;  %3551 = vmatpush.msra.mxu2 %v3245_v15  ;;  %v3318_v15 = vld [vmem:[%s8296_s3 + $0x368] sm:$0xff] }
 0x1f3   : > { %v3047_v58 = vadd.f32 %v3046_v20, %v2927_v52  ;;  %v2428_v63 = vadd.f32 %v2427_v59, %v7143_v32  ;;  %v3215_v32 = vld [vmem:[%s8296_s3 + $0x30] sm:$0xff]  ;;  %v3209_v52 = vld [vmem:[%s8296_s3] sm:$0xff] }
 0x1f4   : > { %v2456_v0 = vpop.f32.mrf.mxu3  ;;  %v7396_v21 = vpop.f32.mrf.mxu0  ;;  %3529 = vmatpush.msra.mxu1 %v3231_v38  ;;  %3509 = vmatpush.msra.mxu0 %v3215_v32  ;;  %v3320_v32 = vld [vmem:[%s8296_s3 + $0x378] sm:$0xff] }
 0x1f5   : > { %v3048_v1 = vrot.slane %v3047_v58, 4  ;;  %v2457_v4 = vadd.f32 %v2456_v0, %v2428_v63  ;;  %3552 = vmatpush.msra.mxu2 %v3244_v29  ;;  %v3304_v63 = vld [vmem:[%s8296_s3 + $0x2f8] sm:$0xff]  ;;  %v3317_v29 = vld [vmem:[%s8296_s3 + $0x360] sm:$0xff] }
 0x1f6   : > { %v7401_v2 = vpop.f32.mrf.mxu1  ;;  %3510 = vmatpush.msra.mxu0 %v3214_v11  ;;  %3530 = vmatpush.msra.mxu1 %v3230_v25  ;;  %v3287_v25 = vld [vmem:[%s8296_s3 + $0x270] sm:$0xff] }
 0x1f7   : > { %2699 = vmatmul.bf16.vlgmr.msrb.gmra.mxu0 %v5682_v44  ;;  %v3049_v8 = vadd.f32 %v3048_v1, %v3047_v58  ;;  %v2928_v9 = vmax.f32 %v2457_v4, 0.0  ;;  %2757 = vmatmul.bf16.vlgmr.msrb.gmra.mxu2 %v5682_v44  ;;  %v3262_v44 = vld [vmem:[%s8296_s3 + $0x1a8] sm:$0xff]  ;;  %v3288_v4 = vld [vmem:[%s8296_s3 + $0x278] sm:$0xff] }
 0x1f8   : > { %3570 = vmatpush.msra.mxu3 %v3262_v44  ;;  %3511 = vmatpush.msra.mxu0 %v3213_v56  ;;  %v3319_v44 = vld [vmem:[%s8296_s3 + $0x370] sm:$0xff] }
 0x1f9   : > { %2728 = vmatmul.bf16.vlgmr.msrb.gmra.mxu1 %v5693_v49  ;;  %2786 = vmatmul.bf16.vlgmr.msrb.gmra.mxu3 %v5693_v49  ;;  %v3060_v13 = vadd.f32 %v3059_v53, %v2928_v9  ;;  %v3229_v49 = vld [vmem:[%s8296_s3 + $0xa0] sm:$0xff]  ;;  %v3050_v17 = vrot.slane %v3049_v8, 2 }
 0x1fa   : > { %v2526_v14 = vpop.f32.mrf.mxu2  ;;  %3531 = vmatpush.msra.mxu1 %v3229_v49  ;;  %3571 = vmatpush.msra.mxu3 %v3261_v16  ;;  %v3241_v53 = vld [vmem:[%s8296_s3 + $0x100] sm:$0xff]  ;;  %v3302_v49 = vld [vmem:[%s8296_s3 + $0x2e8] sm:$0xff] }
 0x1fb   : > { %v3061_v20 = vrot.slane %v3060_v13, 4  ;;  %v2527_v22 = vadd.f32 %v2526_v14, %v7416_v10  ;;  %3512 = vmatpush.msra.mxu0 %v3212_v26  ;;  %v3051_v30 = vadd.f32 %v3050_v17, %v3049_v8  ;;  %3553 = vmatpush.msra.mxu2 %v3243_v28  ;;  %v3334_v16 = vld [vmem:[%s8296_s3 + $0x3e8] sm:$0xff]  ;;  %v7556_v26 = vperm.slane %v7047_v7, 2  ;;  %v3300_v7 = vld [vmem:[%s8296_s3 + $0x2d8] sm:$0xff]  ;;  %v3283_v28 = vld [vmem:[%s8296_s3 + $0x250] sm:$0xff] }
 0x1fc   : > { %v2555_v23 = vpop.f32.mrf.mxu3  ;;  %v7444_v62 = vpop.f32.mrf.mxu0  ;;  %3532 = vmatpush.msra.mxu1 %v3228_v27  ;;  %3572 = vmatpush.msra.mxu3 %v3260_v31  ;;  %v3333_v31 = vld [vmem:[%s8296_s3 + $0x3e0] sm:$0xff] }
 0x1fd   : > { %v3062_v33 = vadd.f32 %v3061_v20, %v3060_v13  ;;  %v7460_v3 = vadd.f32 %v2555_v23, %v2527_v22  ;;  %3513 = vmatpush.msra.mxu0 %v3211_v55  ;;  %v3052_v57 = vrot.slane %v3051_v30, 1  ;;  %3554 = vmatpush.msra.mxu2 %v3242_v47  ;;  %v3335_v13 = vld [vmem:[%s8296_s3 + $0x3f0] sm:$0xff]  ;;  %v3285_v22 = vld [vmem:[%s8296_s3 + $0x260] sm:$0xff]  ;;  %v3316_v55 = vld [vmem:[%s8296_s3 + $0x358] sm:$0xff] }
 0x1fe   : > { %v7452_v24 = vpop.f32.mrf.mxu1  ;;  %3533 = vmatpush.msra.mxu1 %v3227_v35  ;;  %3573 = vmatpush.msra.mxu3 %v3259_v40  ;;  %v3301_v23 = vld [vmem:[%s8296_s3 + $0x2e0] sm:$0xff]  ;;  %v3332_v35 = vld [vmem:[%s8296_s3 + $0x3d8] sm:$0xff]  ;;  %v2469_v40 = vadd.f32 %v7396_v21, %v7556_v26  ;;  %v3282_v21 = vld [vmem:[%s8296_s3 + $0x248] sm:$0xff] }
 0x1ff   : > { %v3063_v43 = vrot.slane %v3062_v33, 2  ;;  %3514 = vmatpush.msra.mxu0 %v3210_v45  ;;  %3555 = vmatpush.msra.mxu2 %v3241_v53  ;;  %v3053_v6 = vadd.f32 %v3052_v57, %v3051_v30  ;;  %v2818_v9 = vmax.f32 %v7460_v3, 0.0  ;;  %v2471_v3 = vadd.f32 %v7444_v62, %v7556_v26  ;;  %v3299_v62 = vld [vmem:[%s8296_s3 + $0x2d0] sm:$0xff]  ;;  %v3298_v47 = vld [vmem:[%s8296_s3 + $0x2c8] sm:$0xff] }
 0x200   : > { %3534 = vmatpush.msra.mxu1 %v3226_v46  ;;  %3574 = vmatpush.msra.mxu3 %v3258_v51  ;;  %v3331_v45 = vld [vmem:[%s8296_s3 + $0x3d0] sm:$0xff] }
 0x201   : > { %v3064_v36 = vadd.f32 %v3063_v43, %v3062_v33  ;;  %3515 = vmatpush.msra.mxu0 %v3209_v52  ;;  %3620 = vmatpush.msrb.mxu2 %v3320_v32  ;;  %v3284_v33 = vld [vmem:[%s8296_s3 + $0x258] sm:$0xff]  ;;  %v3315_v43 = vld [vmem:[%s8296_s3 + $0x350] sm:$0xff]  ;;  %v2500_v51 = vadd.f32 %v7452_v24, %v2471_v3  ;;  %v3297_v24 = vld [vmem:[%s8296_s3 + $0x2c0] sm:$0xff] }
 0x202   : > { %v2528_v41 = vpop.f32.mrf.mxu2  ;;  %3535 = vmatpush.msra.mxu1 %v3225_v42  ;;  %3575 = vmatpush.msra.mxu3 %v3257_v54  ;;  %v3314_v42 = vld [vmem:[%s8296_s3 + $0x348] sm:$0xff] }
 0x203   : > { %v3065_v58 = vrot.slane %v3064_v36, 1  ;;  %v2529_v59 = vadd.f32 %v2528_v41, %v7416_v10  ;;  %3580 = vmatpush.msrb.mxu0 %v3288_v4  ;;  %3621 = vmatpush.msrb.mxu2 %v3319_v44  ;;  %v3330_v41 = vld [vmem:[%s8296_s3 + $0x3c8] sm:$0xff]  ;;  %v3279_v44 = vld [vmem:[%s8296_s3 + $0x230] sm:$0xff] }
 0x204   : > { %v2557_v60 = vpop.f32.mrf.mxu3  ;;  %v7499_v61 = vpop.f32.mrf.mxu0  ;;  %3600 = vmatpush.msrb.mxu1 %v3304_v63  ;;  %3640 = vmatpush.msrb.mxu3 %v3336_v5  ;;  %v3310_v3 = vld [vmem:[%s8296_s3 + $0x328] sm:$0xff] }
 0x205   : > { %v3066_v38 = vadd.f32 %v3065_v58, %v3064_v36  ;;  %v2558_v1 = vadd.f32 %v2557_v60, %v2529_v59  ;;  %3581 = vmatpush.msrb.mxu0 %v3287_v25  ;;  %3622 = vmatpush.msrb.mxu2 %v3318_v15  ;;  %v2474_v30 = vadd.f32 %v7499_v61, %v7556_v26  ;;  %v3312_v25 = vld [vmem:[%s8296_s3 + $0x338] sm:$0xff]  ;;  %v3327_v15 = vld [vmem:[%s8296_s3 + $0x3b0] sm:$0xff] }
 0x206   : > { %v7504_v0 = vpop.f32.mrf.mxu1  ;;  %3601 = vmatpush.msrb.mxu1 %v3303_v12  ;;  %3641 = vmatpush.msrb.mxu3 %v3335_v13  ;;  %v2498_v58 = vadd.f32 %v7401_v2, %v2469_v40  ;;  %v3313_v2 = vld [vmem:[%s8296_s3 + $0x340] sm:$0xff] }
 0x207   : > { %2704 = vmatmul.bf16.gmra.mxu0 %v5790_v34  ;;  %v3168_v8 = vrot.slane %v3066_v38, 7  ;;  %v2834_v11 = vmax.f32 %v2558_v1, 0.0  ;;  %2762 = vmatmul.bf16.gmra.mxu2 %v5790_v34  ;;  %v2503_v59 = vadd.f32 %v7504_v0, %v2474_v30  ;;  %v3281_v38 = vld [vmem:[%s8296_s3 + $0x240] sm:$0xff]  ;;  %v2833_v1 = vmax.f32 %v2500_v51, 0.0  ;;  %v3292_v51 = vld [vmem:[%s8296_s3 + $0x298] sm:$0xff] }
 0x208   : > { %3602 = vmatpush.msrb.mxu1 %v3302_v49  ;;  %3642 = vmatpush.msrb.mxu3 %v3334_v16  ;;  %v3329_v0 = vld [vmem:[%s8296_s3 + $0x3c0] sm:$0xff] }
 0x209   : > { %2733 = vmatmul.bf16.gmra.mxu1 %v5801_v39  ;;  %2791 = vmatmul.bf16.gmra.mxu3 %v5801_v39  ;;  %v7533_v34 = vsel %vm3175_vm0, %v3053_v6, %v3168_v8  ;;  %v7535_v56 = vadd.f32 %v2834_v11, %v2818_v9  ;;  %v3286_v39 = vld [vmem:[%s8296_s3 + $0x268] sm:$0xff]  ;;  %v3280_v6 = vld [vmem:[%s8296_s3 + $0x238] sm:$0xff]  ;;  %v2817_v9 = vmax.f32 %v2498_v58, 0.0  ;;  %v2849_v11 = vmax.f32 %v2503_v59, 0.0  ;;  %v3293_v40 = vld [vmem:[%s8296_s3 + $0x2a0] sm:$0xff] }
 0x20a   : > { %v2531_v14 = vpop.f32.mrf.mxu2  ;;  %3582 = vmatpush.msrb.mxu0 %v3286_v39  ;;  %3603 = vmatpush.msrb.mxu1 %v3301_v23  ;;  %v3296_v8 = vld [vmem:[%s8296_s3 + $0x2b8] sm:$0xff]  ;;  %v3278_v23 = vld [vmem:[%s8296_s3 + $0x228] sm:$0xff]  ;;  %v3307_v59 = vld [vmem:[%s8296_s3 + $0x310] sm:$0xff] }
 0x20b   : > { %3623 = vmatpush.msrb.mxu2 %v3317_v29  ;;  %3643 = vmatpush.msrb.mxu3 %v3333_v31  ;;  %v2532_v46 = vadd.f32 %v2531_v14, %v7416_v10  ;;  %v3067_v13 = vadd.f32 %v2833_v1, %v2817_v9  ;;  %v3311_v14 = vld [vmem:[%s8296_s3 + $0x330] sm:$0xff]  ;;  %v3290_v1 = vld [vmem:[%s8296_s3 + $0x288] sm:$0xff] }
 0x20c   : > { %v2560_v17 = vpop.f32.mrf.mxu3  ;;  %v2475_v20 = vpop.f32.mrf.mxu0  ;;  %3583 = vmatpush.msrb.mxu0 %v3285_v22  ;;  %3604 = vmatpush.msrb.mxu1 %v3300_v7 }
 0x20d   : > { %3624 = vmatpush.msrb.mxu2 %v3316_v55  ;;  %3644 = vmatpush.msrb.mxu3 %v3332_v35  ;;  %v2476_v36 = vadd.f32 %v2475_v20, %v7556_v26  ;;  %v2561_v63 = vadd.f32 %v2560_v17, %v2532_v46  ;;  %v3068_v29 = vadd.f32 %v3067_v13, %v2849_v11  ;;  %v3326_v55 = vld [vmem:[%s8296_s3 + $0x3a8] sm:$0xff]  ;;  %v3273_v11 = vld [vmem:[%s8296_s3 + $0x200] sm:$0xff] }
 0x20e   : > { %v2504_v27 = vpop.f32.mrf.mxu1  ;;  %3584 = vmatpush.msrb.mxu0 %v3284_v33  ;;  %3605 = vmatpush.msrb.mxu1 %v3299_v62  ;;  %v3277_v62 = vld [vmem:[%s8296_s3 + $0x220] sm:$0xff] }
 0x20f   : > { %3625 = vmatpush.msrb.mxu2 %v3315_v43  ;;  %3645 = vmatpush.msrb.mxu3 %v3331_v45  ;;  %v2505_v4 = vadd.f32 %v2504_v27, %v2476_v36  ;;  %v2850_v12 = vmax.f32 %v2561_v63, 0.0  ;;  %v3294_v27 = vld [vmem:[%s8296_s3 + $0x2a8] sm:$0xff]  ;;  %v3309_v45 = vld [vmem:[%s8296_s3 + $0x320] sm:$0xff] }
 0x210   : > { %3585 = vmatpush.msrb.mxu0 %v3283_v28  ;;  %3606 = vmatpush.msrb.mxu1 %v3298_v47  ;;  %v3276_v47 = vld [vmem:[%s8296_s3 + $0x218] sm:$0xff] }
 0x211   : > { %3626 = vmatpush.msrb.mxu2 %v3314_v42  ;;  %3646 = vmatpush.msrb.mxu3 %v3330_v41  ;;  %v2865_v39 = vmax.f32 %v2505_v4, 0.0  ;;  %v3081_v35 = vadd.f32 %v7535_v56, %v2850_v12  ;;  %v3325_v56 = vld [vmem:[%s8296_s3 + $0x3a0] sm:$0xff]  ;;  %v3308_v42 = vld [vmem:[%s8296_s3 + $0x318] sm:$0xff] }
 0x212   : > { %v2533_v52 = vpop.f32.mrf.mxu2  ;;  %3586 = vmatpush.msrb.mxu0 %v3282_v21  ;;  %3607 = vmatpush.msrb.mxu1 %v3297_v24  ;;  %v3324_v41 = vld [vmem:[%s8296_s3 + $0x398] sm:$0xff]  ;;  %v3305_v12 = vld [vmem:[%s8296_s3 + $0x300] sm:$0xff] }
 0x213   : > { %v2534_v53 = vadd.f32 %v2533_v52, %v7416_v10  ;;  %3627 = vmatpush.msrb.mxu2 %v3313_v2  ;;  %3647 = vmatpush.msrb.mxu3 %v3329_v0  ;;  %v3069_v30 = vadd.f32 %v3068_v29, %v2865_v39  ;;  %v3274_v0 = vld [vmem:[%s8296_s3 + $0x208] sm:$0xff] }
 0x214   : > { %v2562_v54 = vpop.f32.mrf.mxu3  ;;  %v2478_v57 = vpop.f32.mrf.mxu0  ;;  %3587 = vmatpush.msrb.mxu0 %v3281_v38  ;;  %3608 = vmatpush.msrb.mxu1 %v3296_v8  ;;  %v3322_v8 = vld [vmem:[%s8296_s3 + $0x388] sm:$0xff] }
 0x215   : > { %v2479_v60 = vadd.f32 %v2478_v57, %v7556_v26  ;;  %v2563_v5 = vadd.f32 %v2562_v54, %v2534_v53  ;;  %3628 = vmatpush.msrb.mxu2 %v3312_v25  ;;  %v3275_v54 = vld [vmem:[%s8296_s3 + $0x210] sm:$0xff]  ;;  %v3289_v25 = vld [vmem:[%s8296_s3 + $0x280] sm:$0xff] }
 0x216   : > { %v2507_v61 = vpop.f32.mrf.mxu1  ;;  %3588 = vmatpush.msrb.mxu0 %v3280_v6  ;;  %v3291_v57 = vld [vmem:[%s8296_s3 + $0x290] sm:$0xff]  ;;  %v3306_v6 = vld [vmem:[%s8296_s3 + $0x308] sm:$0xff] }
 0x217   : > { %v7619_v32 = vadd.f32 %v2507_v61, %v2479_v60  ;;  %2709 = vmatmul.bf16.gmra.mxu0 %v5877_v18  ;;  %2767 = vmatmul.bf16.gmra.mxu2 %v5877_v18  ;;  %v3328_v18 = vld [vmem:[%s8296_s3 + $0x3b8] sm:$0xff]  ;;  %v2866_v16 = vmax.f32 %v2563_v5, 0.0  ;;  %v3323_v60 = vld [vmem:[%s8296_s3 + $0x390] sm:$0xff] }
 0x218   : > { %3648 = vmatpush.msrb.mxu3 %v3328_v18  ;;  %3589 = vmatpush.msrb.mxu0 %v3279_v44 }
 0x219   : > { %2738 = vmatmul.bf16.gmra.mxu1 %v5879_v19  ;;  %2796 = vmatmul.bf16.gmra.mxu3 %v5879_v19  ;;  %v3295_v19 = vld [vmem:[%s8296_s3 + $0x2b0] sm:$0xff]  ;;  %v2881_v31 = vmax.f32 %v7619_v32, 0.0  ;;  %v3082_v46 = vadd.f32 %v3081_v35, %v2866_v16 }
 0x21a   : > { %v2536_v49 = vpop.f32.mrf.mxu2  ;;  %3609 = vmatpush.msrb.mxu1 %v3295_v19  ;;  %3629 = vmatpush.msrb.mxu2 %v3311_v14 }
 0x21b   : > { %v2537_v17 = vadd.f32 %v2536_v49, %v7416_v10  ;;  %3649 = vmatpush.msrb.mxu3 %v3327_v15  ;;  %3590 = vmatpush.msrb.mxu0 %v3278_v23  ;;  %v3070_v36 = vadd.f32 %v3069_v30, %v2881_v31 }
 0x21c   : > { %v2565_v20 = vpop.f32.mrf.mxu3  ;;  %v2480_v22 = vpop.f32.mrf.mxu0  ;;  %3610 = vmatpush.msrb.mxu1 %v3294_v27  ;;  %3630 = vmatpush.msrb.mxu2 %v3310_v3  ;;  %v7743_v27 = vld [vmem:[%s8295_s2 + $0x8] sm:$0xff] }
 0x21d   : > { %v2481_v33 = vadd.f32 %v2480_v22, %v7556_v26  ;;  %v2566_v28 = vadd.f32 %v2565_v20, %v2537_v17  ;;  %3650 = vmatpush.msrb.mxu3 %v3326_v55  ;;  %3591 = vmatpush.msrb.mxu0 %v3277_v62  ;;  %v3207_v22 = vmul.f32 0.015625, %v7216_v37  ;;  %v7746_v29 = vperm.slane %v7743_v27, 4 }
 0x21e   : > { %v2509_v7 = vpop.f32.mrf.mxu1  ;;  %3611 = vmatpush.msrb.mxu1 %v3293_v40  ;;  %3631 = vmatpush.msrb.mxu2 %v3309_v45 }
 0x21f   : > { %v2510_v43 = vadd.f32 %v2509_v7, %v2481_v33  ;;  %v2882_v21 = vmax.f32 %v2566_v28, 0.0  ;;  %3651 = vmatpush.msrb.mxu3 %v3325_v56  ;;  %3592 = vmatpush.msrb.mxu0 %v3276_v47  ;;  %v3468_v62 = vperm.slane %v3207_v22, 0  ;;  %v3469_v30 = vperm.slane %v3207_v22, 1 }
 0x220   : > { %3612 = vmatpush.msrb.mxu1 %v3292_v51  ;;  %3632 = vmatpush.msrb.mxu2 %v3308_v42  ;;  %v7751_v47 = vperm.slane %v7743_v27, 5 }
 0x221   : > { %v2897_v52 = vmax.f32 %v2510_v43, 0.0  ;;  %v3083_v53 = vadd.f32 %v3082_v46, %v2882_v21  ;;  %3652 = vmatpush.msrb.mxu3 %v3324_v41  ;;  %3593 = vmatpush.msrb.mxu0 %v3275_v54  ;;  %v3470_v43 = vperm.slane %v3207_v22, 2  ;;  %v3471_v46 = vperm.slane %v3207_v22, 3 }
 0x222   : > { %v2538_v58 = vpop.f32.mrf.mxu2  ;;  %3613 = vmatpush.msrb.mxu1 %v3291_v57  ;;  %3633 = vmatpush.msrb.mxu2 %v3307_v59 }
 0x223   : > { %v3071_v24 = vadd.f32 %v3070_v36, %v2897_v52  ;;  %v2539_v61 = vadd.f32 %v2538_v58, %v7416_v10  ;;  %3653 = vmatpush.msrb.mxu3 %v3323_v60  ;;  %3594 = vmatpush.msrb.mxu0 %v3274_v0  ;;  %v3472_v58 = vperm.slane %v3207_v22, 4 }
 0x224   : > { %v2567_v63 = vpop.f32.mrf.mxu3  ;;  %v2483_v38 = vpop.f32.mrf.mxu0  ;;  %3614 = vmatpush.msrb.mxu1 %v3290_v1  ;;  %3634 = vmatpush.msrb.mxu2 %v3306_v6  ;;  %v3475_v1 = vperm.slane %v3207_v22, 7 }
 0x225   : > { %v2484_v4 = vadd.f32 %v2483_v38, %v7556_v26  ;;  %v2568_v2 = vadd.f32 %v2567_v63, %v2539_v61  ;;  %3654 = vmatpush.msrb.mxu3 %v3322_v8  ;;  %3595 = vmatpush.msrb.mxu0 %v3273_v11  ;;  %v3473_v61 = vperm.slane %v3207_v22, 5  ;;  %v3474_v63 = vperm.slane %v3207_v22, 6 }
 0x226   : > { %v2512_v32 = vpop.f32.mrf.mxu1  ;;  %3615 = vmatpush.msrb.mxu1 %v3289_v25  ;;  %3635 = vmatpush.msrb.mxu2 %v3305_v12 }
 0x227   : > { %v2513_v5 = vadd.f32 %v2512_v32, %v2484_v4  ;;  %2714 = vmatmul.bf16.gmra.mxu0 %v5931_v48  ;;  %v2898_v9 = vmax.f32 %v2568_v2, 0.0  ;;  %2772 = vmatmul.bf16.gmra.mxu2 %v5931_v48  ;;  %v3321_v48 = vld [vmem:[%s8296_s3 + $0x380] sm:$0xff] }
 0x228   : > { %3655 = vmatpush.msrb.mxu3 %v3321_v48 }
 0x229   : > { %2743 = vmatmul.bf16.gmra.mxu1 %v5933_v50  ;;  %v2913_v18 = vmax.f32 %v2513_v5, 0.0  ;;  %2801 = vmatmul.bf16.gmra.mxu3 %v5933_v50  ;;  %v3084_v44 = vadd.f32 %v3083_v53, %v2898_v9 }
 0x22a   : > { %v2541_v13 = vpop.f32.mrf.mxu2 }
 0x22b   : > { %v3072_v19 = vadd.f32 %v3071_v24, %v2913_v18  ;;  %v2542_v39 = vadd.f32 %v2541_v13, %v7416_v10 }
 0x22c   : > { %v2570_v49 = vpop.f32.mrf.mxu3  ;;  %v2485_v50 = vpop.f32.mrf.mxu0 }
 0x22d   : > { %v2486_v14 = vadd.f32 %v2485_v50, %v7556_v26  ;;  %v2571_v16 = vadd.f32 %v2570_v49, %v2542_v39 }
 0x22e   : > { %v2514_v15 = vpop.f32.mrf.mxu1 }
 0x22f   : > { %v2515_v17 = vadd.f32 %v2514_v15, %v2486_v14  ;;  %v2914_v20 = vmax.f32 %v2571_v16, 0.0 }
 0x231   : > { %v2929_v23 = vmax.f32 %v2515_v17, 0.0  ;;  %v3085_v31 = vadd.f32 %v3084_v44, %v2914_v20 }
 0x232   : > { %v2543_v7 = vpop.f32.mrf.mxu2 }
 0x233   : > { %v3073_v33 = vadd.f32 %v3072_v19, %v2929_v23  ;;  %v2544_v26 = vadd.f32 %v2543_v7, %v7416_v10 }
 0x234   : > { %v2572_v3 = vpop.f32.mrf.mxu3  ;;  %v2584_v55 = vpop.f32.mrf.mxu0 }
 0x235   : > { %v3074_v35 = vrot.slane %v3073_v33, 4  ;;  %v2585_v28 = vadd.f32 %v2584_v55, %v7746_v29  ;;  %v2573_v40 = vadd.f32 %v2572_v3, %v2544_v26 }
 0x236   : > { %v2613_v37 = vpop.f32.mrf.mxu1 }
 0x237   : > { %v3075_v45 = vadd.f32 %v3074_v35, %v3073_v33  ;;  %v2614_v56 = vadd.f32 %v2613_v37, %v2585_v28  ;;  %3516 = vmatmul.f32.vlgmr.msra.gmra.mxu0 %v3468_v62  ;;  %v2930_v21 = vmax.f32 %v2573_v40, 0.0  ;;  %3556 = vmatmul.f32.vlgmr.msra.gmra.mxu2 %v3470_v43 }
 0x239   : > { %3536 = vmatmul.f32.vlgmr.msra.gmra.mxu1 %v3469_v30  ;;  %v3076_v10 = vrot.slane %v3075_v45, 2  ;;  %3576 = vmatmul.f32.vlgmr.msra.gmra.mxu3 %v3471_v46  ;;  %v3086_v51 = vadd.f32 %v3085_v31, %v2930_v21  ;;  %v2819_v2 = vmax.f32 %v2614_v56, 0.0 }
 0x23a   : > { %v2642_v36 = vpop.f32.mrf.mxu2 }
 0x23b   : > { %v3077_v52 = vadd.f32 %v3076_v10, %v3075_v45  ;;  %v3087_v42 = vrot.slane %v3086_v51, 4  ;;  %v2643_v41 = vadd.f32 %v2642_v36, %v7751_v47 }
 0x23c   : > { %v2671_v53 = vpop.f32.mrf.mxu3  ;;  %v2586_v54 = vpop.f32.mrf.mxu0 }
 0x23d   : > { %v2587_v57 = vadd.f32 %v2586_v54, %v7746_v29  ;;  %v3088_v59 = vadd.f32 %v3087_v42, %v3086_v51  ;;  %v2672_v60 = vadd.f32 %v2671_v53, %v2643_v41  ;;  %v3078_v4 = vrot.slane %v3077_v52, 1 }
 0x23e   : > { %v2615_v24 = vpop.f32.mrf.mxu1 }
 0x23f   : > { %v2616_v38 = vadd.f32 %v2615_v24, %v2587_v57  ;;  %3596 = vmatmul.f32.vlgmr.msrb.gmra.mxu0 %v3472_v58  ;;  %v3089_v32 = vrot.slane %v3088_v59, 2  ;;  %3636 = vmatmul.f32.vlgmr.msrb.gmra.mxu2 %v3474_v63  ;;  %v3079_v9 = vadd.f32 %v3078_v4, %v3077_v52  ;;  %v2820_v14 = vmax.f32 %v2672_v60, 0.0 }
 0x241   : > { %3616 = vmatmul.f32.vlgmr.msrb.gmra.mxu1 %v3473_v61  ;;  %v2835_v0 = vmax.f32 %v2616_v38, 0.0  ;;  %3656 = vmatmul.f32.vlgmr.msrb.gmra.mxu3 %v3475_v1  ;;  %v3090_v5 = vadd.f32 %v3089_v32, %v3088_v59  ;;  %v3169_v49 = vrot.slane %v3079_v9, 6 }
 0x242   : > { %v2644_v8 = vpop.f32.mrf.mxu2 }
 0x243   : > { %v3093_v6 = vadd.f32 %v2835_v0, %v2819_v2  ;;  %v3091_v11 = vrot.slane %v3090_v5, 1  ;;  %v2645_v25 = vadd.f32 %v2644_v8, %v7751_v47 }
 0x244   : > { %v2673_v18 = vpop.f32.mrf.mxu3  ;;  %v2589_v12 = vpop.f32.mrf.mxu0 }
 0x245   : > { %v2590_v48 = vadd.f32 %v2589_v12, %v7746_v29  ;;  %v3092_v19 = vadd.f32 %v3091_v11, %v3090_v5  ;;  %v2674_v13 = vadd.f32 %v2673_v18, %v2645_v25 }
 0x246   : > { %v2618_v44 = vpop.f32.mrf.mxu1 }
 0x247   : > { %v2619_v39 = vadd.f32 %v2618_v44, %v2590_v48  ;;  %v3170_v50 = vrot.slane %v3092_v19, 5  ;;  %v2836_v15 = vmax.f32 %v2674_v13, 0.0 }
 0x249   : > { %v2851_v16 = vmax.f32 %v2619_v39, 0.0  ;;  %v3190_v17 = vsel %vm3177_vm1, %v3169_v49, %v3170_v50  ;;  %v3106_v20 = vadd.f32 %v2836_v15, %v2820_v14 }
 0x24a   : > { %v7760_v22 = vsel %vm3179_vm2, %v7533_v34, %v3190_v17  ;;  %v2647_v31 = vpop.f32.mrf.mxu2 }
 0x24b   : > { %v3094_v23 = vadd.f32 %v3093_v6, %v2851_v16  ;;  %v2648_v33 = vadd.f32 %v2647_v31, %v7751_v47 }
 0x24c   : > { %v2676_v7 = vpop.f32.mrf.mxu3  ;;  %v2591_v26 = vpop.f32.mrf.mxu0 }
 0x24d   : > { %v2592_v3 = vadd.f32 %v2591_v26, %v7746_v29  ;;  %v2677_v35 = vadd.f32 %v2676_v7, %v2648_v33 }
 0x24e   : > { %v2620_v55 = vpop.f32.mrf.mxu1 }
 0x24f   : > { %v2621_v28 = vadd.f32 %v2620_v55, %v2592_v3  ;;  %v2852_v37 = vmax.f32 %v2677_v35, 0.0 }
 0x251   : > { %v2867_v62 = vmax.f32 %v2621_v28, 0.0  ;;  %v3107_v40 = vadd.f32 %v3106_v20, %v2852_v37 }
 0x252   : > { %v2649_v43 = vpop.f32.mrf.mxu2 }
 0x253   : > { %v3095_v30 = vadd.f32 %v3094_v23, %v2867_v62  ;;  %v2650_v45 = vadd.f32 %v2649_v43, %v7751_v47 }
 0x254   : > { %v2678_v34 = vpop.f32.mrf.mxu3  ;;  %v2594_v56 = vpop.f32.mrf.mxu0 }
 0x255   : > { %v2595_v46 = vadd.f32 %v2594_v56, %v7746_v29  ;;  %v2679_v10 = vadd.f32 %v2678_v34, %v2650_v45 }
 0x256   : > { %v2623_v21 = vpop.f32.mrf.mxu1 }
 0x257   : > { %v2624_v51 = vadd.f32 %v2623_v21, %v2595_v46  ;;  %v2868_v36 = vmax.f32 %v2679_v10, 0.0  ;;  %v3352_v10 = vld [vmem:[%s8296_s3 + $0x478] sm:$0xff] }
 0x258   : > { %3660 = vmatpush.msra.mxu0 %v3352_v10 }
 0x259   : > { %v2883_v52 = vmax.f32 %v2624_v51, 0.0  ;;  %v3108_v42 = vadd.f32 %v3107_v40, %v2868_v36  ;;  %v3368_v51 = vld [vmem:[%s8296_s3 + $0x4f8] sm:$0xff] }
 0x25a   : > { %v2652_v53 = vpop.f32.mrf.mxu2  ;;  %v3384_v36 = vld [vmem:[%s8296_s3 + $0x578] sm:$0xff]  ;;  %3680 = vmatpush.msra.mxu1 %v3368_v51 }
 0x25b   : > { %v3096_v41 = vadd.f32 %v3095_v30, %v2883_v52  ;;  %v2653_v54 = vadd.f32 %v2652_v53, %v7751_v47  ;;  %v3400_v52 = vld [vmem:[%s8296_s3 + $0x5f8] sm:$0xff]  ;;  %3700 = vmatpush.msra.mxu2 %v3384_v36  ;;  %v3367_v53 = vld [vmem:[%s8296_s3 + $0x4f0] sm:$0xff]  ;;  %v3342_v36 = vld [vmem:[%s8296_s3 + $0x428] sm:$0xff] }
 0x25c   : > { %v2681_v57 = vpop.f32.mrf.mxu3  ;;  %v2596_v24 = vpop.f32.mrf.mxu0  ;;  %3720 = vmatpush.msra.mxu3 %v3400_v52  ;;  %3681 = vmatpush.msra.mxu1 %v3367_v53  ;;  %v3358_v52 = vld [vmem:[%s8296_s3 + $0x4a8] sm:$0xff] }
 0x25d   : > { %v2597_v58 = vadd.f32 %v2596_v24, %v7746_v29  ;;  %v2682_v60 = vadd.f32 %v2681_v57, %v2653_v54  ;;  %v3383_v54 = vld [vmem:[%s8296_s3 + $0x570] sm:$0xff]  ;;  %v3390_v53 = vld [vmem:[%s8296_s3 + $0x5a8] sm:$0xff] }
 0x25e   : > { %v2625_v59 = vpop.f32.mrf.mxu1  ;;  %v3399_v24 = vld [vmem:[%s8296_s3 + $0x5f0] sm:$0xff]  ;;  %3701 = vmatpush.msra.mxu2 %v3383_v54  ;;  %v3341_v54 = vld [vmem:[%s8296_s3 + $0x420] sm:$0xff] }
 0x25f   : > { %v2626_v61 = vadd.f32 %v2625_v59, %v2597_v58  ;;  %v2884_v63 = vmax.f32 %v2682_v60, 0.0  ;;  %v3350_v58 = vld [vmem:[%s8296_s3 + $0x468] sm:$0xff]  ;;  %3721 = vmatpush.msra.mxu3 %v3399_v24  ;;  %v3357_v24 = vld [vmem:[%s8296_s3 + $0x4a0] sm:$0xff] }
 0x260   : > { %v3366_v59 = vld [vmem:[%s8296_s3 + $0x4e8] sm:$0xff] }
 0x261   : > { %v2899_v38 = vmax.f32 %v2626_v61, 0.0  ;;  %v3109_v1 = vadd.f32 %v3108_v42, %v2884_v63  ;;  %3682 = vmatpush.msra.mxu1 %v3366_v59  ;;  %v3389_v59 = vld [vmem:[%s8296_s3 + $0x5a0] sm:$0xff] }
 0x262   : > { %v2654_v32 = vpop.f32.mrf.mxu2 }
 0x263   : > { %v3097_v4 = vadd.f32 %v3096_v41, %v2899_v38  ;;  %v2655_v2 = vadd.f32 %v2654_v32, %v7751_v47  ;;  %v3351_v41 = vld [vmem:[%s8296_s3 + $0x470] sm:$0xff]  ;;  %v3349_v32 = vld [vmem:[%s8296_s3 + $0x460] sm:$0xff] }
 0x264   : > { %v2683_v0 = vpop.f32.mrf.mxu3  ;;  %v2599_v5 = vpop.f32.mrf.mxu0  ;;  %3661 = vmatpush.msra.mxu0 %v3351_v41 }
 0x265   : > { %v2600_v6 = vadd.f32 %v2599_v5, %v7746_v29  ;;  %v2684_v9 = vadd.f32 %v2683_v0, %v2655_v2  ;;  %v3365_v0 = vld [vmem:[%s8296_s3 + $0x4e0] sm:$0xff] }
 0x266   : > { %v2628_v8 = vpop.f32.mrf.mxu1  ;;  %3662 = vmatpush.msra.mxu0 %v3350_v58  ;;  %v3381_v5 = vld [vmem:[%s8296_s3 + $0x560] sm:$0xff]  ;;  %3683 = vmatpush.msra.mxu1 %v3365_v0  ;;  %v3339_v0 = vld [vmem:[%s8296_s3 + $0x410] sm:$0xff] }
 0x267   : > { %v2629_v11 = vadd.f32 %v2628_v8, %v2600_v6  ;;  %v2900_v25 = vmax.f32 %v2684_v9, 0.0  ;;  %v3397_v6 = vld [vmem:[%s8296_s3 + $0x5e0] sm:$0xff] }
 0x268   : > { %3663 = vmatpush.msra.mxu0 %v3349_v32  ;;  %v3373_v58 = vld [vmem:[%s8296_s3 + $0x520] sm:$0xff]  ;;  %v3388_v32 = vld [vmem:[%s8296_s3 + $0x598] sm:$0xff] }
 0x269   : > { %v2915_v18 = vmax.f32 %v2629_v11, 0.0  ;;  %v3110_v12 = vadd.f32 %v3109_v1, %v2900_v25  ;;  %v3382_v1 = vld [vmem:[%s8296_s3 + $0x568] sm:$0xff]  ;;  %v3348_v25 = vld [vmem:[%s8296_s3 + $0x458] sm:$0xff] }
 0x26a   : > { %v2657_v44 = vpop.f32.mrf.mxu2  ;;  %3702 = vmatpush.msra.mxu2 %v3382_v1  ;;  %3664 = vmatpush.msra.mxu0 %v3348_v25  ;;  %v3372_v1 = vld [vmem:[%s8296_s3 + $0x518] sm:$0xff] }
 0x26b   : > { %v3098_v48 = vadd.f32 %v3097_v4, %v2915_v18  ;;  %v2658_v19 = vadd.f32 %v2657_v44, %v7751_v47  ;;  %v3398_v4 = vld [vmem:[%s8296_s3 + $0x5e8] sm:$0xff]  ;;  %v3364_v18 = vld [vmem:[%s8296_s3 + $0x4d8] sm:$0xff] }
 0x26c   : > { %v2686_v13 = vpop.f32.mrf.mxu3  ;;  %v2601_v39 = vpop.f32.mrf.mxu0  ;;  %3722 = vmatpush.msra.mxu3 %v3398_v4  ;;  %3703 = vmatpush.msra.mxu2 %v3381_v5  ;;  %v7966_v4 = vperm.slane %v7743_v27, 6  ;;  %v3355_v5 = vld [vmem:[%s8296_s3 + $0x490] sm:$0xff] }
 0x26d   : > { %v2602_v49 = vadd.f32 %v2601_v39, %v7746_v29  ;;  %v2687_v14 = vadd.f32 %v2686_v13, %v2658_v19  ;;  %3684 = vmatpush.msra.mxu1 %v3364_v18  ;;  %v3347_v19 = vld [vmem:[%s8296_s3 + $0x450] sm:$0xff] }
 0x26e   : > { %v2630_v50 = vpop.f32.mrf.mxu1  ;;  %3723 = vmatpush.msra.mxu3 %v3397_v6  ;;  %v3363_v13 = vld [vmem:[%s8296_s3 + $0x4d0] sm:$0xff]  ;;  %3665 = vmatpush.msra.mxu0 %v3347_v19 }
 0x26f   : > { %v2631_v15 = vadd.f32 %v2630_v50, %v2602_v49  ;;  %v2916_v16 = vmax.f32 %v2687_v14, 0.0  ;;  %v3379_v39 = vld [vmem:[%s8296_s3 + $0x550] sm:$0xff]  ;;  %3685 = vmatpush.msra.mxu1 %v3363_v13  ;;  %v3346_v14 = vld [vmem:[%s8296_s3 + $0x448] sm:$0xff] }
 0x270   : > { %v3395_v50 = vld [vmem:[%s8296_s3 + $0x5d0] sm:$0xff]  ;;  %3666 = vmatpush.msra.mxu0 %v3346_v14  ;;  %v3337_v14 = vld [vmem:[%s8296_s3 + $0x400] sm:$0xff] }
 0x271   : > { %v2931_v17 = vmax.f32 %v2631_v15, 0.0  ;;  %v3111_v20 = vadd.f32 %v3110_v12, %v2916_v16  ;;  %v3380_v12 = vld [vmem:[%s8296_s3 + $0x558] sm:$0xff]  ;;  %v3362_v15 = vld [vmem:[%s8296_s3 + $0x4c8] sm:$0xff]  ;;  %v3371_v6 = vld [vmem:[%s8296_s3 + $0x510] sm:$0xff] }
 0x272   : > { %v2659_v31 = vpop.f32.mrf.mxu2  ;;  %3704 = vmatpush.msra.mxu2 %v3380_v12  ;;  %3686 = vmatpush.msra.mxu1 %v3362_v15  ;;  %v3338_v12 = vld [vmem:[%s8296_s3 + $0x408] sm:$0xff] }
 0x273   : > { %v3099_v23 = vadd.f32 %v3098_v48, %v2931_v17  ;;  %v2660_v33 = vadd.f32 %v2659_v31, %v7751_v47  ;;  %v3396_v48 = vld [vmem:[%s8296_s3 + $0x5d8] sm:$0xff]  ;;  %v3345_v31 = vld [vmem:[%s8296_s3 + $0x440] sm:$0xff] }
 0x274   : > { %v2688_v7 = vpop.f32.mrf.mxu3  ;;  %v7773_v26 = vpop.f32.mrf.mxu0  ;;  %3724 = vmatpush.msra.mxu3 %v3396_v48  ;;  %3705 = vmatpush.msra.mxu2 %v3379_v39  ;;  %v3370_v48 = vld [vmem:[%s8296_s3 + $0x508] sm:$0xff] }
 0x275   : > { %v3100_v3 = vrot.slane %v3099_v23, 4  ;;  %v2689_v35 = vadd.f32 %v2688_v7, %v2660_v33  ;;  %v3361_v7 = vld [vmem:[%s8296_s3 + $0x4c0] sm:$0xff]  ;;  %3667 = vmatpush.msra.mxu0 %v3345_v31  ;;  %v2701_v19 = vadd.f32 %v7773_v26, %v7966_v4  ;;  %v3416_v31 = vld [vmem:[%s8296_s3 + $0x678] sm:$0xff] }
 0x276   : > { %v7775_v55 = vpop.f32.mrf.mxu1  ;;  %3725 = vmatpush.msra.mxu3 %v3395_v50  ;;  %3687 = vmatpush.msra.mxu1 %v3361_v7  ;;  %v3386_v50 = vld [vmem:[%s8296_s3 + $0x588] sm:$0xff]  ;;  %v3353_v26 = vld [vmem:[%s8296_s3 + $0x480] sm:$0xff]  ;;  %v3432_v7 = vld [vmem:[%s8296_s3 + $0x6f8] sm:$0xff] }
 0x277   : > { %v3101_v28 = vadd.f32 %v3100_v3, %v3099_v23  ;;  %v2932_v37 = vmax.f32 %v2689_v35, 0.0  ;;  %v3394_v23 = vld [vmem:[%s8296_s3 + $0x5c8] sm:$0xff]  ;;  %v3377_v3 = vld [vmem:[%s8296_s3 + $0x540] sm:$0xff] }
 0x278   : > { %v3393_v35 = vld [vmem:[%s8296_s3 + $0x5c0] sm:$0xff]  ;;  %3726 = vmatpush.msra.mxu3 %v3394_v23 }
 0x279   : > { %v3102_v29 = vrot.slane %v3101_v28, 2  ;;  %v3112_v62 = vadd.f32 %v3111_v20, %v2932_v37  ;;  %v3378_v20 = vld [vmem:[%s8296_s3 + $0x548] sm:$0xff]  ;;  %v3360_v37 = vld [vmem:[%s8296_s3 + $0x4b8] sm:$0xff]  ;;  %v3385_v23 = vld [vmem:[%s8296_s3 + $0x580] sm:$0xff] }
 0x27a   : > { %v7777_v40 = vpop.f32.mrf.mxu2  ;;  %3706 = vmatpush.msra.mxu2 %v3378_v20  ;;  %3727 = vmatpush.msra.mxu3 %v3393_v35  ;;  %v2730_v35 = vadd.f32 %v7775_v55, %v2701_v19 }
 0x27b   : > { %v3103_v30 = vadd.f32 %v3102_v29, %v3101_v28  ;;  %v3113_v43 = vrot.slane %v3112_v62, 4  ;;  %v3344_v28 = vld [vmem:[%s8296_s3 + $0x438] sm:$0xff]  ;;  %3688 = vmatpush.msra.mxu1 %v3360_v37 }
 0x27c   : > { %v7779_v45 = vpop.f32.mrf.mxu3  ;;  %v7781_v34 = vpop.f32.mrf.mxu0  ;;  %3707 = vmatpush.msra.mxu2 %v3377_v3  ;;  %v3376_v29 = vld [vmem:[%s8296_s3 + $0x538] sm:$0xff]  ;;  %3668 = vmatpush.msra.mxu0 %v3344_v28  ;;  %v8029_v3 = vperm.slane %v7743_v27, 7  ;;  %v3415_v27 = vld [vmem:[%s8296_s3 + $0x670] sm:$0xff] }
 0x27d   : > { %v3114_v56 = vadd.f32 %v3113_v43, %v3112_v62  ;;  %v3104_v46 = vrot.slane %v3103_v30, 1  ;;  %v3392_v62 = vld [vmem:[%s8296_s3 + $0x5b8] sm:$0xff]  ;;  %v3359_v43 = vld [vmem:[%s8296_s3 + $0x4b0] sm:$0xff] }
 0x27e   : > { %v7783_v47 = vpop.f32.mrf.mxu1  ;;  %3708 = vmatpush.msra.mxu2 %v3376_v29  ;;  %3728 = vmatpush.msra.mxu3 %v3392_v62  ;;  %v3431_v29 = vld [vmem:[%s8296_s3 + $0x6f0] sm:$0xff] }
 0x27f   : > { %v3115_v21 = vrot.slane %v3114_v56, 2  ;;  %v3105_v60 = vadd.f32 %v3104_v46, %v3103_v30  ;;  %v3343_v30 = vld [vmem:[%s8296_s3 + $0x430] sm:$0xff]  ;;  %3689 = vmatpush.msra.mxu1 %v3359_v43 }
 0x280   : > { %3669 = vmatpush.msra.mxu0 %v3343_v30  ;;  %v3447_v62 = vld [vmem:[%s8296_s3 + $0x770] sm:$0xff] }
 0x281   : > { %v3116_v42 = vadd.f32 %v3115_v21, %v3114_v56  ;;  %v3171_v9 = vrot.slane %v3105_v60, 4  ;;  %v3375_v56 = vld [vmem:[%s8296_s3 + $0x530] sm:$0xff]  ;;  %3690 = vmatpush.msra.mxu1 %v3358_v52  ;;  %v3340_v60 = vld [vmem:[%s8296_s3 + $0x418] sm:$0xff] }
 0x282   : > { %v7806_v57 = vpop.f32.mrf.mxu2  ;;  %v3391_v21 = vld [vmem:[%s8296_s3 + $0x5b0] sm:$0xff]  ;;  %3709 = vmatpush.msra.mxu2 %v3375_v56  ;;  %3670 = vmatpush.msra.mxu0 %v3342_v36  ;;  %v3446_v36 = vld [vmem:[%s8296_s3 + $0x768] sm:$0xff] }
 0x283   : > { %v3117_v61 = vrot.slane %v3116_v42, 1  ;;  %3729 = vmatpush.msra.mxu3 %v3391_v21  ;;  %3691 = vmatpush.msra.mxu1 %v3357_v24  ;;  %v2761_v55 = vadd.f32 %v7806_v57, %v8029_v3  ;;  %v3430_v57 = vld [vmem:[%s8296_s3 + $0x6e8] sm:$0xff]  ;;  %v2821_v24 = vmax.f32 %v2730_v35, 0.0 }
 0x284   : > { %v7817_v63 = vpop.f32.mrf.mxu3  ;;  %v7819_v38 = vpop.f32.mrf.mxu0  ;;  %3671 = vmatpush.msra.mxu0 %v3341_v54  ;;  %v3462_v54 = vld [vmem:[%s8296_s3 + $0x7e8] sm:$0xff] }
 0x285   : > { %v3118_v8 = vadd.f32 %v3117_v61, %v3116_v42  ;;  %v3374_v42 = vld [vmem:[%s8296_s3 + $0x528] sm:$0xff]  ;;  %3730 = vmatpush.msra.mxu3 %v3390_v53  ;;  %v3356_v61 = vld [vmem:[%s8296_s3 + $0x498] sm:$0xff]  ;;  %v2706_v13 = vadd.f32 %v7819_v38, %v7966_v4  ;;  %v3369_v38 = vld [vmem:[%s8296_s3 + $0x500] sm:$0xff] }
 0x286   : > { %v7830_v2 = vpop.f32.mrf.mxu1  ;;  %3710 = vmatpush.msra.mxu2 %v3374_v42  ;;  %3672 = vmatpush.msra.mxu0 %v3340_v60 }
 0x287   : > { %v3172_v11 = vrot.slane %v3118_v8, 3  ;;  %3731 = vmatpush.msra.mxu3 %v3389_v59  ;;  %3692 = vmatpush.msra.mxu1 %v3356_v61  ;;  %v2703_v8 = vadd.f32 %v7781_v34, %v7966_v4  ;;  %v3354_v34 = vld [vmem:[%s8296_s3 + $0x488] sm:$0xff]  ;;  %v2735_v28 = vadd.f32 %v7830_v2, %v2706_v13  ;;  %v3463_v2 = vld [vmem:[%s8296_s3 + $0x7f0] sm:$0xff] }
 0x288   : > { %3711 = vmatpush.msra.mxu2 %v3373_v58  ;;  %3673 = vmatpush.msra.mxu0 %v3339_v0  ;;  %v3461_v0 = vld [vmem:[%s8296_s3 + $0x7e0] sm:$0xff] }
 0x289   : > { %v7854_v44 = vsel %vm3181_vm3, %v3171_v9, %v3172_v11  ;;  %3732 = vmatpush.msra.mxu3 %v3388_v32  ;;  %3693 = vmatpush.msra.mxu1 %v3355_v5  ;;  %v3387_v11 = vld [vmem:[%s8296_s3 + $0x590] sm:$0xff]  ;;  %v2732_v15 = vadd.f32 %v7783_v47, %v2703_v8  ;;  %v3448_v47 = vld [vmem:[%s8296_s3 + $0x778] sm:$0xff]  ;;  %v2853_v58 = vmax.f32 %v2735_v28, 0.0  ;;  %v2790_v32 = vadd.f32 %v7817_v63, %v2761_v55 }
 0x28a   : > { %v7865_v49 = vpop.f32.mrf.mxu2  ;;  %3712 = vmatpush.msra.mxu2 %v3372_v1  ;;  %3674 = vmatpush.msra.mxu0 %v3338_v12  ;;  %v3445_v1 = vld [vmem:[%s8296_s3 + $0x760] sm:$0xff]  ;;  %v3428_v63 = vld [vmem:[%s8296_s3 + $0x6d8] sm:$0xff] }
 0x28b   : > { %3733 = vmatpush.msra.mxu3 %v3387_v11  ;;  %3694 = vmatpush.msra.mxu1 %v3354_v34  ;;  %v2837_v30 = vmax.f32 %v2732_v15, 0.0  ;;  %v2764_v52 = vadd.f32 %v7865_v49, %v8029_v3  ;;  %v3429_v49 = vld [vmem:[%s8296_s3 + $0x6e0] sm:$0xff]  ;;  %v3412_v11 = vld [vmem:[%s8296_s3 + $0x658] sm:$0xff] }
 0x28c   : > { %v7876_v16 = vpop.f32.mrf.mxu3  ;;  %v7878_v17 = vpop.f32.mrf.mxu0  ;;  %3713 = vmatpush.msra.mxu2 %v3371_v6  ;;  %3675 = vmatpush.msra.mxu0 %v3337_v14 }
 0x28d   : > { %3734 = vmatpush.msra.mxu3 %v3386_v50  ;;  %v2708_v20 = vadd.f32 %v7878_v17, %v7966_v4  ;;  %3695 = vmatpush.msra.mxu1 %v3353_v26  ;;  %v3464_v17 = vld [vmem:[%s8296_s3 + $0x7f8] sm:$0xff]  ;;  %v3119_v5 = vadd.f32 %v2837_v30, %v2821_v24  ;;  %v2793_v12 = vadd.f32 %v7876_v16, %v2764_v52  ;;  %v3427_v16 = vld [vmem:[%s8296_s3 + $0x6d0] sm:$0xff]  ;;  %v2838_v50 = vmax.f32 %v2790_v32, 0.0  ;;  %v3425_v30 = vld [vmem:[%s8296_s3 + $0x6c0] sm:$0xff] }
 0x28e   : > { %v7889_v33 = vpop.f32.mrf.mxu1  ;;  %3714 = vmatpush.msra.mxu2 %v3370_v48  ;;  %3740 = vmatpush.msrb.mxu0 %v3416_v31  ;;  %v3460_v48 = vld [vmem:[%s8296_s3 + $0x7d8] sm:$0xff]  ;;  %v3410_v31 = vld [vmem:[%s8296_s3 + $0x648] sm:$0xff]  ;;  %v3455_v32 = vld [vmem:[%s8296_s3 + $0x7b0] sm:$0xff] }
 0x28f   : > { %3735 = vmatpush.msra.mxu3 %v3385_v23  ;;  %3760 = vmatpush.msrb.mxu1 %v3432_v7  ;;  %v2737_v43 = vadd.f32 %v7889_v33, %v2708_v20  ;;  %v2759_v33 = vadd.f32 %v7777_v40, %v8029_v3  ;;  %v3413_v40 = vld [vmem:[%s8296_s3 + $0x660] sm:$0xff]  ;;  %v3120_v19 = vadd.f32 %v3119_v5, %v2853_v58  ;;  %v3442_v7 = vld [vmem:[%s8296_s3 + $0x748] sm:$0xff] }
 0x290   : > { %3715 = vmatpush.msra.mxu2 %v3369_v38  ;;  %3741 = vmatpush.msrb.mxu0 %v3415_v27  ;;  %v3459_v38 = vld [vmem:[%s8296_s3 + $0x7d0] sm:$0xff]  ;;  %v3406_v5 = vld [vmem:[%s8296_s3 + $0x628] sm:$0xff] }
 0x291   : > { %3800 = vmatpush.msrb.mxu3 %v3464_v17  ;;  %3761 = vmatpush.msrb.mxu1 %v3431_v29  ;;  %v2869_v6 = vmax.f32 %v2737_v43, 0.0  ;;  %v2854_v17 = vmax.f32 %v2793_v12, 0.0  ;;  %v3458_v29 = vld [vmem:[%s8296_s3 + $0x7c8] sm:$0xff]  ;;  %v3441_v43 = vld [vmem:[%s8296_s3 + $0x740] sm:$0xff] }
 0x292   : > { %v7921_v46 = vpop.f32.mrf.mxu2  ;;  %3780 = vmatpush.msrb.mxu2 %v3448_v47 }
 0x293   : > { %3801 = vmatpush.msrb.mxu3 %v3463_v2  ;;  %3762 = vmatpush.msrb.mxu1 %v3430_v57  ;;  %v3121_v15 = vadd.f32 %v3120_v19, %v2869_v6  ;;  %v3422_v6 = vld [vmem:[%s8296_s3 + $0x6a8] sm:$0xff]  ;;  %v3421_v19 = vld [vmem:[%s8296_s3 + $0x6a0] sm:$0xff] }
 0x294   : > { %v7926_v10 = vpop.f32.mrf.mxu3  ;;  %v7928_v51 = vpop.f32.mrf.mxu0  ;;  %3781 = vmatpush.msrb.mxu2 %v3447_v62 }
 0x295   : > { %v2711_v37 = vadd.f32 %v7928_v51, %v7966_v4  ;;  %v3414_v51 = vld [vmem:[%s8296_s3 + $0x668] sm:$0xff]  ;;  %3802 = vmatpush.msrb.mxu3 %v3462_v54  ;;  %3763 = vmatpush.msrb.mxu1 %v3429_v49  ;;  %v3456_v54 = vld [vmem:[%s8296_s3 + $0x7b8] sm:$0xff] }
 0x296   : > { %v7939_v41 = vpop.f32.mrf.mxu1  ;;  %3742 = vmatpush.msrb.mxu0 %v3414_v51  ;;  %3782 = vmatpush.msrb.mxu2 %v3446_v36  ;;  %v3408_v36 = vld [vmem:[%s8296_s3 + $0x638] sm:$0xff] }
 0x297   : > { %v2740_v59 = vadd.f32 %v7939_v41, %v2711_v37  ;;  %v2766_v41 = vadd.f32 %v7921_v46, %v8029_v3  ;;  %v3444_v46 = vld [vmem:[%s8296_s3 + $0x758] sm:$0xff]  ;;  %3803 = vmatpush.msrb.mxu3 %v3461_v0  ;;  %3764 = vmatpush.msrb.mxu1 %v3428_v63  ;;  %v3438_v63 = vld [vmem:[%s8296_s3 + $0x728] sm:$0xff] }
 0x298   : > { %3743 = vmatpush.msrb.mxu0 %v3413_v40  ;;  %3783 = vmatpush.msrb.mxu2 %v3445_v1  ;;  %v3439_v1 = vld [vmem:[%s8296_s3 + $0x730] sm:$0xff] }
 0x299   : > { %v2885_v13 = vmax.f32 %v2740_v59, 0.0  ;;  %v2795_v14 = vadd.f32 %v7926_v10, %v2766_v41  ;;  %3804 = vmatpush.msrb.mxu3 %v3460_v48  ;;  %3765 = vmatpush.msrb.mxu1 %v3427_v16  ;;  %v3426_v10 = vld [vmem:[%s8296_s3 + $0x6c8] sm:$0xff]  ;;  %v3405_v48 = vld [vmem:[%s8296_s3 + $0x620] sm:$0xff] }
 0x29a   : > { %v7982_v9 = vpop.f32.mrf.mxu2  ;;  %3744 = vmatpush.msrb.mxu0 %v3412_v11  ;;  %3784 = vmatpush.msrb.mxu2 %v3444_v46  ;;  %v3454_v46 = vld [vmem:[%s8296_s3 + $0x7a8] sm:$0xff] }
 0x29b   : > { %v2769_v34 = vadd.f32 %v7982_v9, %v8029_v3  ;;  %v3443_v9 = vld [vmem:[%s8296_s3 + $0x750] sm:$0xff]  ;;  %3805 = vmatpush.msrb.mxu3 %v3459_v38  ;;  %v3122_v62 = vadd.f32 %v3121_v15, %v2885_v13  ;;  %3766 = vmatpush.msrb.mxu1 %v3426_v10  ;;  %v3436_v38 = vld [vmem:[%s8296_s3 + $0x718] sm:$0xff] }
 0x29c   : > { %v7987_v25 = vpop.f32.mrf.mxu3  ;;  %v2712_v18 = vpop.f32.mrf.mxu0  ;;  %3785 = vmatpush.msrb.mxu2 %v3443_v9  ;;  %v3452_v15 = vld [vmem:[%s8296_s3 + $0x798] sm:$0xff]  ;;  %v3419_v10 = vld [vmem:[%s8296_s3 + $0x690] sm:$0xff] }
 0x29d   : > { %v2713_v56 = vadd.f32 %v2712_v18, %v7966_v4  ;;  %v2788_v18 = vadd.f32 %v7779_v45, %v2759_v33  ;;  %v3411_v45 = vld [vmem:[%s8296_s3 + $0x650] sm:$0xff]  ;;  %v2798_v35 = vadd.f32 %v7987_v25, %v2769_v34  ;;  %v3409_v25 = vld [vmem:[%s8296_s3 + $0x640] sm:$0xff]  ;;  %3806 = vmatpush.msrb.mxu3 %v3458_v29  ;;  %v3424_v33 = vld [vmem:[%s8296_s3 + $0x6b8] sm:$0xff]  ;;  %3767 = vmatpush.msrb.mxu1 %v3425_v30 }
 0x29e   : > { %v8002_v39 = vpop.f32.mrf.mxu1  ;;  %3745 = vmatpush.msrb.mxu0 %v3411_v45  ;;  %3786 = vmatpush.msrb.mxu2 %v3442_v7  ;;  %v3437_v45 = vld [vmem:[%s8296_s3 + $0x720] sm:$0xff]  ;;  %v3450_v29 = vld [vmem:[%s8296_s3 + $0x788] sm:$0xff] }
 0x29f   : > { %v2742_v8 = vadd.f32 %v8002_v39, %v2713_v56  ;;  %v2822_v47 = vmax.f32 %v2788_v18, 0.0  ;;  %v2886_v58 = vmax.f32 %v2798_v35, 0.0  ;;  %3768 = vmatpush.msrb.mxu1 %v3424_v33  ;;  %v3433_v30 = vld [vmem:[%s8296_s3 + $0x700] sm:$0xff] }
 0x2a0   : > { %3746 = vmatpush.msrb.mxu0 %v3410_v31  ;;  %3787 = vmatpush.msrb.mxu2 %v3441_v43  ;;  %v3403_v31 = vld [vmem:[%s8296_s3 + $0x610] sm:$0xff]  ;;  %v3449_v43 = vld [vmem:[%s8296_s3 + $0x780] sm:$0xff] }
 0x2a1   : > { %v2901_v20 = vmax.f32 %v2742_v8, 0.0  ;;  %v3132_v56 = vadd.f32 %v2838_v50, %v2822_v47  ;;  %v3404_v50 = vld [vmem:[%s8296_s3 + $0x618] sm:$0xff]  ;;  %v3435_v47 = vld [vmem:[%s8296_s3 + $0x710] sm:$0xff] }
 0x2a2   : > { %v2770_v21 = vpop.f32.mrf.mxu2  ;;  %3747 = vmatpush.msrb.mxu0 %v3409_v25  ;;  %v3417_v25 = vld [vmem:[%s8296_s3 + $0x680] sm:$0xff] }
 0x2a3   : > { %v2771_v26 = vadd.f32 %v2770_v21, %v8029_v3  ;;  %v2870_v21 = vmax.f32 %v2795_v14, 0.0  ;;  %v3123_v52 = vadd.f32 %v3122_v62, %v2901_v20  ;;  %v3133_v24 = vadd.f32 %v3132_v56, %v2854_v17  ;;  %v3420_v14 = vld [vmem:[%s8296_s3 + $0x698] sm:$0xff]  ;;  %v3451_v17 = vld [vmem:[%s8296_s3 + $0x790] sm:$0xff] }
 0x2a4   : > { %v8070_v42 = vpop.f32.mrf.mxu3  ;;  %v2715_v53 = vpop.f32.mrf.mxu0  ;;  %3748 = vmatpush.msrb.mxu0 %v3408_v36 }
 0x2a5   : > { %v2716_v60 = vadd.f32 %v2715_v53, %v7966_v4  ;;  %v2800_v51 = vadd.f32 %v8070_v42, %v2771_v26  ;;  %v3440_v42 = vld [vmem:[%s8296_s3 + $0x738] sm:$0xff]  ;;  %v3134_v41 = vadd.f32 %v3133_v24, %v2870_v21 }
 0x2a6   : > { %v2744_v61 = vpop.f32.mrf.mxu1  ;;  %3788 = vmatpush.msrb.mxu2 %v3440_v42 }
 0x2a7   : > { %v2745_v39 = vadd.f32 %v2744_v61, %v2716_v60  ;;  %v3407_v60 = vld [vmem:[%s8296_s3 + $0x630] sm:$0xff]  ;;  %v2902_v0 = vmax.f32 %v2800_v51, 0.0  ;;  %v3135_v18 = vadd.f32 %v3134_v41, %v2886_v58 }
 0x2a8   : > { %v3423_v61 = vld [vmem:[%s8296_s3 + $0x6b0] sm:$0xff]  ;;  %3749 = vmatpush.msrb.mxu0 %v3407_v60  ;;  %3789 = vmatpush.msrb.mxu2 %v3439_v1 }
 0x2a9   : > { %v2917_v55 = vmax.f32 %v2745_v39, 0.0  ;;  %3769 = vmatpush.msrb.mxu1 %v3423_v61  ;;  %v3136_v16 = vadd.f32 %v3135_v18, %v2902_v0 }
 0x2aa   : > { %v2773_v23 = vpop.f32.mrf.mxu2  ;;  %3750 = vmatpush.msrb.mxu0 %v3406_v5  ;;  %3790 = vmatpush.msrb.mxu2 %v3438_v63 }
 0x2ab   : > { %v2774_v28 = vadd.f32 %v2773_v23, %v8029_v3  ;;  %v3124_v40 = vadd.f32 %v3123_v52, %v2917_v55  ;;  %3770 = vmatpush.msrb.mxu1 %v3422_v6 }
 0x2ac   : > { %v2802_v37 = vpop.f32.mrf.mxu3  ;;  %v2717_v27 = vpop.f32.mrf.mxu0  ;;  %3751 = vmatpush.msrb.mxu0 %v3405_v48  ;;  %3791 = vmatpush.msrb.mxu2 %v3437_v45 }
 0x2ad   : > { %v2718_v2 = vadd.f32 %v2717_v27, %v7966_v4  ;;  %v3457_v4 = vld [vmem:[%s8296_s3 + $0x7c0] sm:$0xff]  ;;  %v2803_v59 = vadd.f32 %v2802_v37, %v2774_v28  ;;  %3771 = vmatpush.msrb.mxu1 %v3421_v19  ;;  %v3402_v28 = vld [vmem:[%s8296_s3 + $0x608] sm:$0xff] }
 0x2ae   : > { %v2746_v57 = vpop.f32.mrf.mxu1  ;;  %3807 = vmatpush.msrb.mxu3 %v3457_v4  ;;  %3752 = vmatpush.msrb.mxu0 %v3404_v50  ;;  %v3418_v37 = vld [vmem:[%s8296_s3 + $0x688] sm:$0xff] }
 0x2af   : > { %v2747_v53 = vadd.f32 %v2746_v57, %v2718_v2  ;;  %v2918_v12 = vmax.f32 %v2803_v59, 0.0  ;;  %3772 = vmatpush.msrb.mxu1 %v3420_v14  ;;  %3792 = vmatpush.msrb.mxu2 %v3436_v38  ;;  %v3434_v27 = vld [vmem:[%s8296_s3 + $0x708] sm:$0xff]  ;;  %v3401_v2 = vld [vmem:[%s8296_s3 + $0x600] sm:$0xff] }
 0x2b0   : > { %3808 = vmatpush.msrb.mxu3 %v3456_v54  ;;  %3753 = vmatpush.msrb.mxu0 %v3403_v31 }
 0x2b1   : > { %v2933_v49 = vmax.f32 %v2747_v53, 0.0  ;;  %v3137_v20 = vadd.f32 %v3136_v16, %v2918_v12  ;;  %3773 = vmatpush.msrb.mxu1 %v3419_v10  ;;  %3793 = vmatpush.msrb.mxu2 %v3435_v47 }
 0x2b2   : > { %v2775_v11 = vpop.f32.mrf.mxu2  ;;  %3809 = vmatpush.msrb.mxu3 %v3455_v32  ;;  %3754 = vmatpush.msrb.mxu0 %v3402_v28 }
 0x2b3   : > { %v3125_v8 = vadd.f32 %v3124_v40, %v2933_v49  ;;  %v2776_v34 = vadd.f32 %v2775_v11, %v8029_v3  ;;  %v3453_v3 = vld [vmem:[%s8296_s3 + $0x7a0] sm:$0xff]  ;;  %3774 = vmatpush.msrb.mxu1 %v3418_v37  ;;  %3794 = vmatpush.msrb.mxu2 %v3434_v27 }
 0x2b4   : > { %v2804_v39 = vpop.f32.mrf.mxu3  ;;  %3810 = vmatpush.msrb.mxu3 %v3454_v46  ;;  %3755 = vmatpush.msrb.mxu0 %v3401_v2 }
 0x2b5   : > { %v3126_v13 = vrot.slane %v3125_v8, 4  ;;  %v2805_v9 = vadd.f32 %v2804_v39, %v2776_v34  ;;  %3775 = vmatpush.msrb.mxu1 %v3417_v25  ;;  %3795 = vmatpush.msrb.mxu2 %v3433_v30 }
 0x2b6   : > { %3811 = vmatpush.msrb.mxu3 %v3453_v3  ;;  %v3537_v5 = vpop.f32.mrf.mxu1 }
 0x2b7   : > { %v3127_v26 = vadd.f32 %v3126_v13, %v3125_v8  ;;  %v2934_v23 = vmax.f32 %v2805_v9, 0.0 }
 0x2b8   : > { %3812 = vmatpush.msrb.mxu3 %v3452_v15 }
 0x2b9   : > { %v3128_v7 = vrot.slane %v3127_v26, 2  ;;  %v3138_v35 = vadd.f32 %v3137_v20, %v2934_v23 }
 0x2ba   : > { %3813 = vmatpush.msrb.mxu3 %v3451_v17  ;;  %v3557_v6 = vpop.f32.mrf.mxu2 }
 0x2bb   : > { %v3129_v62 = vadd.f32 %v3128_v7, %v3127_v26  ;;  %v3139_v55 = vrot.slane %v3138_v35, 4 }
 0x2bc   : > { %3814 = vmatpush.msrb.mxu3 %v3450_v29  ;;  %v3577_v63 = vpop.f32.mrf.mxu3 }
 0x2bd   : > { %v3140_v56 = vadd.f32 %v3139_v55, %v3138_v35  ;;  %v3130_v21 = vrot.slane %v3129_v62, 1 }
 0x2be   : > { %3815 = vmatpush.msrb.mxu3 %v3449_v43  ;;  %v3617_v34 = vpop.f32.mrf.mxu1 }
 0x2bf   : > { %v3141_v51 = vrot.slane %v3140_v56, 2  ;;  %v3131_v4 = vadd.f32 %v3130_v21, %v3129_v62 }
 0x2c1   : > { %v3142_v57 = vadd.f32 %v3141_v51, %v3140_v56  ;;  %v3173_v52 = vrot.slane %v3131_v4, 2 }
 0x2c2   : > { %v3637_v19 = vpop.f32.mrf.mxu2 }
 0x2c3   : > { %v3143_v36 = vrot.slane %v3142_v57, 1 }
 0x2c4   : > { %v3657_v39 = vpop.f32.mrf.mxu3 }
 0x2c5   : > { %v3144_v33 = vadd.f32 %v3143_v36, %v3142_v57 }
 0x2c7   : > { %v3174_v53 = vrot.slane %v3144_v33, 1 }
 0x2c9   : > { %v3193_v42 = vsel %vm3183_vm4, %v3173_v52, %v3174_v53 }
 0x2ca   : > { %v3194_v54 = vsel %vm3185_vm5, %v7854_v44, %v3193_v42  ;;  %v3517_v44 = vpop.f32.mrf.mxu0 }
 0x2cb   : > { %v3195_v24 = vsel %vm3187_vm6, %v7760_v22, %v3194_v54  ;;  %v3465_v22 = vld [vmem:[%s8297_s4] sm:$0x1] }
 0x2cc   : > { %v3208_v58 = vmul.f32 0.015625, %v3195_v24  ;;  %v3518_v0 = vadd.f32 %v3517_v44, %v3465_v22 }
 0x2ce   : > { %v3476_v59 = vperm.slane %v3208_v58, 0  ;;  %v3477_v60 = vperm.slane %v3208_v58, 1  ;;  %v3478_v61 = vperm.slane %v3208_v58, 2  ;;  %v3479_v40 = vperm.slane %v3208_v58, 3 }
 0x2cf   : > { %v3480_v49 = vperm.slane %v3208_v58, 4  ;;  %v3481_v1 = vperm.slane %v3208_v58, 5  ;;  %v3482_v32 = vperm.slane %v3208_v58, 6  ;;  %v3483_v41 = vperm.slane %v3208_v58, 7 }
 0x2d0   : > { %3676 = vmatmul.f32.vlgmr.msra.gmra.mxu0 %v3476_v59  ;;  %3696 = vmatmul.f32.vlgmr.msra.gmra.mxu1 %v3477_v60  ;;  %v3538_v8 = vadd.f32 %v3537_v5, %v3518_v0 }
 0x2d1   : > { %3716 = vmatmul.f32.vlgmr.msra.gmra.mxu2 %v3478_v61  ;;  %3736 = vmatmul.f32.vlgmr.msra.gmra.mxu3 %v3479_v40 }
 0x2d2   : > { %v3558_v11 = vadd.f32 %v3557_v6, %v3538_v8  ;;  %v3597_v18 = vpop.f32.mrf.mxu0 }
 0x2d4   : > { %v3578_v46 = vadd.f32 %v3577_v63, %v3558_v11 }
 0x2d6   : > { %v3598_v12 = vadd.f32 %v3597_v18, %v3578_v46 }
 0x2d8   : > { %3756 = vmatmul.f32.vlgmr.msrb.gmra.mxu0 %v3480_v49  ;;  %3776 = vmatmul.f32.vlgmr.msrb.gmra.mxu1 %v3481_v1  ;;  %v3618_v48 = vadd.f32 %v3617_v34, %v3598_v12 }
 0x2d9   : > { %3796 = vmatmul.f32.vlgmr.msrb.gmra.mxu2 %v3482_v32  ;;  %3816 = vmatmul.f32.vlgmr.msrb.gmra.mxu3 %v3483_v41 }
 0x2da   : > { %v3638_v13 = vadd.f32 %v3637_v19, %v3618_v48 }
 0x2dc   : > { %v3658_v45 = vadd.f32 %v3657_v39, %v3638_v13 }
 0x34d   : > { %v3677_v3 = vpop.f32.mrf.mxu0  ;;  %v3697_v9 = vpop.f32.mrf.mxu1 }
 0x34e   : > { %v3678_v16 = vadd.f32 %v3677_v3, %v3658_v45 }
 0x350   : > { %v3698_v50 = vadd.f32 %v3697_v9, %v3678_v16 }
 0x354   : > { %v3717_v14 = vpop.f32.mrf.mxu2  ;;  %v3737_v26 = vpop.f32.mrf.mxu3 }
 0x355   : > { %v3718_v38 = vadd.f32 %v3717_v14, %v3698_v50  ;;  %v3757_v20 = vpop.f32.mrf.mxu0  ;;  %v3777_v31 = vpop.f32.mrf.mxu1 }
 0x357   : > { %v3738_v15 = vadd.f32 %v3737_v26, %v3718_v38 }
 0x359   : > { %v3758_v23 = vadd.f32 %v3757_v20, %v3738_v15 }
 0x35b   : > { %v3778_v10 = vadd.f32 %v3777_v31, %v3758_v23 }
 0x35c   : > { %v3797_v7 = vpop.f32.mrf.mxu2  ;;  %v3817_v17 = vpop.f32.mrf.mxu3 }
 0x35d   : > { %v3798_v47 = vadd.f32 %v3797_v7, %v3778_v10 }
 0x35f   : > { %v3818_v35 = vadd.f32 %v3817_v17, %v3798_v47 }
 0x361   : > { %3820 = vst [vmem:[%s241_s12] sm:$0x1] %v3818_v35 }
 0x362   : > { %5320 = shalt.err (!%p5317_p5)
}
 0x363   : > { %5236 = dma.vmem_to_hbm [thread:$0]  (%p5443_p4), %s3833_s13, 16, %s3835_s14, %s3822_s15  }
 0x364 PF: > { %p5242_p6 = scmp.ge.s32.totalorder %s5371_s23, 2  ;;  %s3846_s9 = sand.u32 1, %s5351_s18  }
 0x365   : > { %s3847_s10 = scalar_lea.sflag [#allocation4], %s3846_s9 }
 0x366   : > { %p5239_p7 = pnand %p5242_p6, %p5450_p8 }
 0x368   : > { %p5240_p9 = pneg %p5239_p7 }
 0x36a   : > { %5346 = dma.done.wait (%p5240_p9), %s3847_s10, 16  }
 0x36b   : > { %5348 = vsyncadd (%p5240_p9), %s3847_s10, 4294967280  ;;  %s18_s23 = sadd.s32 1, %s5371_s23   ;;  %s8301_s18 = smov %s5355_s19 }
 0x36c   : > { %p15_p10 = scmp.ge.s32.totalorder %s18_s23, 4   ;;  %s8302_s19 = smov %s5359_s20 }
 0x36d   : > { %s8303_s20 = smov %s5456_s6  ;;  %s8304_s21 = smov %s5367_s22 }
 0x36e   : > { %s8305_s22 = smov %s8307_s26  ;;  %17 = sbr.rel (!%p15_p10) target bundleno = 4 (0x4), region = 83 }
 0x373   :  { %3852 = vsyncpa [#allocation4], 1 }
 0x374   :  { %3854 = vsyncpa [#allocation4 + $0x1], 1 }

</bundles_post_ra>
